<compile_context>
chip_gen: v5e
topology: v5e:2x2
jax: 0.10.0
libtpu: 0.0.40
codegen_flags: <defaults>
</compile_context>

<pallas_src>
import numpy as np
import jax
import jax.numpy as jnp
from jax import lax
from jax.experimental import pallas as pl
from jax.experimental.pallas import tpu as pltpu

TRUNK_CH = 32  # conv trunk width (fixed by the module definition)


# ---------------------------------- kernel -----------------------------------

def dqn_kernel(x_ref,
               sel1_ref, sel2_ref, sel3_ref, sel4_ref,
               wc0_ref, wcr_ref, cb_ref,
               w1_ref, b1_ref, w2_ref, b2_ref,
               o_ref, feat_ref):
    Bt = x_ref.shape[0]

    # Load weights / constants once per grid step; closed over by the sample loop.
    sels = (sel1_ref[...], sel2_ref[...], sel3_ref[...], sel4_ref[...])
    wcr = wcr_ref[...]                                    # (5, 3, 32, 32)
    cb = cb_ref[...]                                      # (6, 32, 1)
    conv_ws = [wc0_ref[...]] + [wcr[i] for i in range(5)]  # each (3, Cout, Cin)
    conv_bs = [cb[i] for i in range(6)]                    # each (Cout, 1)
    w1 = w1_ref[...]                                       # (1024, F)   fused wv1||wa1
    b1 = b1_ref[...]                                       # (1024, 1)
    w2 = w2_ref[...]                                       # (1+A, 1024) block-diag wv2/wa2
    b2 = b2_ref[...]                                       # (1+A, 1)

    def conv3(h, w_taps, b_col):
        # Conv1d(kernel=3, VALID).  h: (Cin, L) -> (Cout, L-2)
        lout = h.shape[1] - 2
        out = jnp.dot(w_taps[0], h[:, 0:lout], preferred_element_type=jnp.float32)
        out = out + jnp.dot(w_taps[1], h[:, 1:1 + lout], preferred_element_type=jnp.float32)
        out = out + jnp.dot(w_taps[2], h[:, 2:2 + lout], preferred_element_type=jnp.float32)
        return out + b_col

    def pool3_s2(h, sel):
        # MaxPool1d(3, 2), VALID (floor mode): window max + stride-2 selection matmul.
        lm = sel.shape[0]
        m = jnp.maximum(jnp.maximum(h[:, 0:lm], h[:, 1:1 + lm]), h[:, 2:2 + lm])
        return jnp.dot(m, sel, preferred_element_type=jnp.float32)

    # Conv trunk per sample; features collected into the (Bt, Cf, Lf) scratch.
    @pl.loop(0, Bt)
    def _(s):
        h = x_ref[s]                                       # (Cin, L)
        for j in range(4):                                 # Conv -> MaxPool -> ReLU
            h = jnp.maximum(pool3_s2(conv3(h, conv_ws[j], conv_bs[j]), sels[j]), 0.0)
        for j in range(4, 6):                              # Conv -> ReLU
            h = jnp.maximum(conv3(h, conv_ws[j], conv_bs[j]), 0.0)
        feat_ref[s] = h                                    # (Cf, Lf)

    # Batched dueling heads: one wide matmul per layer over all Bt samples.
    feat = feat_ref[...]                                   # (Bt, Cf, Lf)
    featT = feat.reshape(Bt, -1).T                         # (F, Bt), torch .view(B,-1) order
    h1 = jnp.maximum(jnp.dot(w1, featT, preferred_element_type=jnp.float32) + b1, 0.0)
    h2 = jnp.dot(w2, h1, preferred_element_type=jnp.float32) + b2   # (1+A, Bt)
    val = h2[0:1, :]
    adv = h2[1:, :]
    o_ref[0] = val + adv - jnp.mean(adv, axis=0, keepdims=True)      # (A, Bt) lane-dense


# --------------------------------- wrapper ------------------------------------

def conv_out_len(L):
    for _ in range(4):
        L = L - 2               # Conv1d k=3
        L = (L - 3) // 2 + 1    # MaxPool1d(3, 2), floor mode
    L = L - 2
    L = L - 2
    assert L >= 1, "input sequence too short for this conv stack"
    return L


def _make_sels(L):
    """Precompute the 4 stride-2 selection matrices (one per pooled block)."""
    sels = []
    l = L
    for _ in range(4):
        lc = l - 2                      # conv output length
        lm = lc - 2                     # window-3 stride-1 max length
        lp = (lc - 3) // 2 + 1          # pooled length
        sel = np.zeros((lm, lp), np.float32)
        sel[2 * np.arange(lp), np.arange(lp)] = 1.0
        sels.append(jnp.asarray(sel))
        l = lp
    return sels


def dqn_forward(x, kp, *, block_b=64):
    B, C, L = x.shape
    A = kp["w2"].shape[0] - 1
    Lf = conv_out_len(L)
    Cf = TRUNK_CH

    Bt = int(block_b)
    nb = -(-B // Bt)
    Bp = nb * Bt
    if Bp != B:
        x = jnp.pad(x, ((0, Bp - B), (0, 0), (0, 0)))

    params_list = _make_sels(L) + [kp["wc0"], kp["wcr"], kp["cb"],
                                   kp["w1"], kp["b1"], kp["w2"], kp["b2"]]

    in_specs = [pl.BlockSpec((Bt, C, L), lambda i: (i, 0, 0))]
    for p_ in params_list:
        in_specs.append(pl.BlockSpec(p_.shape, (lambda i, _n=p_.ndim: (0,) * _n)))

    out = pl.pallas_call(
        dqn_kernel,
        grid=(nb,),
        in_specs=in_specs,
        out_specs=pl.BlockSpec((1, A, Bt), lambda i: (i, 0, 0)),
        out_shape=jax.ShapeDtypeStruct((nb, A, Bt), jnp.float32),
        scratch_shapes=[pltpu.VMEM((Bt, Cf, Lf), jnp.float32)],
        compiler_params=pltpu.CompilerParams(dimension_semantics=("parallel",)),
    )(x, *params_list)

    # (nb, A, Bt) -> (B, A)
    return jnp.transpose(out, (0, 2, 1)).reshape(Bp, A)[:B]


# ------------------------------ params / packing ------------------------------

def init_torch_params(key, in_ch, actions_n, feat_size):
    """Deterministic params in PyTorch layouts (Conv1d: (Cout,Cin,K); Linear: (out,in))."""
    ks = iter(jax.random.split(key, 32))

    def u(shape, fan_in):
        bound = 1.0 / float(np.sqrt(fan_in))
        return jax.random.uniform(next(ks), shape, jnp.float32, -bound, bound)

    p = {}
    chans = [in_ch] + [TRUNK_CH] * 6
    for i in range(6):
        cin, cout = chans[i], chans[i + 1]
        p[f"cw{i}"] = u((cout, cin, 3), cin * 3)
        p[f"cb{i}"] = u((cout,), cin * 3)
    p["wv1"] = u((512, feat_size), feat_size)
    p["bv1"] = u((512,), feat_size)
    p["wv2"] = u((1, 512), 512)
    p["bv2"] = u((1,), 512)
    p["wa1"] = u((512, feat_size), feat_size)
    p["ba1"] = u((512,), feat_size)
    p["wa2"] = u((actions_n, 512), 512)
    p["ba2"] = u((actions_n,), 512)
    return p


def to_kernel_params(p, actions_n):
    """Pack weights into a few kernel-friendly arrays (fused dueling heads)."""
    wc0 = jnp.transpose(p["cw0"], (2, 0, 1))                     # (3, 32, Cin)
    wcr = jnp.stack([jnp.transpose(p[f"cw{i}"], (2, 0, 1))
                     for i in range(1, 6)])                       # (5, 3, 32, 32)
    cb = jnp.stack([p[f"cb{i}"] for i in range(6)])[:, :, None]   # (6, 32, 1)

    w1 = jnp.concatenate([p["wv1"], p["wa1"]], axis=0)            # (1024, F)
    b1 = jnp.concatenate([p["bv1"], p["ba1"]])[:, None]           # (1024, 1)

    H = p["wv2"].shape[1]                                         # 512
    A = actions_n
    w2 = jnp.zeros((1 + A, 2 * H), jnp.float32)
    w2 = w2.at[0, :H].set(p["wv2"][0])                            # value row
    w2 = w2.at[1:, H:].set(p["wa2"])                              # advantage rows
    b2 = jnp.concatenate([p["bv2"], p["ba2"]])[:, None]           # (1+A, 1)

    return dict(wc0=wc0, wcr=wcr, cb=cb, w1=w1, b1=b1, w2=w2, b2=b2)


# ------------------------------ pure-JAX reference -----------------------------

def reference_forward(x, p):
    """Reference matching the PyTorch module semantics (kept at HIGHEST precision)."""
    prec = lax.Precision.HIGHEST
    h = x
    for i in range(6):
        h = lax.conv_general_dilated(
            h, p[f"cw{i}"], window_strides=(1,), padding="VALID",
            dimension_numbers=("NCH", "OIH", "NCH"), precision=prec)
        h = h + p[f"cb{i}"][None, :, None]
        if i < 4:
            h = lax.reduce_window(h, -jnp.inf, lax.max,
                                  (1, 1, 3), (1, 1, 2), "VALID")
        h = jnp.maximum(h, 0.0)
    feat = h.reshape(h.shape[0], -1)
    hv = jnp.maximum(jnp.dot(feat, p["wv1"].T, precision=prec) + p["bv1"], 0.0)
    val = jnp.dot(hv, p["wv2"].T, precision=prec) + p["bv2"]
    ha = jnp.maximum(jnp.dot(feat, p["wa1"].T, precision=prec) + p["ba1"], 0.0)
    adv = jnp.dot(ha, p["wa2"].T, precision=prec) + p["ba2"]
    return val + adv - adv.mean(axis=1, keepdims=True)


# ----------------------------------- main -------------------------------------

if __name__ == "__main__":
    B, C, L, A = 16, 4, 128, 3      # smallest L for this 6-conv/4-pool trunk is 125
    Lf = conv_out_len(L)            # -> 1
    F = TRUNK_CH * Lf               # flattened conv output size

    key = jax.random.PRNGKey(0)
    kx, kp = jax.random.split(key)
    x = jax.random.normal(kx, (B, C, L), jnp.float32)

    torch_params = init_torch_params(kp, C, A, F)
    kernel_params = to_kernel_params(torch_params, A)

    q = dqn_forward(x, kernel_params, block_b=8)   # grid of 2 batch blocks
    q = jax.block_until_ready(q)

    q_ref = reference_forward(x, torch_params)
    np.testing.assert_allclose(np.asarray(q), np.asarray(q_ref),
                               rtol=2e-2, atol=2e-2)
    print("KERNEL_OK")
</pallas_src>

<mosaic_0001>
module attributes {stable_mosaic.version = 11 : i64} {
  func.func @dqn_kernel(%arg0: i32, %arg1: memref<8x4x128xf32, #tpu.memory_space<vmem>>, %arg2: memref<124x62xf32, #tpu.memory_space<vmem>>, %arg3: memref<58x29xf32, #tpu.memory_space<vmem>>, %arg4: memref<25x13xf32, #tpu.memory_space<vmem>>, %arg5: memref<9x5xf32, #tpu.memory_space<vmem>>, %arg6: memref<3x32x4xf32, #tpu.memory_space<vmem>>, %arg7: memref<5x3x32x32xf32, #tpu.memory_space<vmem>>, %arg8: memref<6x32x1xf32, #tpu.memory_space<vmem>>, %arg9: memref<1024x32xf32, #tpu.memory_space<vmem>>, %arg10: memref<1024x1xf32, #tpu.memory_space<vmem>>, %arg11: memref<4x1024xf32, #tpu.memory_space<vmem>>, %arg12: memref<4x1xf32, #tpu.memory_space<vmem>>, %arg13: memref<1x3x8xf32, #tpu.memory_space<vmem>>, %arg14: memref<8x32x1xf32, #tpu.memory_space<vmem>>) attributes {dimension_semantics = [#tpu.dimension_semantics<parallel>], iteration_bounds = array<i64: 2>, scalar_prefetch = 0 : i64, scratch_operands = 1 : i64, tpu.core_type = #tpu.core_type<tc>, window_params = [{transform_indices = @transform_0, window_bounds = array<i64: 8, 4, 128>}, {pipeline_mode = #tpu.pipeline_mode<synchronous>, transform_indices = @transform_1, window_bounds = array<i64: 124, 62>}, {pipeline_mode = #tpu.pipeline_mode<synchronous>, transform_indices = @transform_2, window_bounds = array<i64: 58, 29>}, {pipeline_mode = #tpu.pipeline_mode<synchronous>, transform_indices = @transform_3, window_bounds = array<i64: 25, 13>}, {pipeline_mode = #tpu.pipeline_mode<synchronous>, transform_indices = @transform_4, window_bounds = array<i64: 9, 5>}, {pipeline_mode = #tpu.pipeline_mode<synchronous>, transform_indices = @transform_5, window_bounds = array<i64: 3, 32, 4>}, {pipeline_mode = #tpu.pipeline_mode<synchronous>, transform_indices = @transform_6, window_bounds = array<i64: 5, 3, 32, 32>}, {pipeline_mode = #tpu.pipeline_mode<synchronous>, transform_indices = @transform_7, window_bounds = array<i64: 6, 32, 1>}, {pipeline_mode = #tpu.pipeline_mode<synchronous>, transform_indices = @transform_8, window_bounds = array<i64: 1024, 32>}, {pipeline_mode = #tpu.pipeline_mode<synchronous>, transform_indices = @transform_9, window_bounds = array<i64: 1024, 1>}, {pipeline_mode = #tpu.pipeline_mode<synchronous>, transform_indices = @transform_10, window_bounds = array<i64: 4, 1024>}, {pipeline_mode = #tpu.pipeline_mode<synchronous>, transform_indices = @transform_11, window_bounds = array<i64: 4, 1>}, {transform_indices = @transform_12, window_bounds = array<i64: 1, 3, 8>}]} {
    %c0 = arith.constant 0 : index
    %c0_0 = arith.constant 0 : index
    %0 = vector.load %arg2[%c0, %c0_0] : memref<124x62xf32, #tpu.memory_space<vmem>>, vector<124x62xf32>
    %c0_1 = arith.constant 0 : index
    %c0_2 = arith.constant 0 : index
    %1 = vector.load %arg3[%c0_1, %c0_2] : memref<58x29xf32, #tpu.memory_space<vmem>>, vector<58x29xf32>
    %c0_3 = arith.constant 0 : index
    %c0_4 = arith.constant 0 : index
    %2 = vector.load %arg4[%c0_3, %c0_4] : memref<25x13xf32, #tpu.memory_space<vmem>>, vector<25x13xf32>
    %c0_5 = arith.constant 0 : index
    %c0_6 = arith.constant 0 : index
    %3 = vector.load %arg5[%c0_5, %c0_6] : memref<9x5xf32, #tpu.memory_space<vmem>>, vector<9x5xf32>
    %c0_7 = arith.constant 0 : index
    %c0_8 = arith.constant 0 : index
    %c0_9 = arith.constant 0 : index
    %c0_10 = arith.constant 0 : index
    %4 = vector.load %arg7[%c0_7, %c0_8, %c0_9, %c0_10] : memref<5x3x32x32xf32, #tpu.memory_space<vmem>>, vector<5x3x32x32xf32>
    %c0_11 = arith.constant 0 : index
    %c0_12 = arith.constant 0 : index
    %c0_13 = arith.constant 0 : index
    %5 = vector.load %arg8[%c0_11, %c0_12, %c0_13] : memref<6x32x1xf32, #tpu.memory_space<vmem>>, vector<6x32x1xf32>
    %c0_14 = arith.constant 0 : index
    %c0_15 = arith.constant 0 : index
    %c0_16 = arith.constant 0 : index
    %6 = vector.load %arg6[%c0_14, %c0_15, %c0_16] : memref<3x32x4xf32, #tpu.memory_space<vmem>>, vector<3x32x4xf32>
    %7 = vector.extract_strided_slice %4 {offsets = [0, 0, 0, 0], sizes = [1, 3, 32, 32], strides = [1, 1, 1, 1]} : vector<5x3x32x32xf32> to vector<1x3x32x32xf32>
    %8 = vector.shape_cast %7 : vector<1x3x32x32xf32> to vector<3x32x32xf32>
    %9 = vector.extract_strided_slice %4 {offsets = [1, 0, 0, 0], sizes = [1, 3, 32, 32], strides = [1, 1, 1, 1]} : vector<5x3x32x32xf32> to vector<1x3x32x32xf32>
    %10 = vector.shape_cast %9 : vector<1x3x32x32xf32> to vector<3x32x32xf32>
    %11 = vector.extract_strided_slice %4 {offsets = [2, 0, 0, 0], sizes = [1, 3, 32, 32], strides = [1, 1, 1, 1]} : vector<5x3x32x32xf32> to vector<1x3x32x32xf32>
    %12 = vector.shape_cast %11 : vector<1x3x32x32xf32> to vector<3x32x32xf32>
    %13 = vector.extract_strided_slice %4 {offsets = [3, 0, 0, 0], sizes = [1, 3, 32, 32], strides = [1, 1, 1, 1]} : vector<5x3x32x32xf32> to vector<1x3x32x32xf32>
    %14 = vector.shape_cast %13 : vector<1x3x32x32xf32> to vector<3x32x32xf32>
    %15 = vector.extract_strided_slice %4 {offsets = [4, 0, 0, 0], sizes = [1, 3, 32, 32], strides = [1, 1, 1, 1]} : vector<5x3x32x32xf32> to vector<1x3x32x32xf32>
    %16 = vector.shape_cast %15 : vector<1x3x32x32xf32> to vector<3x32x32xf32>
    %17 = vector.extract_strided_slice %5 {offsets = [0, 0, 0], sizes = [1, 32, 1], strides = [1, 1, 1]} : vector<6x32x1xf32> to vector<1x32x1xf32>
    %18 = vector.shape_cast %17 : vector<1x32x1xf32> to vector<32x1xf32>
    %19 = vector.extract_strided_slice %5 {offsets = [1, 0, 0], sizes = [1, 32, 1], strides = [1, 1, 1]} : vector<6x32x1xf32> to vector<1x32x1xf32>
    %20 = vector.shape_cast %19 : vector<1x32x1xf32> to vector<32x1xf32>
    %21 = vector.extract_strided_slice %5 {offsets = [2, 0, 0], sizes = [1, 32, 1], strides = [1, 1, 1]} : vector<6x32x1xf32> to vector<1x32x1xf32>
    %22 = vector.shape_cast %21 : vector<1x32x1xf32> to vector<32x1xf32>
    %23 = vector.extract_strided_slice %5 {offsets = [3, 0, 0], sizes = [1, 32, 1], strides = [1, 1, 1]} : vector<6x32x1xf32> to vector<1x32x1xf32>
    %24 = vector.shape_cast %23 : vector<1x32x1xf32> to vector<32x1xf32>
    %25 = vector.extract_strided_slice %5 {offsets = [4, 0, 0], sizes = [1, 32, 1], strides = [1, 1, 1]} : vector<6x32x1xf32> to vector<1x32x1xf32>
    %26 = vector.shape_cast %25 : vector<1x32x1xf32> to vector<32x1xf32>
    %27 = vector.extract_strided_slice %5 {offsets = [5, 0, 0], sizes = [1, 32, 1], strides = [1, 1, 1]} : vector<6x32x1xf32> to vector<1x32x1xf32>
    %28 = vector.shape_cast %27 : vector<1x32x1xf32> to vector<32x1xf32>
    %c0_17 = arith.constant 0 : index
    %c0_18 = arith.constant 0 : index
    %29 = vector.load %arg9[%c0_17, %c0_18] : memref<1024x32xf32, #tpu.memory_space<vmem>>, vector<1024x32xf32>
    %c0_19 = arith.constant 0 : index
    %c0_20 = arith.constant 0 : index
    %30 = vector.load %arg10[%c0_19, %c0_20] : memref<1024x1xf32, #tpu.memory_space<vmem>>, vector<1024x1xf32>
    %c0_21 = arith.constant 0 : index
    %c0_22 = arith.constant 0 : index
    %31 = vector.load %arg11[%c0_21, %c0_22] : memref<4x1024xf32, #tpu.memory_space<vmem>>, vector<4x1024xf32>
    %c0_23 = arith.constant 0 : index
    %c0_24 = arith.constant 0 : index
    %32 = vector.load %arg12[%c0_23, %c0_24] : memref<4x1xf32, #tpu.memory_space<vmem>>, vector<4x1xf32>
    %c0_i32 = arith.constant 0 : i32
    %c8_i32 = arith.constant 8 : i32
    %33 = arith.addi %c0_i32, %c8_i32 : i32
    %c1_i32 = arith.constant 1 : i32
    scf.for %arg15 = %c0_i32 to %33 step %c1_i32  : i32 {
      %c1_i32_36 = arith.constant 1 : i32
      %58 = arith.muli %arg15, %c1_i32_36 : i32
      %c0_i32_37 = arith.constant 0 : i32
      %59 = arith.addi %c0_i32_37, %58 : i32
      %60 = arith.index_cast %59 : i32 to index
      %c0_38 = arith.constant 0 : index
      %c0_39 = arith.constant 0 : index
      %61 = vector.load %arg1[%60, %c0_38, %c0_39] : memref<8x4x128xf32, #tpu.memory_space<vmem>>, vector<1x4x128xf32>
      %62 = vector.shape_cast %61 : vector<1x4x128xf32> to vector<4x128xf32>
      %63 = vector.extract_strided_slice %6 {offsets = [0, 0, 0], sizes = [1, 32, 4], strides = [1, 1, 1]} : vector<3x32x4xf32> to vector<1x32x4xf32>
      %64 = vector.shape_cast %63 : vector<1x32x4xf32> to vector<32x4xf32>
      %65 = vector.extract_strided_slice %62 {offsets = [0, 0], sizes = [4, 126], strides = [1, 1]} : vector<4x128xf32> to vector<4x126xf32>
      %cst_40 = arith.constant dense<0.000000e+00> : vector<32x126xf32>
      %66 = tpu.matmul %64, %65, %cst_40 {dimension_numbers = #tpu.dot_dimension_numbers<[1], [0], [0], [1], [0, 0, 1, 1], [], []>} : vector<32x4xf32>, vector<4x126xf32>, vector<32x126xf32> -> vector<32x126xf32>
      %67 = vector.extract_strided_slice %6 {offsets = [1, 0, 0], sizes = [1, 32, 4], strides = [1, 1, 1]} : vector<3x32x4xf32> to vector<1x32x4xf32>
      %68 = vector.shape_cast %67 : vector<1x32x4xf32> to vector<32x4xf32>
      %69 = vector.extract_strided_slice %62 {offsets = [0, 1], sizes = [4, 126], strides = [1, 1]} : vector<4x128xf32> to vector<4x126xf32>
      %cst_41 = arith.constant dense<0.000000e+00> : vector<32x126xf32>
      %70 = tpu.matmul %68, %69, %cst_41 {dimension_numbers = #tpu.dot_dimension_numbers<[1], [0], [0], [1], [0, 0, 1, 1], [], []>} : vector<32x4xf32>, vector<4x126xf32>, vector<32x126xf32> -> vector<32x126xf32>
      %71 = arith.addf %66, %70 : vector<32x126xf32>
      %72 = vector.extract_strided_slice %6 {offsets = [2, 0, 0], sizes = [1, 32, 4], strides = [1, 1, 1]} : vector<3x32x4xf32> to vector<1x32x4xf32>
      %73 = vector.shape_cast %72 : vector<1x32x4xf32> to vector<32x4xf32>
      %74 = vector.extract_strided_slice %62 {offsets = [0, 2], sizes = [4, 126], strides = [1, 1]} : vector<4x128xf32> to vector<4x126xf32>
      %cst_42 = arith.constant dense<0.000000e+00> : vector<32x126xf32>
      %75 = tpu.matmul %73, %74, %cst_42 {dimension_numbers = #tpu.dot_dimension_numbers<[1], [0], [0], [1], [0, 0, 1, 1], [], []>} : vector<32x4xf32>, vector<4x126xf32>, vector<32x126xf32> -> vector<32x126xf32>
      %76 = arith.addf %71, %75 : vector<32x126xf32>
      %77 = vector.broadcast %18 : vector<32x1xf32> to vector<32x126xf32>
      %78 = arith.addf %76, %77 : vector<32x126xf32>
      %79 = vector.extract_strided_slice %78 {offsets = [0, 0], sizes = [32, 124], strides = [1, 1]} : vector<32x126xf32> to vector<32x124xf32>
      %80 = vector.extract_strided_slice %78 {offsets = [0, 1], sizes = [32, 124], strides = [1, 1]} : vector<32x126xf32> to vector<32x124xf32>
      %81 = arith.maximumf %79, %80 : vector<32x124xf32>
      %82 = vector.extract_strided_slice %78 {offsets = [0, 2], sizes = [32, 124], strides = [1, 1]} : vector<32x126xf32> to vector<32x124xf32>
      %83 = arith.maximumf %81, %82 : vector<32x124xf32>
      %cst_43 = arith.constant dense<0.000000e+00> : vector<32x62xf32>
      %84 = tpu.matmul %83, %0, %cst_43 {dimension_numbers = #tpu.dot_dimension_numbers<[1], [0], [0], [1], [0, 0, 1, 1], [], []>} : vector<32x124xf32>, vector<124x62xf32>, vector<32x62xf32> -> vector<32x62xf32>
      %cst_44 = arith.constant 0.000000e+00 : f32
      %85 = vector.broadcast %cst_44 : f32 to vector<32x62xf32>
      %86 = arith.maximumf %84, %85 : vector<32x62xf32>
      %87 = vector.extract_strided_slice %8 {offsets = [0, 0, 0], sizes = [1, 32, 32], strides = [1, 1, 1]} : vector<3x32x32xf32> to vector<1x32x32xf32>
      %88 = vector.shape_cast %87 : vector<1x32x32xf32> to vector<32x32xf32>
      %89 = vector.extract_strided_slice %86 {offsets = [0, 0], sizes = [32, 60], strides = [1, 1]} : vector<32x62xf32> to vector<32x60xf32>
      %cst_45 = arith.constant dense<0.000000e+00> : vector<32x60xf32>
      %90 = tpu.matmul %88, %89, %cst_45 {dimension_numbers = #tpu.dot_dimension_numbers<[1], [0], [0], [1], [0, 0, 1, 1], [], []>} : vector<32x32xf32>, vector<32x60xf32>, vector<32x60xf32> -> vector<32x60xf32>
      %91 = vector.extract_strided_slice %8 {offsets = [1, 0, 0], sizes = [1, 32, 32], strides = [1, 1, 1]} : vector<3x32x32xf32> to vector<1x32x32xf32>
      %92 = vector.shape_cast %91 : vector<1x32x32xf32> to vector<32x32xf32>
      %93 = vector.extract_strided_slice %86 {offsets = [0, 1], sizes = [32, 60], strides = [1, 1]} : vector<32x62xf32> to vector<32x60xf32>
      %cst_46 = arith.constant dense<0.000000e+00> : vector<32x60xf32>
      %94 = tpu.matmul %92, %93, %cst_46 {dimension_numbers = #tpu.dot_dimension_numbers<[1], [0], [0], [1], [0, 0, 1, 1], [], []>} : vector<32x32xf32>, vector<32x60xf32>, vector<32x60xf32> -> vector<32x60xf32>
      %95 = arith.addf %90, %94 : vector<32x60xf32>
      %96 = vector.extract_strided_slice %8 {offsets = [2, 0, 0], sizes = [1, 32, 32], strides = [1, 1, 1]} : vector<3x32x32xf32> to vector<1x32x32xf32>
      %97 = vector.shape_cast %96 : vector<1x32x32xf32> to vector<32x32xf32>
      %98 = vector.extract_strided_slice %86 {offsets = [0, 2], sizes = [32, 60], strides = [1, 1]} : vector<32x62xf32> to vector<32x60xf32>
      %cst_47 = arith.constant dense<0.000000e+00> : vector<32x60xf32>
      %99 = tpu.matmul %97, %98, %cst_47 {dimension_numbers = #tpu.dot_dimension_numbers<[1], [0], [0], [1], [0, 0, 1, 1], [], []>} : vector<32x32xf32>, vector<32x60xf32>, vector<32x60xf32> -> vector<32x60xf32>
      %100 = arith.addf %95, %99 : vector<32x60xf32>
      %101 = vector.broadcast %20 : vector<32x1xf32> to vector<32x60xf32>
      %102 = arith.addf %100, %101 : vector<32x60xf32>
      %103 = vector.extract_strided_slice %102 {offsets = [0, 0], sizes = [32, 58], strides = [1, 1]} : vector<32x60xf32> to vector<32x58xf32>
      %104 = vector.extract_strided_slice %102 {offsets = [0, 1], sizes = [32, 58], strides = [1, 1]} : vector<32x60xf32> to vector<32x58xf32>
      %105 = arith.maximumf %103, %104 : vector<32x58xf32>
      %106 = vector.extract_strided_slice %102 {offsets = [0, 2], sizes = [32, 58], strides = [1, 1]} : vector<32x60xf32> to vector<32x58xf32>
      %107 = arith.maximumf %105, %106 : vector<32x58xf32>
      %cst_48 = arith.constant dense<0.000000e+00> : vector<32x29xf32>
      %108 = tpu.matmul %107, %1, %cst_48 {dimension_numbers = #tpu.dot_dimension_numbers<[1], [0], [0], [1], [0, 0, 1, 1], [], []>} : vector<32x58xf32>, vector<58x29xf32>, vector<32x29xf32> -> vector<32x29xf32>
      %cst_49 = arith.constant 0.000000e+00 : f32
      %109 = vector.broadcast %cst_49 : f32 to vector<32x29xf32>
      %110 = arith.maximumf %108, %109 : vector<32x29xf32>
      %111 = vector.extract_strided_slice %10 {offsets = [0, 0, 0], sizes = [1, 32, 32], strides = [1, 1, 1]} : vector<3x32x32xf32> to vector<1x32x32xf32>
      %112 = vector.shape_cast %111 : vector<1x32x32xf32> to vector<32x32xf32>
      %113 = vector.extract_strided_slice %110 {offsets = [0, 0], sizes = [32, 27], strides = [1, 1]} : vector<32x29xf32> to vector<32x27xf32>
      %cst_50 = arith.constant dense<0.000000e+00> : vector<32x27xf32>
      %114 = tpu.matmul %112, %113, %cst_50 {dimension_numbers = #tpu.dot_dimension_numbers<[1], [0], [0], [1], [0, 0, 1, 1], [], []>} : vector<32x32xf32>, vector<32x27xf32>, vector<32x27xf32> -> vector<32x27xf32>
      %115 = vector.extract_strided_slice %10 {offsets = [1, 0, 0], sizes = [1, 32, 32], strides = [1, 1, 1]} : vector<3x32x32xf32> to vector<1x32x32xf32>
      %116 = vector.shape_cast %115 : vector<1x32x32xf32> to vector<32x32xf32>
      %117 = vector.extract_strided_slice %110 {offsets = [0, 1], sizes = [32, 27], strides = [1, 1]} : vector<32x29xf32> to vector<32x27xf32>
      %cst_51 = arith.constant dense<0.000000e+00> : vector<32x27xf32>
      %118 = tpu.matmul %116, %117, %cst_51 {dimension_numbers = #tpu.dot_dimension_numbers<[1], [0], [0], [1], [0, 0, 1, 1], [], []>} : vector<32x32xf32>, vector<32x27xf32>, vector<32x27xf32> -> vector<32x27xf32>
      %119 = arith.addf %114, %118 : vector<32x27xf32>
      %120 = vector.extract_strided_slice %10 {offsets = [2, 0, 0], sizes = [1, 32, 32], strides = [1, 1, 1]} : vector<3x32x32xf32> to vector<1x32x32xf32>
      %121 = vector.shape_cast %120 : vector<1x32x32xf32> to vector<32x32xf32>
      %122 = vector.extract_strided_slice %110 {offsets = [0, 2], sizes = [32, 27], strides = [1, 1]} : vector<32x29xf32> to vector<32x27xf32>
      %cst_52 = arith.constant dense<0.000000e+00> : vector<32x27xf32>
      %123 = tpu.matmul %121, %122, %cst_52 {dimension_numbers = #tpu.dot_dimension_numbers<[1], [0], [0], [1], [0, 0, 1, 1], [], []>} : vector<32x32xf32>, vector<32x27xf32>, vector<32x27xf32> -> vector<32x27xf32>
      %124 = arith.addf %119, %123 : vector<32x27xf32>
      %125 = vector.broadcast %22 : vector<32x1xf32> to vector<32x27xf32>
      %126 = arith.addf %124, %125 : vector<32x27xf32>
      %127 = vector.extract_strided_slice %126 {offsets = [0, 0], sizes = [32, 25], strides = [1, 1]} : vector<32x27xf32> to vector<32x25xf32>
      %128 = vector.extract_strided_slice %126 {offsets = [0, 1], sizes = [32, 25], strides = [1, 1]} : vector<32x27xf32> to vector<32x25xf32>
      %129 = arith.maximumf %127, %128 : vector<32x25xf32>
      %130 = vector.extract_strided_slice %126 {offsets = [0, 2], sizes = [32, 25], strides = [1, 1]} : vector<32x27xf32> to vector<32x25xf32>
      %131 = arith.maximumf %129, %130 : vector<32x25xf32>
      %cst_53 = arith.constant dense<0.000000e+00> : vector<32x13xf32>
      %132 = tpu.matmul %131, %2, %cst_53 {dimension_numbers = #tpu.dot_dimension_numbers<[1], [0], [0], [1], [0, 0, 1, 1], [], []>} : vector<32x25xf32>, vector<25x13xf32>, vector<32x13xf32> -> vector<32x13xf32>
      %cst_54 = arith.constant 0.000000e+00 : f32
      %133 = vector.broadcast %cst_54 : f32 to vector<32x13xf32>
      %134 = arith.maximumf %132, %133 : vector<32x13xf32>
      %135 = vector.extract_strided_slice %12 {offsets = [0, 0, 0], sizes = [1, 32, 32], strides = [1, 1, 1]} : vector<3x32x32xf32> to vector<1x32x32xf32>
      %136 = vector.shape_cast %135 : vector<1x32x32xf32> to vector<32x32xf32>
      %137 = vector.extract_strided_slice %134 {offsets = [0, 0], sizes = [32, 11], strides = [1, 1]} : vector<32x13xf32> to vector<32x11xf32>
      %cst_55 = arith.constant dense<0.000000e+00> : vector<32x11xf32>
      %138 = tpu.matmul %136, %137, %cst_55 {dimension_numbers = #tpu.dot_dimension_numbers<[1], [0], [0], [1], [0, 0, 1, 1], [], []>} : vector<32x32xf32>, vector<32x11xf32>, vector<32x11xf32> -> vector<32x11xf32>
      %139 = vector.extract_strided_slice %12 {offsets = [1, 0, 0], sizes = [1, 32, 32], strides = [1, 1, 1]} : vector<3x32x32xf32> to vector<1x32x32xf32>
      %140 = vector.shape_cast %139 : vector<1x32x32xf32> to vector<32x32xf32>
      %141 = vector.extract_strided_slice %134 {offsets = [0, 1], sizes = [32, 11], strides = [1, 1]} : vector<32x13xf32> to vector<32x11xf32>
      %cst_56 = arith.constant dense<0.000000e+00> : vector<32x11xf32>
      %142 = tpu.matmul %140, %141, %cst_56 {dimension_numbers = #tpu.dot_dimension_numbers<[1], [0], [0], [1], [0, 0, 1, 1], [], []>} : vector<32x32xf32>, vector<32x11xf32>, vector<32x11xf32> -> vector<32x11xf32>
      %143 = arith.addf %138, %142 : vector<32x11xf32>
      %144 = vector.extract_strided_slice %12 {offsets = [2, 0, 0], sizes = [1, 32, 32], strides = [1, 1, 1]} : vector<3x32x32xf32> to vector<1x32x32xf32>
      %145 = vector.shape_cast %144 : vector<1x32x32xf32> to vector<32x32xf32>
      %146 = vector.extract_strided_slice %134 {offsets = [0, 2], sizes = [32, 11], strides = [1, 1]} : vector<32x13xf32> to vector<32x11xf32>
      %cst_57 = arith.constant dense<0.000000e+00> : vector<32x11xf32>
      %147 = tpu.matmul %145, %146, %cst_57 {dimension_numbers = #tpu.dot_dimension_numbers<[1], [0], [0], [1], [0, 0, 1, 1], [], []>} : vector<32x32xf32>, vector<32x11xf32>, vector<32x11xf32> -> vector<32x11xf32>
      %148 = arith.addf %143, %147 : vector<32x11xf32>
      %149 = vector.broadcast %24 : vector<32x1xf32> to vector<32x11xf32>
      %150 = arith.addf %148, %149 : vector<32x11xf32>
      %151 = vector.extract_strided_slice %150 {offsets = [0, 0], sizes = [32, 9], strides = [1, 1]} : vector<32x11xf32> to vector<32x9xf32>
      %152 = vector.extract_strided_slice %150 {offsets = [0, 1], sizes = [32, 9], strides = [1, 1]} : vector<32x11xf32> to vector<32x9xf32>
      %153 = arith.maximumf %151, %152 : vector<32x9xf32>
      %154 = vector.extract_strided_slice %150 {offsets = [0, 2], sizes = [32, 9], strides = [1, 1]} : vector<32x11xf32> to vector<32x9xf32>
      %155 = arith.maximumf %153, %154 : vector<32x9xf32>
      %cst_58 = arith.constant dense<0.000000e+00> : vector<32x5xf32>
      %156 = tpu.matmul %155, %3, %cst_58 {dimension_numbers = #tpu.dot_dimension_numbers<[1], [0], [0], [1], [0, 0, 1, 1], [], []>} : vector<32x9xf32>, vector<9x5xf32>, vector<32x5xf32> -> vector<32x5xf32>
      %cst_59 = arith.constant 0.000000e+00 : f32
      %157 = vector.broadcast %cst_59 : f32 to vector<32x5xf32>
      %158 = arith.maximumf %156, %157 : vector<32x5xf32>
      %159 = vector.extract_strided_slice %14 {offsets = [0, 0, 0], sizes = [1, 32, 32], strides = [1, 1, 1]} : vector<3x32x32xf32> to vector<1x32x32xf32>
      %160 = vector.shape_cast %159 : vector<1x32x32xf32> to vector<32x32xf32>
      %161 = vector.extract_strided_slice %158 {offsets = [0, 0], sizes = [32, 3], strides = [1, 1]} : vector<32x5xf32> to vector<32x3xf32>
      %cst_60 = arith.constant dense<0.000000e+00> : vector<32x3xf32>
      %162 = tpu.matmul %160, %161, %cst_60 {dimension_numbers = #tpu.dot_dimension_numbers<[1], [0], [0], [1], [0, 0, 1, 1], [], []>} : vector<32x32xf32>, vector<32x3xf32>, vector<32x3xf32> -> vector<32x3xf32>
      %163 = vector.extract_strided_slice %14 {offsets = [1, 0, 0], sizes = [1, 32, 32], strides = [1, 1, 1]} : vector<3x32x32xf32> to vector<1x32x32xf32>
      %164 = vector.shape_cast %163 : vector<1x32x32xf32> to vector<32x32xf32>
      %165 = vector.extract_strided_slice %158 {offsets = [0, 1], sizes = [32, 3], strides = [1, 1]} : vector<32x5xf32> to vector<32x3xf32>
      %cst_61 = arith.constant dense<0.000000e+00> : vector<32x3xf32>
      %166 = tpu.matmul %164, %165, %cst_61 {dimension_numbers = #tpu.dot_dimension_numbers<[1], [0], [0], [1], [0, 0, 1, 1], [], []>} : vector<32x32xf32>, vector<32x3xf32>, vector<32x3xf32> -> vector<32x3xf32>
      %167 = arith.addf %162, %166 : vector<32x3xf32>
      %168 = vector.extract_strided_slice %14 {offsets = [2, 0, 0], sizes = [1, 32, 32], strides = [1, 1, 1]} : vector<3x32x32xf32> to vector<1x32x32xf32>
      %169 = vector.shape_cast %168 : vector<1x32x32xf32> to vector<32x32xf32>
      %170 = vector.extract_strided_slice %158 {offsets = [0, 2], sizes = [32, 3], strides = [1, 1]} : vector<32x5xf32> to vector<32x3xf32>
      %cst_62 = arith.constant dense<0.000000e+00> : vector<32x3xf32>
      %171 = tpu.matmul %169, %170, %cst_62 {dimension_numbers = #tpu.dot_dimension_numbers<[1], [0], [0], [1], [0, 0, 1, 1], [], []>} : vector<32x32xf32>, vector<32x3xf32>, vector<32x3xf32> -> vector<32x3xf32>
      %172 = arith.addf %167, %171 : vector<32x3xf32>
      %173 = vector.broadcast %26 : vector<32x1xf32> to vector<32x3xf32>
      %174 = arith.addf %172, %173 : vector<32x3xf32>
      %cst_63 = arith.constant 0.000000e+00 : f32
      %175 = vector.broadcast %cst_63 : f32 to vector<32x3xf32>
      %176 = arith.maximumf %174, %175 : vector<32x3xf32>
      %177 = vector.extract_strided_slice %16 {offsets = [0, 0, 0], sizes = [1, 32, 32], strides = [1, 1, 1]} : vector<3x32x32xf32> to vector<1x32x32xf32>
      %178 = vector.shape_cast %177 : vector<1x32x32xf32> to vector<32x32xf32>
      %179 = vector.extract_strided_slice %176 {offsets = [0, 0], sizes = [32, 1], strides = [1, 1]} : vector<32x3xf32> to vector<32x1xf32>
      %cst_64 = arith.constant dense<0.000000e+00> : vector<32x1xf32>
      %180 = tpu.matmul %178, %179, %cst_64 {dimension_numbers = #tpu.dot_dimension_numbers<[1], [0], [0], [1], [0, 0, 1, 1], [], []>} : vector<32x32xf32>, vector<32x1xf32>, vector<32x1xf32> -> vector<32x1xf32>
      %181 = vector.extract_strided_slice %16 {offsets = [1, 0, 0], sizes = [1, 32, 32], strides = [1, 1, 1]} : vector<3x32x32xf32> to vector<1x32x32xf32>
      %182 = vector.shape_cast %181 : vector<1x32x32xf32> to vector<32x32xf32>
      %183 = vector.extract_strided_slice %176 {offsets = [0, 1], sizes = [32, 1], strides = [1, 1]} : vector<32x3xf32> to vector<32x1xf32>
      %cst_65 = arith.constant dense<0.000000e+00> : vector<32x1xf32>
      %184 = tpu.matmul %182, %183, %cst_65 {dimension_numbers = #tpu.dot_dimension_numbers<[1], [0], [0], [1], [0, 0, 1, 1], [], []>} : vector<32x32xf32>, vector<32x1xf32>, vector<32x1xf32> -> vector<32x1xf32>
      %185 = arith.addf %180, %184 : vector<32x1xf32>
      %186 = vector.extract_strided_slice %16 {offsets = [2, 0, 0], sizes = [1, 32, 32], strides = [1, 1, 1]} : vector<3x32x32xf32> to vector<1x32x32xf32>
      %187 = vector.shape_cast %186 : vector<1x32x32xf32> to vector<32x32xf32>
      %188 = vector.extract_strided_slice %176 {offsets = [0, 2], sizes = [32, 1], strides = [1, 1]} : vector<32x3xf32> to vector<32x1xf32>
      %cst_66 = arith.constant dense<0.000000e+00> : vector<32x1xf32>
      %189 = tpu.matmul %187, %188, %cst_66 {dimension_numbers = #tpu.dot_dimension_numbers<[1], [0], [0], [1], [0, 0, 1, 1], [], []>} : vector<32x32xf32>, vector<32x1xf32>, vector<32x1xf32> -> vector<32x1xf32>
      %190 = arith.addf %185, %189 : vector<32x1xf32>
      %191 = arith.addf %190, %28 : vector<32x1xf32>
      %cst_67 = arith.constant 0.000000e+00 : f32
      %192 = vector.broadcast %cst_67 : f32 to vector<32x1xf32>
      %193 = arith.maximumf %191, %192 : vector<32x1xf32>
      %194 = arith.index_cast %59 : i32 to index
      %c0_68 = arith.constant 0 : index
      %c0_69 = arith.constant 0 : index
      %195 = vector.load %arg14[%194, %c0_68, %c0_69] : memref<8x32x1xf32, #tpu.memory_space<vmem>>, vector<1x32x1xf32>
      %196 = vector.shape_cast %195 : vector<1x32x1xf32> to vector<32x1xf32>
      %197 = vector.shape_cast %193 : vector<32x1xf32> to vector<1x32x1xf32>
      tpu.vector_store %arg14[%194, %c0_68, %c0_69], %197 {strides = array<i32>} : memref<8x32x1xf32, #tpu.memory_space<vmem>>, vector<1x32x1xf32>,
    }
    %c8_i32_25 = arith.constant 8 : i32
    %c0_26 = arith.constant 0 : index
    %c0_27 = arith.constant 0 : index
    %c0_28 = arith.constant 0 : index
    %34 = vector.load %arg14[%c0_26, %c0_27, %c0_28] : memref<8x32x1xf32, #tpu.memory_space<vmem>>, vector<8x32x1xf32>
    %35 = vector.shape_cast %34 : vector<8x32x1xf32> to vector<8x32xf32>
    %36 = tpu.transpose %35, [1, 0] : vector<8x32xf32> -> vector<32x8xf32>
    %cst = arith.constant dense<0.000000e+00> : vector<1024x8xf32>
    %37 = tpu.matmul %29, %36, %cst {dimension_numbers = #tpu.dot_dimension_numbers<[1], [0], [0], [1], [0, 0, 1, 1], [], []>} : vector<1024x32xf32>, vector<32x8xf32>, vector<1024x8xf32> -> vector<1024x8xf32>
    %38 = vector.broadcast %30 : vector<1024x1xf32> to vector<1024x8xf32>
    %39 = arith.addf %37, %38 : vector<1024x8xf32>
    %cst_29 = arith.constant 0.000000e+00 : f32
    %40 = vector.broadcast %cst_29 : f32 to vector<1024x8xf32>
    %41 = arith.maximumf %39, %40 : vector<1024x8xf32>
    %cst_30 = arith.constant dense<0.000000e+00> : vector<4x8xf32>
    %42 = tpu.matmul %31, %41, %cst_30 {dimension_numbers = #tpu.dot_dimension_numbers<[1], [0], [0], [1], [0, 0, 1, 1], [], []>} : vector<4x1024xf32>, vector<1024x8xf32>, vector<4x8xf32> -> vector<4x8xf32>
    %43 = vector.broadcast %32 : vector<4x1xf32> to vector<4x8xf32>
    %44 = arith.addf %42, %43 : vector<4x8xf32>
    %45 = vector.extract_strided_slice %44 {offsets = [0, 0], sizes = [1, 8], strides = [1, 1]} : vector<4x8xf32> to vector<1x8xf32>
    %46 = vector.extract_strided_slice %44 {offsets = [1, 0], sizes = [3, 8], strides = [1, 1]} : vector<4x8xf32> to vector<3x8xf32>
    %47 = vector.broadcast %45 : vector<1x8xf32> to vector<3x8xf32>
    %48 = arith.addf %47, %46 : vector<3x8xf32>
    %cst_31 = arith.constant dense<0.000000e+00> : vector<8xf32>
    %49 = vector.multi_reduction <add>, %46, %cst_31 [0] : vector<3x8xf32> to vector<8xf32>
    %50 = vector.shape_cast %49 : vector<8xf32> to vector<1x8xf32>
    %cst_32 = arith.constant 3.000000e+00 : f32
    %51 = vector.broadcast %cst_32 : f32 to vector<1x8xf32>
    %52 = arith.divf %50, %51 : vector<1x8xf32>
    %53 = vector.broadcast %52 : vector<1x8xf32> to vector<3x8xf32>
    %54 = arith.subf %48, %53 : vector<3x8xf32>
    %c0_33 = arith.constant 0 : index
    %c0_34 = arith.constant 0 : index
    %c0_35 = arith.constant 0 : index
    %55 = vector.load %arg13[%c0_33, %c0_34, %c0_35] : memref<1x3x8xf32, #tpu.memory_space<vmem>>, vector<1x3x8xf32>
    %56 = vector.shape_cast %55 : vector<1x3x8xf32> to vector<3x8xf32>
    %57 = vector.shape_cast %54 : vector<3x8xf32> to vector<1x3x8xf32>
    tpu.vector_store %arg13[%c0_33, %c0_34, %c0_35], %57 {strides = array<i32>} : memref<1x3x8xf32, #tpu.memory_space<vmem>>, vector<1x3x8xf32>,
    return
  }
  func.func @transform_0(%arg0: i32) -> (i32, i32, i32) {
    %c0_i32 = arith.constant 0 : i32
    %c0_i32_0 = arith.constant 0 : i32
    %c0_i32_1 = arith.constant 0 : i32
    return %arg0, %c0_i32, %c0_i32_0 : i32, i32, i32
  }
  func.func @transform_1(%arg0: i32) -> (i32, i32) {
    %c0_i32 = arith.constant 0 : i32
    %c0_i32_0 = arith.constant 0 : i32
    %c0_i32_1 = arith.constant 0 : i32
    return %c0_i32, %c0_i32_0 : i32, i32
  }
  func.func @transform_2(%arg0: i32) -> (i32, i32) {
    %c0_i32 = arith.constant 0 : i32
    %c0_i32_0 = arith.constant 0 : i32
    %c0_i32_1 = arith.constant 0 : i32
    return %c0_i32, %c0_i32_0 : i32, i32
  }
  func.func @transform_3(%arg0: i32) -> (i32, i32) {
    %c0_i32 = arith.constant 0 : i32
    %c0_i32_0 = arith.constant 0 : i32
    %c0_i32_1 = arith.constant 0 : i32
    return %c0_i32, %c0_i32_0 : i32, i32
  }
  func.func @transform_4(%arg0: i32) -> (i32, i32) {
    %c0_i32 = arith.constant 0 : i32
    %c0_i32_0 = arith.constant 0 : i32
    %c0_i32_1 = arith.constant 0 : i32
    return %c0_i32, %c0_i32_0 : i32, i32
  }
  func.func @transform_5(%arg0: i32) -> (i32, i32, i32) {
    %c0_i32 = arith.constant 0 : i32
    %c0_i32_0 = arith.constant 0 : i32
    %c0_i32_1 = arith.constant 0 : i32
    %c0_i32_2 = arith.constant 0 : i32
    return %c0_i32, %c0_i32_0, %c0_i32_1 : i32, i32, i32
  }
  func.func @transform_6(%arg0: i32) -> (i32, i32, i32, i32) {
    %c0_i32 = arith.constant 0 : i32
    %c0_i32_0 = arith.constant 0 : i32
    %c0_i32_1 = arith.constant 0 : i32
    %c0_i32_2 = arith.constant 0 : i32
    %c0_i32_3 = arith.constant 0 : i32
    return %c0_i32, %c0_i32_0, %c0_i32_1, %c0_i32_2 : i32, i32, i32, i32
  }
  func.func @transform_7(%arg0: i32) -> (i32, i32, i32) {
    %c0_i32 = arith.constant 0 : i32
    %c0_i32_0 = arith.constant 0 : i32
    %c0_i32_1 = arith.constant 0 : i32
    %c0_i32_2 = arith.constant 0 : i32
    return %c0_i32, %c0_i32_0, %c0_i32_1 : i32, i32, i32
  }
  func.func @transform_8(%arg0: i32) -> (i32, i32) {
    %c0_i32 = arith.constant 0 : i32
    %c0_i32_0 = arith.constant 0 : i32
    %c0_i32_1 = arith.constant 0 : i32
    return %c0_i32, %c0_i32_0 : i32, i32
  }
  func.func @transform_9(%arg0: i32) -> (i32, i32) {
    %c0_i32 = arith.constant 0 : i32
    %c0_i32_0 = arith.constant 0 : i32
    %c0_i32_1 = arith.constant 0 : i32
    return %c0_i32, %c0_i32_0 : i32, i32
  }
  func.func @transform_10(%arg0: i32) -> (i32, i32) {
    %c0_i32 = arith.constant 0 : i32
    %c0_i32_0 = arith.constant 0 : i32
    %c0_i32_1 = arith.constant 0 : i32
    return %c0_i32, %c0_i32_0 : i32, i32
  }
  func.func @transform_11(%arg0: i32) -> (i32, i32) {
    %c0_i32 = arith.constant 0 : i32
    %c0_i32_0 = arith.constant 0 : i32
    %c0_i32_1 = arith.constant 0 : i32
    return %c0_i32, %c0_i32_0 : i32, i32
  }
  func.func @transform_12(%arg0: i32) -> (i32, i32, i32) {
    %c0_i32 = arith.constant 0 : i32
    %c0_i32_0 = arith.constant 0 : i32
    %c0_i32_1 = arith.constant 0 : i32
    return %arg0, %c0_i32, %c0_i32_0 : i32, i32, i32
  }
}

</mosaic_0001>

<bundles_post_ra>
// kernel: tpu_custom_call.1
= control target key start
LH: loop header
LB: loop body
LE: loop exit
PB: predicated region body
PF: predicated region fallthrough
CT: control target
= control target key end

     0   :  { %s4735_s21 = smov 0   ;;  %s8090_s0 = inlined_call_operand.vmem [shape: f32[16,4,128], index: 0, kind: input, shape index: {}]   ;;  %s8091_s1 = inlined_call_operand.vmem [shape: f32[124,62], index: 1, kind: input, shape index: {}]   ;;  %s8092_s2 = inlined_call_operand.vmem [shape: f32[58,29], index: 2, kind: input, shape index: {}]   ;;  %s8093_s3 = inlined_call_operand.vmem [shape: f32[25,13], index: 3, kind: input, shape index: {}]   ;;  %s8094_s4 = inlined_call_operand.vmem [shape: f32[9,5], index: 4, kind: input, shape index: {}]   ;;  %s8095_s5 = inlined_call_operand.vmem [shape: f32[3,32,4], index: 5, kind: input, shape index: {}]   ;;  %s8096_s6 = inlined_call_operand.vmem [shape: f32[5,3,32,32], index: 6, kind: input, shape index: {}]   ;;  %s8097_s7 = inlined_call_operand.vmem [shape: f32[6,32,1], index: 7, kind: input, shape index: {}]   ;;  %s8098_s8 = inlined_call_operand.vmem [shape: f32[1024,32], index: 8, kind: input, shape index: {}]   ;;  %s8099_s9 = inlined_call_operand.vmem [shape: f32[1024,1], index: 9, kind: input, shape index: {}]   ;;  %s8100_s10 = inlined_call_operand.vmem [shape: f32[4,1024], index: 10, kind: input, shape index: {}]   ;;  %s8101_s11 = inlined_call_operand.vmem [shape: f32[4,1], index: 11, kind: input, shape index: {}]   ;;  %s8102_s12 = inlined_call_operand.vmem [shape: f32[2,3,8], index: 12, kind: output, shape index: {}]  }
   0x1 LB: > { %s4279_s22 = sadd.s32 4294967295, %s4659_s21   ;;  %p4283_p0 = scmp.ge.s32.totalorder %s4659_s21, 1  ;;  %s4659_s21 = sphi %s4735_s21, %s22_s21  }
   0x2   : > { %p363_p1 = scmp.lt.s32.totalorder %s4659_s21, 3 }
   0x4   : > { %p364_p2 = pnand %p4283_p0, %p363_p1 }
   0x6   : > { %367 = sbr.rel (%p364_p2) target bundleno = 4051 (0xfd3), region = 68 }
   0xb   : > { %s4284_s23 = sshll.u32 %s4279_s22, 3  ;;  %p410_p3 = scmp.lt.s32.totalorder %s4279_s22, 1  ;;  %v4746_v0 = vld [vmem:[%s8091_s1] sm:$0xff]  ;;  %v4751_v1 = vld [vmem:[%s8091_s1 + $0x8] sm:$0xff]  ;;  %v4756_v2 = vld [vmem:[%s8091_s1 + $0x10] sm:$0xff] }
   0xc   : > { %8103 = vst [vmem:[#allocation3_spill] sm:$0xff] %v4746_v0  ;;  %p405_p4 = scmp.lt.s32.totalorder %s4284_s23, 15  ;;  %v4761_v3 = vld [vmem:[%s8091_s1 + $0x18] sm:$0xff]  ;;  %v4766_v4 = vld [vmem:[%s8091_s1 + $0x20] sm:$0xff]  ;;  %v4771_v5 = vld [vmem:[%s8091_s1 + $0x28] sm:$0xff]  ;;  %s6688_s24 = smov 0  }
   0xd   : > { %8104 = vst [vmem:[#allocation4_spill] sm:$0xff] %v4751_v1  ;;  %s8968_s22 = smov (!%p410_p3, %s4279_s22), 1  ;;  %v4776_v6 = vld [vmem:[%s8091_s1 + $0x30] sm:$0xff]  ;;  %v4781_v7 = vld [vmem:[%s8091_s1 + $0x38] sm:$0xff]  ;;  %v4786_v8 = vld [vmem:[%s8091_s1 + $0x40] sm:$0xff] }
   0xe   : > { %8105 = vst [vmem:[#allocation5_spill] sm:$0xff] %v4756_v2  ;;  %s8970_s23 = smov (!%p405_p4, %s4284_s23), 15  ;;  %v4791_v9 = vld [vmem:[%s8091_s1 + $0x48] sm:$0xff]  ;;  %v4796_v10 = vld [vmem:[%s8091_s1 + $0x50] sm:$0xff]  ;;  %v4801_v11 = vld [vmem:[%s8091_s1 + $0x58] sm:$0xff]  ;;  %s4286_s15 = sshll.u32 %s8968_s22, 2 }
   0xf   : > { %8106 = vst [vmem:[#allocation6_spill] sm:$0xff] %v4761_v3  ;;  %v4806_v12 = vld [vmem:[%s8091_s1 + $0x60] sm:$0xff]  ;;  %v4811_v13 = vld [vmem:[%s8091_s1 + $0x68] sm:$0xff]  ;;  %v4816_v14 = vld [vmem:[%s8091_s1 + $0x70] sm:$0xff]  ;;  %s4285_s25 = sshll.u32 %s8970_s23, 2  ;;  %s4821_s22 = scalar_lea.vmem %s8102_s12, %s4286_s15 }
  0x10   : > { %8107 = vst [vmem:[#allocation7_spill] sm:$0xff] %v4766_v4  ;;  %v4826_v15 = vld [vmem:[%s8091_s1 + $0x78] sm:$0xf]  ;;  %v4831_v16 = vld [vmem:[%s8092_s2] sm:$0xff]  ;;  %v4836_v17 = vld [vmem:[%s8092_s2 + $0x8] sm:$0xff]  ;;  %s4841_s15 = scalar_lea.vmem %s8090_s0, %s4285_s25 }
  0x11   : > { %8108 = vst [vmem:[#allocation8_spill] sm:$0xff] %v4771_v5  ;;  %v4846_v18 = vld [vmem:[%s8092_s2 + $0x10] sm:$0xff]  ;;  %v4851_v19 = vld [vmem:[%s8092_s2 + $0x18] sm:$0xff]  ;;  %v4856_v20 = vld [vmem:[%s8092_s2 + $0x20] sm:$0xff] }
  0x12   : > { %8109 = vst [vmem:[#allocation9_spill] sm:$0xff] %v4776_v6  ;;  %v4861_v21 = vld [vmem:[%s8092_s2 + $0x28] sm:$0xff]  ;;  %v4866_v22 = vld [vmem:[%s8092_s2 + $0x30] sm:$0xff]  ;;  %v4871_v23 = vld [vmem:[%s8092_s2 + $0x38] sm:$0x3] }
  0x13   : > { %8110 = vst [vmem:[#allocation10_spill] sm:$0xff] %v4781_v7  ;;  %v4876_v24 = vld [vmem:[%s8093_s3] sm:$0xff]  ;;  %v4881_v25 = vld [vmem:[%s8093_s3 + $0x8] sm:$0xff]  ;;  %v4886_v26 = vld [vmem:[%s8093_s3 + $0x10] sm:$0xff] }
  0x14   : > { %8111 = vst [vmem:[#allocation11_spill] sm:$0xff] %v4786_v8  ;;  %v4891_v27 = vld [vmem:[%s8093_s3 + $0x18] sm:$0x1]  ;;  %v4896_v28 = vld [vmem:[%s8094_s4] sm:$0xff]  ;;  %v4901_v29 = vld [vmem:[%s8094_s4 + $0x8] sm:$0x1] }
  0x15   : > { %8112 = vst [vmem:[#allocation12_spill] sm:$0xff] %v4791_v9  ;;  %v4906_v30 = vld [vmem:[%s8096_s6] sm:$0xff]  ;;  %v4911_v31 = vld [vmem:[%s8096_s6 + $0x8] sm:$0xff]  ;;  %v4916_v32 = vld [vmem:[%s8096_s6 + $0x10] sm:$0xff] }
  0x16   : > { %8113 = vst [vmem:[#allocation13_spill] sm:$0xff] %v4796_v10  ;;  %v4921_v33 = vld [vmem:[%s8096_s6 + $0x18] sm:$0xff]  ;;  %v4926_v34 = vld [vmem:[%s8096_s6 + $0x20] sm:$0xff]  ;;  %v4931_v35 = vld [vmem:[%s8096_s6 + $0x28] sm:$0xff] }
  0x17   : > { %8114 = vst [vmem:[#allocation14_spill] sm:$0xff] %v4801_v11  ;;  %v4936_v36 = vld [vmem:[%s8096_s6 + $0x30] sm:$0xff]  ;;  %v4941_v37 = vld [vmem:[%s8096_s6 + $0x38] sm:$0xff]  ;;  %v4946_v38 = vld [vmem:[%s8096_s6 + $0x40] sm:$0xff] }
  0x18   : > { %8115 = vst [vmem:[#allocation15_spill] sm:$0xff] %v4806_v12  ;;  %v4951_v39 = vld [vmem:[%s8096_s6 + $0x48] sm:$0xff]  ;;  %v4956_v40 = vld [vmem:[%s8096_s6 + $0x50] sm:$0xff]  ;;  %v4961_v41 = vld [vmem:[%s8096_s6 + $0x58] sm:$0xff] }
  0x19   : > { %8116 = vst [vmem:[#allocation16_spill] sm:$0xff] %v4811_v13  ;;  %v4966_v42 = vld [vmem:[%s8096_s6 + $0x60] sm:$0xff]  ;;  %v4971_v43 = vld [vmem:[%s8096_s6 + $0x68] sm:$0xff]  ;;  %v4976_v44 = vld [vmem:[%s8096_s6 + $0x70] sm:$0xff] }
  0x1a   : > { %8117 = vst [vmem:[#allocation17_spill] sm:$0xff] %v4816_v14  ;;  %v4981_v45 = vld [vmem:[%s8096_s6 + $0x78] sm:$0xff]  ;;  %v4986_v46 = vld [vmem:[%s8096_s6 + $0x80] sm:$0xff]  ;;  %v4991_v47 = vld [vmem:[%s8096_s6 + $0x88] sm:$0xff] }
  0x1b   : > { %8118 = vst [vmem:[#allocation18_spill] sm:$0xff] %v4826_v15  ;;  %v4996_v48 = vld [vmem:[%s8096_s6 + $0x90] sm:$0xff]  ;;  %v5001_v49 = vld [vmem:[%s8096_s6 + $0x98] sm:$0xff]  ;;  %v5006_v50 = vld [vmem:[%s8096_s6 + $0xa0] sm:$0xff] }
  0x1c   : > { %8119 = vst [vmem:[#allocation19_spill] sm:$0xff] %v4831_v16  ;;  %v5011_v51 = vld [vmem:[%s8096_s6 + $0xa8] sm:$0xff]  ;;  %v5016_v52 = vld [vmem:[%s8096_s6 + $0xb0] sm:$0xff]  ;;  %v5021_v53 = vld [vmem:[%s8096_s6 + $0xb8] sm:$0xff] }
  0x1d   : > { %8120 = vst [vmem:[#allocation20_spill] sm:$0xff] %v4836_v17  ;;  %v5026_v54 = vld [vmem:[%s8096_s6 + $0xc0] sm:$0xff]  ;;  %v5031_v55 = vld [vmem:[%s8096_s6 + $0xc8] sm:$0xff]  ;;  %v5036_v56 = vld [vmem:[%s8096_s6 + $0xd0] sm:$0xff] }
  0x1e   : > { %8121 = vst [vmem:[#allocation21_spill] sm:$0xff] %v4846_v18  ;;  %v5041_v57 = vld [vmem:[%s8096_s6 + $0xd8] sm:$0xff]  ;;  %v5046_v58 = vld [vmem:[%s8096_s6 + $0xe0] sm:$0xff]  ;;  %v5051_v59 = vld [vmem:[%s8096_s6 + $0xe8] sm:$0xff] }
  0x1f   : > { %8122 = vst [vmem:[#allocation22_spill] sm:$0xff] %v4851_v19  ;;  %v5056_v60 = vld [vmem:[%s8096_s6 + $0xf0] sm:$0xff]  ;;  %v5061_v61 = vld [vmem:[%s8096_s6 + $0xf8] sm:$0xff]  ;;  %v5066_v62 = vld [vmem:[%s8096_s6 + $0x100] sm:$0xff] }
  0x20   : > { %8123 = vst [vmem:[#allocation23_spill] sm:$0xff] %v4876_v24  ;;  %v5071_v63 = vld [vmem:[%s8096_s6 + $0x108] sm:$0xff]  ;;  %v5266_v24 = vld [vmem:[%s8097_s7 + $0x60] sm:$0xff] }
  0x21   : > { %8124 = vst [vmem:[#allocation24_spill] sm:$0xff] %v4881_v25  ;;  %v5271_v25 = vld [vmem:[%s8097_s7 + $0x68] sm:$0xff] }
  0x22   : > { %8125 = vst [vmem:[#allocation25_spill] sm:$0xff] %v4886_v26  ;;  %v5276_v26 = vld [vmem:[%s8097_s7 + $0x70] sm:$0xff] }
  0x23   : > { %8126 = vst [vmem:[#allocation26_spill] sm:$0xff] %v4891_v27  ;;  %v5281_v27 = vld [vmem:[%s8097_s7 + $0x78] sm:$0xff] }
  0x24   : > { %8127 = vst [vmem:[#allocation27_spill] sm:$0xff] %v4896_v28  ;;  %v5256_v28 = vld [vmem:[%s8097_s7 + $0x50] sm:$0xff] }
  0x25   : > { %8128 = vst [vmem:[#allocation28_spill] sm:$0xff] %v4901_v29  ;;  %v5261_v29 = vld [vmem:[%s8097_s7 + $0x58] sm:$0xff] }
  0x26   : > { %8129 = vst [vmem:[#allocation29_spill] sm:$0xff] %v4971_v43  ;;  %v5406_v43 = vld [vmem:[%s8098_s8 + $0x20] sm:$0xff] }
  0x27   : > { %8130 = vst [vmem:[#allocation30_spill] sm:$0xff] %v4976_v44  ;;  %v5391_v44 = vld [vmem:[%s8098_s8 + $0x8] sm:$0xff] }
  0x28   : > { %8131 = vst [vmem:[#allocation31_spill] sm:$0xff] %v4981_v45  ;;  %v5386_v45 = vld [vmem:[%s8098_s8] sm:$0xff] }
  0x29   : > { %8132 = vst [vmem:[#allocation32_spill] sm:$0xff] %v4986_v46  ;;  %v5376_v46 = vld [vmem:[%s8095_s5 + $0x50] sm:$0xff] }
  0x2a   : > { %8133 = vst [vmem:[#allocation33_spill] sm:$0xff] %v4991_v47  ;;  %v5366_v47 = vld [vmem:[%s8095_s5 + $0x40] sm:$0xff] }
  0x2b   : > { %8134 = vst [vmem:[#allocation34_spill] sm:$0xff] %v4996_v48  ;;  %v5356_v48 = vld [vmem:[%s8095_s5 + $0x30] sm:$0xff] }
  0x2c   : > { %8135 = vst [vmem:[#allocation35_spill] sm:$0xff] %v5001_v49  ;;  %v5286_v49 = vld [vmem:[%s8097_s7 + $0x80] sm:$0xff] }
  0x2d   : > { %8136 = vst [vmem:[#allocation36_spill] sm:$0xff] %v5006_v50  ;;  %v5381_v50 = vld [vmem:[%s8095_s5 + $0x58] sm:$0xff] }
  0x2e   : > { %8137 = vst [vmem:[#allocation37_spill] sm:$0xff] %v5011_v51  ;;  %v5371_v51 = vld [vmem:[%s8095_s5 + $0x48] sm:$0xff] }
  0x2f   : > { %8138 = vst [vmem:[#allocation38_spill] sm:$0xff] %v5016_v52  ;;  %v5361_v52 = vld [vmem:[%s8095_s5 + $0x38] sm:$0xff] }
  0x30   : > { %8139 = vst [vmem:[#allocation39_spill] sm:$0xff] %v5021_v53  ;;  %v5351_v53 = vld [vmem:[%s8095_s5 + $0x28] sm:$0xff] }
  0x31   : > { %8140 = vst [vmem:[#allocation40_spill] sm:$0xff] %v5026_v54  ;;  %v5251_v54 = vld [vmem:[%s8097_s7 + $0x48] sm:$0xff] }
  0x32   : > { %8141 = vst [vmem:[#allocation41_spill] sm:$0xff] %v5031_v55  ;;  %v5246_v55 = vld [vmem:[%s8097_s7 + $0x40] sm:$0xff] }
  0x33   : > { %8142 = vst [vmem:[#allocation42_spill] sm:$0xff] %v5036_v56  ;;  %v5241_v56 = vld [vmem:[%s8097_s7 + $0x38] sm:$0xff] }
  0x34   : > { %8143 = vst [vmem:[#allocation43_spill] sm:$0xff] %v5041_v57  ;;  %v5236_v57 = vld [vmem:[%s8097_s7 + $0x30] sm:$0xff] }
  0x35   : > { %8144 = vst [vmem:[#allocation44_spill] sm:$0xff] %v5046_v58  ;;  %v5091_v58 = vld [vmem:[%s8096_s6 + $0x128] sm:$0xff] }
  0x36   : > { %8145 = vst [vmem:[#allocation45_spill] sm:$0xff] %v5051_v59  ;;  %v5076_v59 = vld [vmem:[%s8096_s6 + $0x110] sm:$0xff] }
  0x37   : > { %8146 = vst [vmem:[#allocation46_spill] sm:$0xff] %v5056_v60  ;;  %v5081_v60 = vld [vmem:[%s8096_s6 + $0x118] sm:$0xff] }
  0x38   : > { %8147 = vst [vmem:[#allocation47_spill] sm:$0xff] %v5061_v61  ;;  %v5086_v61 = vld [vmem:[%s8096_s6 + $0x120] sm:$0xff] }
  0x39   : > { %8148 = vst [vmem:[#allocation48_spill] sm:$0xff] %v5066_v62  ;;  %v5231_v62 = vld [vmem:[%s8097_s7 + $0x28] sm:$0xff] }
  0x3a   : > { %8149 = vst [vmem:[#allocation49_spill] sm:$0xff] %v5071_v63  ;;  %v5096_v63 = vld [vmem:[%s8096_s6 + $0x130] sm:$0xff] }
  0x3b   : > { %8150 = vst [vmem:[#allocation50_spill] sm:$0xff] %v5076_v59  ;;  %v5101_v59 = vld [vmem:[%s8096_s6 + $0x138] sm:$0xff] }
  0x3c   : > { %8151 = vst [vmem:[#allocation51_spill] sm:$0xff] %v5081_v60  ;;  %v5106_v60 = vld [vmem:[%s8096_s6 + $0x140] sm:$0xff] }
  0x3d   : > { %8152 = vst [vmem:[#allocation52_spill] sm:$0xff] %v5086_v61  ;;  %v5111_v61 = vld [vmem:[%s8096_s6 + $0x148] sm:$0xff] }
  0x3e   : > { %8153 = vst [vmem:[#allocation53_spill] sm:$0xff] %v5091_v58  ;;  %v5116_v58 = vld [vmem:[%s8096_s6 + $0x150] sm:$0xff] }
  0x3f   : > { %8154 = vst [vmem:[#allocation54_spill] sm:$0xff] %v5096_v63  ;;  %v5121_v63 = vld [vmem:[%s8096_s6 + $0x158] sm:$0xff] }
  0x40   : > { %8155 = vst [vmem:[#allocation55_spill] sm:$0xff] %v5101_v59  ;;  %v5126_v59 = vld [vmem:[%s8096_s6 + $0x160] sm:$0xff] }
  0x41   : > { %8156 = vst [vmem:[#allocation56_spill] sm:$0xff] %v5106_v60  ;;  %v5131_v60 = vld [vmem:[%s8096_s6 + $0x168] sm:$0xff] }
  0x42   : > { %8157 = vst [vmem:[#allocation57_spill] sm:$0xff] %v5111_v61  ;;  %v5136_v61 = vld [vmem:[%s8096_s6 + $0x170] sm:$0xff] }
  0x43   : > { %8158 = vst [vmem:[#allocation58_spill] sm:$0xff] %v5116_v58  ;;  %v5141_v58 = vld [vmem:[%s8096_s6 + $0x178] sm:$0xff] }
  0x44   : > { %8159 = vst [vmem:[#allocation59_spill] sm:$0xff] %v5121_v63  ;;  %v5146_v63 = vld [vmem:[%s8096_s6 + $0x180] sm:$0xff] }
  0x45   : > { %8160 = vst [vmem:[#allocation60_spill] sm:$0xff] %v5126_v59  ;;  %v5151_v59 = vld [vmem:[%s8096_s6 + $0x188] sm:$0xff] }
  0x46   : > { %8161 = vst [vmem:[#allocation61_spill] sm:$0xff] %v5131_v60  ;;  %v5156_v60 = vld [vmem:[%s8096_s6 + $0x190] sm:$0xff] }
  0x47   : > { %8162 = vst [vmem:[#allocation62_spill] sm:$0xff] %v5136_v61  ;;  %v5161_v61 = vld [vmem:[%s8096_s6 + $0x198] sm:$0xff] }
  0x48   : > { %8163 = vst [vmem:[#allocation63_spill] sm:$0xff] %v5141_v58  ;;  %v5166_v58 = vld [vmem:[%s8096_s6 + $0x1a0] sm:$0xff] }
  0x49   : > { %8164 = vst [vmem:[#allocation64_spill] sm:$0xff] %v5146_v63  ;;  %v5171_v63 = vld [vmem:[%s8096_s6 + $0x1a8] sm:$0xff] }
  0x4a   : > { %8165 = vst [vmem:[#allocation65_spill] sm:$0xff] %v5151_v59  ;;  %v5176_v59 = vld [vmem:[%s8096_s6 + $0x1b0] sm:$0xff] }
  0x4b   : > { %8166 = vst [vmem:[#allocation66_spill] sm:$0xff] %v5156_v60  ;;  %v5181_v60 = vld [vmem:[%s8096_s6 + $0x1b8] sm:$0xff] }
  0x4c   : > { %8167 = vst [vmem:[#allocation67_spill] sm:$0xff] %v5161_v61  ;;  %v5186_v61 = vld [vmem:[%s8096_s6 + $0x1c0] sm:$0xff] }
  0x4d   : > { %8168 = vst [vmem:[#allocation68_spill] sm:$0xff] %v5166_v58  ;;  %v5191_v58 = vld [vmem:[%s8096_s6 + $0x1c8] sm:$0xff] }
  0x4e   : > { %8169 = vst [vmem:[#allocation69_spill] sm:$0xff] %v5171_v63  ;;  %v5196_v63 = vld [vmem:[%s8096_s6 + $0x1d0] sm:$0xff] }
  0x4f   : > { %8170 = vst [vmem:[#allocation70_spill] sm:$0xff] %v5176_v59  ;;  %v5201_v59 = vld [vmem:[%s8096_s6 + $0x1d8] sm:$0xff] }
  0x50   : > { %8171 = vst [vmem:[#allocation71_spill] sm:$0xff] %v5181_v60  ;;  %v5206_v60 = vld [vmem:[%s8097_s7] sm:$0xff] }
  0x51   : > { %8172 = vst [vmem:[#allocation72_spill] sm:$0xff] %v5186_v61  ;;  %v5211_v61 = vld [vmem:[%s8097_s7 + $0x8] sm:$0xff] }
  0x52   : > { %8173 = vst [vmem:[#allocation73_spill] sm:$0xff] %v5191_v58  ;;  %v5216_v58 = vld [vmem:[%s8097_s7 + $0x10] sm:$0xff] }
  0x53   : > { %8174 = vst [vmem:[#allocation74_spill] sm:$0xff] %v5196_v63  ;;  %v5221_v63 = vld [vmem:[%s8097_s7 + $0x18] sm:$0xff] }
  0x54   : > { %8175 = vst [vmem:[#allocation75_spill] sm:$0xff] %v5201_v59  ;;  %v5226_v59 = vld [vmem:[%s8097_s7 + $0x20] sm:$0xff] }
  0x55   : > { %8176 = vst [vmem:[#allocation76_spill] sm:$0xff] %v5256_v28  ;;  %v5396_v28 = vld [vmem:[%s8098_s8 + $0x10] sm:$0xff] }
  0x56   : > { %8177 = vst [vmem:[#allocation77_spill] sm:$0xff] %v5261_v29  ;;  %v5401_v29 = vld [vmem:[%s8098_s8 + $0x18] sm:$0xff] }
  0x57   : > { %8178 = vst [vmem:[#allocation78_spill] sm:$0xff] %v5266_v24  ;;  %v5291_v24 = vld [vmem:[%s8097_s7 + $0x88] sm:$0xff] }
  0x58   : > { %8179 = vst [vmem:[#allocation79_spill] sm:$0xff] %v5271_v25  ;;  %v5296_v25 = vld [vmem:[%s8097_s7 + $0x90] sm:$0xff] }
  0x59   : > { %8180 = vst [vmem:[#allocation80_spill] sm:$0xff] %v5276_v26  ;;  %v5301_v26 = vld [vmem:[%s8097_s7 + $0x98] sm:$0xff] }
  0x5a   : > { %8181 = vst [vmem:[#allocation81_spill] sm:$0xff] %v5281_v27  ;;  %v5306_v27 = vld [vmem:[%s8097_s7 + $0xa0] sm:$0xff] }
  0x5b   : > { %8182 = vst [vmem:[#allocation82_spill] sm:$0xff] %v5286_v49  ;;  %v5311_v49 = vld [vmem:[%s8097_s7 + $0xa8] sm:$0xff] }
  0x5c   : > { %8183 = vst [vmem:[#allocation83_spill] sm:$0xff] %v5291_v24  ;;  %v5316_v24 = vld [vmem:[%s8097_s7 + $0xb0] sm:$0xff] }
  0x5d   : > { %8184 = vst [vmem:[#allocation84_spill] sm:$0xff] %v5296_v25  ;;  %v5321_v25 = vld [vmem:[%s8097_s7 + $0xb8] sm:$0xff] }
  0x5e   : > { %8185 = vst [vmem:[#allocation85_spill] sm:$0xff] %v5301_v26  ;;  %v5326_v26 = vld [vmem:[%s8095_s5] sm:$0xff] }
  0x5f   : > { %8186 = vst [vmem:[#allocation86_spill] sm:$0xff] %v5306_v27  ;;  %v5331_v27 = vld [vmem:[%s8095_s5 + $0x8] sm:$0xff] }
  0x60   : > { %8187 = vst [vmem:[#allocation87_spill] sm:$0xff] %v5311_v49  ;;  %v5336_v49 = vld [vmem:[%s8095_s5 + $0x10] sm:$0xff] }
  0x61   : > { %8188 = vst [vmem:[#allocation88_spill] sm:$0xff] %v5316_v24  ;;  %v5341_v24 = vld [vmem:[%s8095_s5 + $0x18] sm:$0xff] }
  0x62   : > { %8189 = vst [vmem:[#allocation89_spill] sm:$0xff] %v5321_v25  ;;  %v5346_v25 = vld [vmem:[%s8095_s5 + $0x20] sm:$0xff] }
  0x63   : > { %8190 = vst [vmem:[#allocation90_spill] sm:$0xff] %v5341_v24 }
  0x64   : > { %8191 = vst [vmem:[#allocation91_spill] sm:$0xff] %v5346_v25 }
  0x65   : > { %8192 = vst [vmem:[#allocation92_spill] sm:$0xff] %v5386_v45  ;;  %v5411_v45 = vld [vmem:[%s8098_s8 + $0x28] sm:$0xff] }
  0x66   : > { %8193 = vst [vmem:[#allocation93_spill] sm:$0xff] %v5391_v44  ;;  %v5416_v44 = vld [vmem:[%s8098_s8 + $0x30] sm:$0xff] }
  0x67   : > { %8194 = vst [vmem:[#allocation94_spill] sm:$0xff] %v5396_v28  ;;  %v5421_v28 = vld [vmem:[%s8098_s8 + $0x38] sm:$0xff] }
  0x68   : > { %8195 = vst [vmem:[#allocation95_spill] sm:$0xff] %v5401_v29  ;;  %v5426_v29 = vld [vmem:[%s8098_s8 + $0x40] sm:$0xff] }
  0x69   : > { %8196 = vst [vmem:[#allocation96_spill] sm:$0xff] %v5406_v43  ;;  %v5431_v43 = vld [vmem:[%s8098_s8 + $0x48] sm:$0xff] }
  0x6a   : > { %8197 = vst [vmem:[#allocation97_spill] sm:$0xff] %v5411_v45  ;;  %v5436_v45 = vld [vmem:[%s8098_s8 + $0x50] sm:$0xff] }
  0x6b   : > { %8198 = vst [vmem:[#allocation98_spill] sm:$0xff] %v5416_v44  ;;  %v5441_v44 = vld [vmem:[%s8098_s8 + $0x58] sm:$0xff] }
  0x6c   : > { %8199 = vst [vmem:[#allocation99_spill] sm:$0xff] %v5421_v28  ;;  %v5446_v28 = vld [vmem:[%s8098_s8 + $0x60] sm:$0xff] }
  0x6d   : > { %8200 = vst [vmem:[#allocation100_spill] sm:$0xff] %v5426_v29  ;;  %v5451_v29 = vld [vmem:[%s8098_s8 + $0x68] sm:$0xff] }
  0x6e   : > { %8201 = vst [vmem:[#allocation101_spill] sm:$0xff] %v5431_v43  ;;  %v5456_v43 = vld [vmem:[%s8098_s8 + $0x70] sm:$0xff] }
  0x6f   : > { %8202 = vst [vmem:[#allocation102_spill] sm:$0xff] %v5436_v45  ;;  %v5461_v45 = vld [vmem:[%s8098_s8 + $0x78] sm:$0xff] }
  0x70   : > { %8203 = vst [vmem:[#allocation103_spill] sm:$0xff] %v5441_v44  ;;  %v5466_v44 = vld [vmem:[%s8098_s8 + $0x80] sm:$0xff] }
  0x71   : > { %8204 = vst [vmem:[#allocation104_spill] sm:$0xff] %v5446_v28  ;;  %v5471_v28 = vld [vmem:[%s8098_s8 + $0x88] sm:$0xff] }
  0x72   : > { %8205 = vst [vmem:[#allocation105_spill] sm:$0xff] %v5451_v29  ;;  %v5476_v29 = vld [vmem:[%s8098_s8 + $0x90] sm:$0xff] }
  0x73   : > { %8206 = vst [vmem:[#allocation106_spill] sm:$0xff] %v5456_v43  ;;  %v5481_v43 = vld [vmem:[%s8098_s8 + $0x98] sm:$0xff] }
  0x74   : > { %8207 = vst [vmem:[#allocation107_spill] sm:$0xff] %v5461_v45  ;;  %v5486_v45 = vld [vmem:[%s8098_s8 + $0xa0] sm:$0xff] }
  0x75   : > { %8208 = vst [vmem:[#allocation108_spill] sm:$0xff] %v5466_v44  ;;  %v5491_v44 = vld [vmem:[%s8098_s8 + $0xa8] sm:$0xff] }
  0x76   : > { %8209 = vst [vmem:[#allocation109_spill] sm:$0xff] %v5471_v28  ;;  %v5496_v28 = vld [vmem:[%s8098_s8 + $0xb0] sm:$0xff] }
  0x77   : > { %8210 = vst [vmem:[#allocation110_spill] sm:$0xff] %v5476_v29  ;;  %v5501_v29 = vld [vmem:[%s8098_s8 + $0xb8] sm:$0xff] }
  0x78   : > { %8211 = vst [vmem:[#allocation111_spill] sm:$0xff] %v5481_v43  ;;  %v5506_v43 = vld [vmem:[%s8098_s8 + $0xc0] sm:$0xff] }
  0x79   : > { %8212 = vst [vmem:[#allocation112_spill] sm:$0xff] %v5486_v45  ;;  %v5511_v45 = vld [vmem:[%s8098_s8 + $0xc8] sm:$0xff] }
  0x7a   : > { %8213 = vst [vmem:[#allocation113_spill] sm:$0xff] %v5491_v44  ;;  %v5516_v44 = vld [vmem:[%s8098_s8 + $0xd0] sm:$0xff] }
  0x7b   : > { %8214 = vst [vmem:[#allocation114_spill] sm:$0xff] %v5496_v28  ;;  %v5521_v28 = vld [vmem:[%s8098_s8 + $0xd8] sm:$0xff] }
  0x7c   : > { %8215 = vst [vmem:[#allocation115_spill] sm:$0xff] %v5501_v29  ;;  %v5526_v29 = vld [vmem:[%s8098_s8 + $0xe0] sm:$0xff] }
  0x7d   : > { %8216 = vst [vmem:[#allocation116_spill] sm:$0xff] %v5506_v43  ;;  %v5531_v43 = vld [vmem:[%s8098_s8 + $0xe8] sm:$0xff] }
  0x7e   : > { %8217 = vst [vmem:[#allocation117_spill] sm:$0xff] %v5511_v45  ;;  %v5536_v45 = vld [vmem:[%s8098_s8 + $0xf0] sm:$0xff] }
  0x7f   : > { %8218 = vst [vmem:[#allocation118_spill] sm:$0xff] %v5516_v44  ;;  %v5541_v44 = vld [vmem:[%s8098_s8 + $0xf8] sm:$0xff] }
  0x80   : > { %8219 = vst [vmem:[#allocation119_spill] sm:$0xff] %v5521_v28  ;;  %v5546_v28 = vld [vmem:[%s8098_s8 + $0x100] sm:$0xff] }
  0x81   : > { %8220 = vst [vmem:[#allocation120_spill] sm:$0xff] %v5526_v29  ;;  %v5551_v29 = vld [vmem:[%s8098_s8 + $0x108] sm:$0xff] }
  0x82   : > { %8221 = vst [vmem:[#allocation121_spill] sm:$0xff] %v5531_v43  ;;  %v5556_v43 = vld [vmem:[%s8098_s8 + $0x110] sm:$0xff] }
  0x83   : > { %8222 = vst [vmem:[#allocation122_spill] sm:$0xff] %v5536_v45  ;;  %v5561_v45 = vld [vmem:[%s8098_s8 + $0x118] sm:$0xff] }
  0x84   : > { %8223 = vst [vmem:[#allocation123_spill] sm:$0xff] %v5541_v44  ;;  %v5566_v44 = vld [vmem:[%s8098_s8 + $0x120] sm:$0xff] }
  0x85   : > { %8224 = vst [vmem:[#allocation124_spill] sm:$0xff] %v5546_v28  ;;  %v5571_v28 = vld [vmem:[%s8098_s8 + $0x128] sm:$0xff] }
  0x86   : > { %8225 = vst [vmem:[#allocation125_spill] sm:$0xff] %v5551_v29  ;;  %v5576_v29 = vld [vmem:[%s8098_s8 + $0x130] sm:$0xff] }
  0x87   : > { %8226 = vst [vmem:[#allocation126_spill] sm:$0xff] %v5556_v43  ;;  %v5581_v43 = vld [vmem:[%s8098_s8 + $0x138] sm:$0xff] }
  0x88   : > { %8227 = vst [vmem:[#allocation127_spill] sm:$0xff] %v5561_v45  ;;  %v5586_v45 = vld [vmem:[%s8098_s8 + $0x140] sm:$0xff] }
  0x89   : > { %8228 = vst [vmem:[#allocation128_spill] sm:$0xff] %v5566_v44  ;;  %v5591_v44 = vld [vmem:[%s8098_s8 + $0x148] sm:$0xff] }
  0x8a   : > { %8229 = vst [vmem:[#allocation129_spill] sm:$0xff] %v5571_v28  ;;  %v5596_v28 = vld [vmem:[%s8098_s8 + $0x150] sm:$0xff] }
  0x8b   : > { %8230 = vst [vmem:[#allocation130_spill] sm:$0xff] %v5576_v29  ;;  %v5601_v29 = vld [vmem:[%s8098_s8 + $0x158] sm:$0xff] }
  0x8c   : > { %8231 = vst [vmem:[#allocation131_spill] sm:$0xff] %v5581_v43  ;;  %v5606_v43 = vld [vmem:[%s8098_s8 + $0x160] sm:$0xff] }
  0x8d   : > { %8232 = vst [vmem:[#allocation132_spill] sm:$0xff] %v5586_v45  ;;  %v5611_v45 = vld [vmem:[%s8098_s8 + $0x168] sm:$0xff] }
  0x8e   : > { %8233 = vst [vmem:[#allocation133_spill] sm:$0xff] %v5591_v44  ;;  %v5616_v44 = vld [vmem:[%s8098_s8 + $0x170] sm:$0xff] }
  0x8f   : > { %8234 = vst [vmem:[#allocation134_spill] sm:$0xff] %v5596_v28  ;;  %v5621_v28 = vld [vmem:[%s8098_s8 + $0x178] sm:$0xff] }
  0x90   : > { %8235 = vst [vmem:[#allocation135_spill] sm:$0xff] %v5601_v29  ;;  %v5626_v29 = vld [vmem:[%s8098_s8 + $0x180] sm:$0xff] }
  0x91   : > { %8236 = vst [vmem:[#allocation136_spill] sm:$0xff] %v5606_v43  ;;  %v5631_v43 = vld [vmem:[%s8098_s8 + $0x188] sm:$0xff] }
  0x92   : > { %8237 = vst [vmem:[#allocation137_spill] sm:$0xff] %v5611_v45  ;;  %v5636_v45 = vld [vmem:[%s8098_s8 + $0x190] sm:$0xff] }
  0x93   : > { %8238 = vst [vmem:[#allocation138_spill] sm:$0xff] %v5616_v44  ;;  %v5641_v44 = vld [vmem:[%s8098_s8 + $0x198] sm:$0xff] }
  0x94   : > { %8239 = vst [vmem:[#allocation139_spill] sm:$0xff] %v5621_v28  ;;  %v5646_v28 = vld [vmem:[%s8098_s8 + $0x1a0] sm:$0xff] }
  0x95   : > { %8240 = vst [vmem:[#allocation140_spill] sm:$0xff] %v5626_v29  ;;  %v5651_v29 = vld [vmem:[%s8098_s8 + $0x1a8] sm:$0xff] }
  0x96   : > { %8241 = vst [vmem:[#allocation141_spill] sm:$0xff] %v5631_v43  ;;  %v5656_v43 = vld [vmem:[%s8098_s8 + $0x1b0] sm:$0xff] }
  0x97   : > { %8242 = vst [vmem:[#allocation142_spill] sm:$0xff] %v5636_v45  ;;  %v5661_v45 = vld [vmem:[%s8098_s8 + $0x1b8] sm:$0xff] }
  0x98   : > { %8243 = vst [vmem:[#allocation143_spill] sm:$0xff] %v5641_v44  ;;  %v5666_v44 = vld [vmem:[%s8098_s8 + $0x1c0] sm:$0xff] }
  0x99   : > { %8244 = vst [vmem:[#allocation144_spill] sm:$0xff] %v5646_v28  ;;  %v5671_v28 = vld [vmem:[%s8098_s8 + $0x1c8] sm:$0xff] }
  0x9a   : > { %8245 = vst [vmem:[#allocation145_spill] sm:$0xff] %v5651_v29  ;;  %v5676_v29 = vld [vmem:[%s8098_s8 + $0x1d0] sm:$0xff] }
  0x9b   : > { %8246 = vst [vmem:[#allocation146_spill] sm:$0xff] %v5656_v43  ;;  %v5681_v43 = vld [vmem:[%s8098_s8 + $0x1d8] sm:$0xff] }
  0x9c   : > { %8247 = vst [vmem:[#allocation147_spill] sm:$0xff] %v5661_v45  ;;  %v5686_v45 = vld [vmem:[%s8098_s8 + $0x1e0] sm:$0xff] }
  0x9d   : > { %8248 = vst [vmem:[#allocation148_spill] sm:$0xff] %v5666_v44  ;;  %v5691_v44 = vld [vmem:[%s8098_s8 + $0x1e8] sm:$0xff] }
  0x9e   : > { %8249 = vst [vmem:[#allocation149_spill] sm:$0xff] %v5671_v28  ;;  %v5696_v28 = vld [vmem:[%s8098_s8 + $0x1f0] sm:$0xff] }
  0x9f   : > { %8250 = vst [vmem:[#allocation150_spill] sm:$0xff] %v5676_v29  ;;  %v5701_v29 = vld [vmem:[%s8098_s8 + $0x1f8] sm:$0xff] }
  0xa0   : > { %8251 = vst [vmem:[#allocation151_spill] sm:$0xff] %v5681_v43  ;;  %v5706_v43 = vld [vmem:[%s8098_s8 + $0x200] sm:$0xff] }
  0xa1   : > { %8252 = vst [vmem:[#allocation152_spill] sm:$0xff] %v5686_v45  ;;  %v5711_v45 = vld [vmem:[%s8098_s8 + $0x208] sm:$0xff] }
  0xa2   : > { %8253 = vst [vmem:[#allocation153_spill] sm:$0xff] %v5691_v44  ;;  %v5716_v44 = vld [vmem:[%s8098_s8 + $0x210] sm:$0xff] }
  0xa3   : > { %8254 = vst [vmem:[#allocation154_spill] sm:$0xff] %v5696_v28  ;;  %v5721_v28 = vld [vmem:[%s8098_s8 + $0x218] sm:$0xff] }
  0xa4   : > { %8255 = vst [vmem:[#allocation155_spill] sm:$0xff] %v5701_v29  ;;  %v5726_v29 = vld [vmem:[%s8098_s8 + $0x220] sm:$0xff] }
  0xa5   : > { %8256 = vst [vmem:[#allocation156_spill] sm:$0xff] %v5706_v43  ;;  %v5731_v43 = vld [vmem:[%s8098_s8 + $0x228] sm:$0xff] }
  0xa6   : > { %8257 = vst [vmem:[#allocation157_spill] sm:$0xff] %v5711_v45  ;;  %v5736_v45 = vld [vmem:[%s8098_s8 + $0x230] sm:$0xff] }
  0xa7   : > { %8258 = vst [vmem:[#allocation158_spill] sm:$0xff] %v5716_v44  ;;  %v5741_v44 = vld [vmem:[%s8098_s8 + $0x238] sm:$0xff] }
  0xa8   : > { %8259 = vst [vmem:[#allocation159_spill] sm:$0xff] %v5721_v28  ;;  %v5746_v28 = vld [vmem:[%s8098_s8 + $0x240] sm:$0xff] }
  0xa9   : > { %8260 = vst [vmem:[#allocation160_spill] sm:$0xff] %v5726_v29  ;;  %v5751_v29 = vld [vmem:[%s8098_s8 + $0x248] sm:$0xff] }
  0xaa   : > { %8261 = vst [vmem:[#allocation161_spill] sm:$0xff] %v5731_v43  ;;  %v5756_v43 = vld [vmem:[%s8098_s8 + $0x250] sm:$0xff] }
  0xab   : > { %8262 = vst [vmem:[#allocation162_spill] sm:$0xff] %v5736_v45  ;;  %v5761_v45 = vld [vmem:[%s8098_s8 + $0x258] sm:$0xff] }
  0xac   : > { %8263 = vst [vmem:[#allocation163_spill] sm:$0xff] %v5741_v44  ;;  %v5766_v44 = vld [vmem:[%s8098_s8 + $0x260] sm:$0xff] }
  0xad   : > { %8264 = vst [vmem:[#allocation164_spill] sm:$0xff] %v5746_v28  ;;  %v5771_v28 = vld [vmem:[%s8098_s8 + $0x268] sm:$0xff] }
  0xae   : > { %8265 = vst [vmem:[#allocation165_spill] sm:$0xff] %v5751_v29  ;;  %v5776_v29 = vld [vmem:[%s8098_s8 + $0x270] sm:$0xff] }
  0xaf   : > { %8266 = vst [vmem:[#allocation166_spill] sm:$0xff] %v5756_v43  ;;  %v5781_v43 = vld [vmem:[%s8098_s8 + $0x278] sm:$0xff] }
  0xb0   : > { %8267 = vst [vmem:[#allocation167_spill] sm:$0xff] %v5761_v45  ;;  %v5786_v45 = vld [vmem:[%s8098_s8 + $0x280] sm:$0xff] }
  0xb1   : > { %8268 = vst [vmem:[#allocation168_spill] sm:$0xff] %v5766_v44  ;;  %v5791_v44 = vld [vmem:[%s8098_s8 + $0x288] sm:$0xff] }
  0xb2   : > { %8269 = vst [vmem:[#allocation169_spill] sm:$0xff] %v5771_v28  ;;  %v5796_v28 = vld [vmem:[%s8098_s8 + $0x290] sm:$0xff] }
  0xb3   : > { %8270 = vst [vmem:[#allocation170_spill] sm:$0xff] %v5776_v29  ;;  %v5801_v29 = vld [vmem:[%s8098_s8 + $0x298] sm:$0xff] }
  0xb4   : > { %8271 = vst [vmem:[#allocation171_spill] sm:$0xff] %v5781_v43  ;;  %v5806_v43 = vld [vmem:[%s8098_s8 + $0x2a0] sm:$0xff] }
  0xb5   : > { %8272 = vst [vmem:[#allocation172_spill] sm:$0xff] %v5786_v45  ;;  %v5811_v45 = vld [vmem:[%s8098_s8 + $0x2a8] sm:$0xff] }
  0xb6   : > { %8273 = vst [vmem:[#allocation173_spill] sm:$0xff] %v5791_v44  ;;  %v5816_v44 = vld [vmem:[%s8098_s8 + $0x2b0] sm:$0xff] }
  0xb7   : > { %8274 = vst [vmem:[#allocation174_spill] sm:$0xff] %v5796_v28  ;;  %v5821_v28 = vld [vmem:[%s8098_s8 + $0x2b8] sm:$0xff] }
  0xb8   : > { %8275 = vst [vmem:[#allocation175_spill] sm:$0xff] %v5801_v29  ;;  %v5826_v29 = vld [vmem:[%s8098_s8 + $0x2c0] sm:$0xff] }
  0xb9   : > { %8276 = vst [vmem:[#allocation176_spill] sm:$0xff] %v5806_v43  ;;  %v5831_v43 = vld [vmem:[%s8098_s8 + $0x2c8] sm:$0xff] }
  0xba   : > { %8277 = vst [vmem:[#allocation177_spill] sm:$0xff] %v5811_v45  ;;  %v5836_v45 = vld [vmem:[%s8098_s8 + $0x2d0] sm:$0xff] }
  0xbb   : > { %8278 = vst [vmem:[#allocation178_spill] sm:$0xff] %v5816_v44  ;;  %v5841_v44 = vld [vmem:[%s8098_s8 + $0x2d8] sm:$0xff] }
  0xbc   : > { %8279 = vst [vmem:[#allocation179_spill] sm:$0xff] %v5821_v28  ;;  %v5846_v28 = vld [vmem:[%s8098_s8 + $0x2e0] sm:$0xff] }
  0xbd   : > { %8280 = vst [vmem:[#allocation180_spill] sm:$0xff] %v5826_v29  ;;  %v5851_v29 = vld [vmem:[%s8098_s8 + $0x2e8] sm:$0xff] }
  0xbe   : > { %8281 = vst [vmem:[#allocation181_spill] sm:$0xff] %v5831_v43  ;;  %v5856_v43 = vld [vmem:[%s8098_s8 + $0x2f0] sm:$0xff] }
  0xbf   : > { %8282 = vst [vmem:[#allocation182_spill] sm:$0xff] %v5836_v45  ;;  %v5861_v45 = vld [vmem:[%s8098_s8 + $0x2f8] sm:$0xff] }
  0xc0   : > { %8283 = vst [vmem:[#allocation183_spill] sm:$0xff] %v5841_v44  ;;  %v5866_v44 = vld [vmem:[%s8098_s8 + $0x300] sm:$0xff] }
  0xc1   : > { %8284 = vst [vmem:[#allocation184_spill] sm:$0xff] %v5846_v28  ;;  %v5871_v28 = vld [vmem:[%s8098_s8 + $0x308] sm:$0xff] }
  0xc2   : > { %8285 = vst [vmem:[#allocation185_spill] sm:$0xff] %v5851_v29  ;;  %v5876_v29 = vld [vmem:[%s8098_s8 + $0x310] sm:$0xff] }
  0xc3   : > { %8286 = vst [vmem:[#allocation186_spill] sm:$0xff] %v5856_v43  ;;  %v5881_v43 = vld [vmem:[%s8098_s8 + $0x318] sm:$0xff] }
  0xc4   : > { %8287 = vst [vmem:[#allocation187_spill] sm:$0xff] %v5861_v45  ;;  %v5886_v45 = vld [vmem:[%s8098_s8 + $0x320] sm:$0xff] }
  0xc5   : > { %8288 = vst [vmem:[#allocation188_spill] sm:$0xff] %v5866_v44  ;;  %v5891_v44 = vld [vmem:[%s8098_s8 + $0x328] sm:$0xff] }
  0xc6   : > { %8289 = vst [vmem:[#allocation189_spill] sm:$0xff] %v5871_v28  ;;  %v5896_v28 = vld [vmem:[%s8098_s8 + $0x330] sm:$0xff] }
  0xc7   : > { %8290 = vst [vmem:[#allocation190_spill] sm:$0xff] %v5876_v29  ;;  %v5901_v29 = vld [vmem:[%s8098_s8 + $0x338] sm:$0xff] }
  0xc8   : > { %8291 = vst [vmem:[#allocation191_spill] sm:$0xff] %v5881_v43  ;;  %v5906_v43 = vld [vmem:[%s8098_s8 + $0x340] sm:$0xff] }
  0xc9   : > { %8292 = vst [vmem:[#allocation192_spill] sm:$0xff] %v5886_v45  ;;  %v5911_v45 = vld [vmem:[%s8098_s8 + $0x348] sm:$0xff] }
  0xca   : > { %8293 = vst [vmem:[#allocation193_spill] sm:$0xff] %v5891_v44  ;;  %v5916_v44 = vld [vmem:[%s8098_s8 + $0x350] sm:$0xff] }
  0xcb   : > { %8294 = vst [vmem:[#allocation194_spill] sm:$0xff] %v5896_v28  ;;  %v5921_v28 = vld [vmem:[%s8098_s8 + $0x358] sm:$0xff] }
  0xcc   : > { %8295 = vst [vmem:[#allocation195_spill] sm:$0xff] %v5901_v29  ;;  %v5926_v29 = vld [vmem:[%s8098_s8 + $0x360] sm:$0xff] }
  0xcd   : > { %8296 = vst [vmem:[#allocation196_spill] sm:$0xff] %v5906_v43  ;;  %v5931_v43 = vld [vmem:[%s8098_s8 + $0x368] sm:$0xff] }
  0xce   : > { %8297 = vst [vmem:[#allocation197_spill] sm:$0xff] %v5911_v45  ;;  %v5936_v45 = vld [vmem:[%s8098_s8 + $0x370] sm:$0xff] }
  0xcf   : > { %8298 = vst [vmem:[#allocation198_spill] sm:$0xff] %v5916_v44  ;;  %v5941_v44 = vld [vmem:[%s8098_s8 + $0x378] sm:$0xff] }
  0xd0   : > { %8299 = vst [vmem:[#allocation199_spill] sm:$0xff] %v5921_v28  ;;  %v5946_v28 = vld [vmem:[%s8098_s8 + $0x380] sm:$0xff] }
  0xd1   : > { %8300 = vst [vmem:[#allocation200_spill] sm:$0xff] %v5926_v29  ;;  %v5951_v29 = vld [vmem:[%s8098_s8 + $0x388] sm:$0xff] }
  0xd2   : > { %8301 = vst [vmem:[#allocation201_spill] sm:$0xff] %v5931_v43  ;;  %v5956_v43 = vld [vmem:[%s8098_s8 + $0x390] sm:$0xff] }
  0xd3   : > { %8302 = vst [vmem:[#allocation202_spill] sm:$0xff] %v5936_v45  ;;  %v5961_v45 = vld [vmem:[%s8098_s8 + $0x398] sm:$0xff] }
  0xd4   : > { %8303 = vst [vmem:[#allocation203_spill] sm:$0xff] %v5941_v44  ;;  %v5966_v44 = vld [vmem:[%s8098_s8 + $0x3a0] sm:$0xff] }
  0xd5   : > { %8304 = vst [vmem:[#allocation204_spill] sm:$0xff] %v5946_v28  ;;  %v5971_v28 = vld [vmem:[%s8098_s8 + $0x3a8] sm:$0xff] }
  0xd6   : > { %8305 = vst [vmem:[#allocation205_spill] sm:$0xff] %v5951_v29  ;;  %v5976_v29 = vld [vmem:[%s8098_s8 + $0x3b0] sm:$0xff] }
  0xd7   : > { %8306 = vst [vmem:[#allocation206_spill] sm:$0xff] %v5956_v43  ;;  %v5981_v43 = vld [vmem:[%s8098_s8 + $0x3b8] sm:$0xff] }
  0xd8   : > { %8307 = vst [vmem:[#allocation207_spill] sm:$0xff] %v5961_v45  ;;  %v5986_v45 = vld [vmem:[%s8098_s8 + $0x3c0] sm:$0xff] }
  0xd9   : > { %8308 = vst [vmem:[#allocation208_spill] sm:$0xff] %v5966_v44  ;;  %v5991_v44 = vld [vmem:[%s8098_s8 + $0x3c8] sm:$0xff] }
  0xda   : > { %8309 = vst [vmem:[#allocation209_spill] sm:$0xff] %v5971_v28  ;;  %v5996_v28 = vld [vmem:[%s8098_s8 + $0x3d0] sm:$0xff] }
  0xdb   : > { %8310 = vst [vmem:[#allocation210_spill] sm:$0xff] %v5976_v29  ;;  %v6001_v29 = vld [vmem:[%s8098_s8 + $0x3d8] sm:$0xff] }
  0xdc   : > { %8311 = vst [vmem:[#allocation211_spill] sm:$0xff] %v5981_v43  ;;  %v6006_v43 = vld [vmem:[%s8098_s8 + $0x3e0] sm:$0xff] }
  0xdd   : > { %8312 = vst [vmem:[#allocation212_spill] sm:$0xff] %v5986_v45  ;;  %v6011_v45 = vld [vmem:[%s8098_s8 + $0x3e8] sm:$0xff] }
  0xde   : > { %8313 = vst [vmem:[#allocation213_spill] sm:$0xff] %v5991_v44  ;;  %v6016_v44 = vld [vmem:[%s8098_s8 + $0x3f0] sm:$0xff] }
  0xdf   : > { %8314 = vst [vmem:[#allocation214_spill] sm:$0xff] %v5996_v28  ;;  %v6021_v28 = vld [vmem:[%s8098_s8 + $0x3f8] sm:$0xff] }
  0xe0   : > { %8315 = vst [vmem:[#allocation215_spill] sm:$0xff] %v6001_v29  ;;  %v6026_v29 = vld [vmem:[%s8099_s9] sm:$0xff] }
  0xe1   : > { %8316 = vst [vmem:[#allocation216_spill] sm:$0xff] %v6006_v43  ;;  %v6031_v43 = vld [vmem:[%s8099_s9 + $0x8] sm:$0xff] }
  0xe2   : > { %8317 = vst [vmem:[#allocation217_spill] sm:$0xff] %v6011_v45  ;;  %v6036_v45 = vld [vmem:[%s8099_s9 + $0x10] sm:$0xff] }
  0xe3   : > { %8318 = vst [vmem:[#allocation218_spill] sm:$0xff] %v6016_v44  ;;  %v6041_v44 = vld [vmem:[%s8099_s9 + $0x18] sm:$0xff] }
  0xe4   : > { %8319 = vst [vmem:[#allocation219_spill] sm:$0xff] %v6021_v28  ;;  %v6046_v28 = vld [vmem:[%s8099_s9 + $0x20] sm:$0xff] }
  0xe5   : > { %8320 = vst [vmem:[#allocation220_spill] sm:$0xff] %v6026_v29  ;;  %v6051_v29 = vld [vmem:[%s8099_s9 + $0x28] sm:$0xff] }
  0xe6   : > { %8321 = vst [vmem:[#allocation221_spill] sm:$0xff] %v6031_v43  ;;  %v6056_v43 = vld [vmem:[%s8099_s9 + $0x30] sm:$0xff] }
  0xe7   : > { %8322 = vst [vmem:[#allocation222_spill] sm:$0xff] %v6036_v45  ;;  %v6061_v45 = vld [vmem:[%s8099_s9 + $0x38] sm:$0xff] }
  0xe8   : > { %8323 = vst [vmem:[#allocation223_spill] sm:$0xff] %v6041_v44  ;;  %v6066_v44 = vld [vmem:[%s8099_s9 + $0x40] sm:$0xff] }
  0xe9   : > { %8324 = vst [vmem:[#allocation224_spill] sm:$0xff] %v6046_v28  ;;  %v6071_v28 = vld [vmem:[%s8099_s9 + $0x48] sm:$0xff] }
  0xea   : > { %8325 = vst [vmem:[#allocation225_spill] sm:$0xff] %v6051_v29  ;;  %v6076_v29 = vld [vmem:[%s8099_s9 + $0x50] sm:$0xff] }
  0xeb   : > { %8326 = vst [vmem:[#allocation226_spill] sm:$0xff] %v6056_v43  ;;  %v6081_v43 = vld [vmem:[%s8099_s9 + $0x58] sm:$0xff] }
  0xec   : > { %8327 = vst [vmem:[#allocation227_spill] sm:$0xff] %v6061_v45  ;;  %v6086_v45 = vld [vmem:[%s8099_s9 + $0x60] sm:$0xff] }
  0xed   : > { %8328 = vst [vmem:[#allocation228_spill] sm:$0xff] %v6066_v44  ;;  %v6091_v44 = vld [vmem:[%s8099_s9 + $0x68] sm:$0xff] }
  0xee   : > { %8329 = vst [vmem:[#allocation229_spill] sm:$0xff] %v6071_v28  ;;  %v6096_v28 = vld [vmem:[%s8099_s9 + $0x70] sm:$0xff] }
  0xef   : > { %8330 = vst [vmem:[#allocation230_spill] sm:$0xff] %v6076_v29  ;;  %v6101_v29 = vld [vmem:[%s8099_s9 + $0x78] sm:$0xff] }
  0xf0   : > { %8331 = vst [vmem:[#allocation231_spill] sm:$0xff] %v6081_v43  ;;  %v6106_v43 = vld [vmem:[%s8099_s9 + $0x80] sm:$0xff] }
  0xf1   : > { %8332 = vst [vmem:[#allocation232_spill] sm:$0xff] %v6086_v45  ;;  %v6111_v45 = vld [vmem:[%s8099_s9 + $0x88] sm:$0xff] }
  0xf2   : > { %8333 = vst [vmem:[#allocation233_spill] sm:$0xff] %v6091_v44  ;;  %v6116_v44 = vld [vmem:[%s8099_s9 + $0x90] sm:$0xff] }
  0xf3   : > { %8334 = vst [vmem:[#allocation234_spill] sm:$0xff] %v6096_v28  ;;  %v6121_v28 = vld [vmem:[%s8099_s9 + $0x98] sm:$0xff] }
  0xf4   : > { %8335 = vst [vmem:[#allocation235_spill] sm:$0xff] %v6101_v29  ;;  %v6126_v29 = vld [vmem:[%s8099_s9 + $0xa0] sm:$0xff] }
  0xf5   : > { %8336 = vst [vmem:[#allocation236_spill] sm:$0xff] %v6106_v43  ;;  %v6131_v43 = vld [vmem:[%s8099_s9 + $0xa8] sm:$0xff] }
  0xf6   : > { %8337 = vst [vmem:[#allocation237_spill] sm:$0xff] %v6111_v45  ;;  %v6136_v45 = vld [vmem:[%s8099_s9 + $0xb0] sm:$0xff] }
  0xf7   : > { %8338 = vst [vmem:[#allocation238_spill] sm:$0xff] %v6116_v44  ;;  %v6141_v44 = vld [vmem:[%s8099_s9 + $0xb8] sm:$0xff] }
  0xf8   : > { %8339 = vst [vmem:[#allocation239_spill] sm:$0xff] %v6121_v28  ;;  %v6146_v28 = vld [vmem:[%s8099_s9 + $0xc0] sm:$0xff] }
  0xf9   : > { %8340 = vst [vmem:[#allocation240_spill] sm:$0xff] %v6126_v29  ;;  %v6151_v29 = vld [vmem:[%s8099_s9 + $0xc8] sm:$0xff] }
  0xfa   : > { %8341 = vst [vmem:[#allocation241_spill] sm:$0xff] %v6131_v43  ;;  %v6156_v43 = vld [vmem:[%s8099_s9 + $0xd0] sm:$0xff] }
  0xfb   : > { %8342 = vst [vmem:[#allocation242_spill] sm:$0xff] %v6136_v45  ;;  %v6161_v45 = vld [vmem:[%s8099_s9 + $0xd8] sm:$0xff] }
  0xfc   : > { %8343 = vst [vmem:[#allocation243_spill] sm:$0xff] %v6141_v44  ;;  %v6166_v44 = vld [vmem:[%s8099_s9 + $0xe0] sm:$0xff] }
  0xfd   : > { %8344 = vst [vmem:[#allocation244_spill] sm:$0xff] %v6146_v28  ;;  %v6171_v28 = vld [vmem:[%s8099_s9 + $0xe8] sm:$0xff] }
  0xfe   : > { %8345 = vst [vmem:[#allocation245_spill] sm:$0xff] %v6151_v29  ;;  %v6176_v29 = vld [vmem:[%s8099_s9 + $0xf0] sm:$0xff] }
  0xff   : > { %8346 = vst [vmem:[#allocation246_spill] sm:$0xff] %v6156_v43  ;;  %v6181_v43 = vld [vmem:[%s8099_s9 + $0xf8] sm:$0xff] }
 0x100   : > { %8347 = vst [vmem:[#allocation247_spill] sm:$0xff] %v6161_v45  ;;  %v6186_v45 = vld [vmem:[%s8099_s9 + $0x100] sm:$0xff] }
 0x101   : > { %8348 = vst [vmem:[#allocation248_spill] sm:$0xff] %v6166_v44  ;;  %v6191_v44 = vld [vmem:[%s8099_s9 + $0x108] sm:$0xff] }
 0x102   : > { %8349 = vst [vmem:[#allocation249_spill] sm:$0xff] %v6171_v28  ;;  %v6196_v28 = vld [vmem:[%s8099_s9 + $0x110] sm:$0xff] }
 0x103   : > { %8350 = vst [vmem:[#allocation250_spill] sm:$0xff] %v6176_v29  ;;  %v6201_v29 = vld [vmem:[%s8099_s9 + $0x118] sm:$0xff] }
 0x104   : > { %8351 = vst [vmem:[#allocation251_spill] sm:$0xff] %v6181_v43  ;;  %v6206_v43 = vld [vmem:[%s8099_s9 + $0x120] sm:$0xff] }
 0x105   : > { %8352 = vst [vmem:[#allocation252_spill] sm:$0xff] %v6186_v45  ;;  %v6211_v45 = vld [vmem:[%s8099_s9 + $0x128] sm:$0xff] }
 0x106   : > { %8353 = vst [vmem:[#allocation253_spill] sm:$0xff] %v6191_v44  ;;  %v6216_v44 = vld [vmem:[%s8099_s9 + $0x130] sm:$0xff] }
 0x107   : > { %8354 = vst [vmem:[#allocation254_spill] sm:$0xff] %v6196_v28  ;;  %v6221_v28 = vld [vmem:[%s8099_s9 + $0x138] sm:$0xff] }
 0x108   : > { %8355 = vst [vmem:[#allocation255_spill] sm:$0xff] %v6201_v29  ;;  %v6226_v29 = vld [vmem:[%s8099_s9 + $0x140] sm:$0xff] }
 0x109   : > { %8356 = vst [vmem:[#allocation256_spill] sm:$0xff] %v6206_v43  ;;  %v6231_v43 = vld [vmem:[%s8099_s9 + $0x148] sm:$0xff] }
 0x10a   : > { %8357 = vst [vmem:[#allocation257_spill] sm:$0xff] %v6211_v45  ;;  %v6236_v45 = vld [vmem:[%s8099_s9 + $0x150] sm:$0xff] }
 0x10b   : > { %8358 = vst [vmem:[#allocation258_spill] sm:$0xff] %v6216_v44  ;;  %v6241_v44 = vld [vmem:[%s8099_s9 + $0x158] sm:$0xff] }
 0x10c   : > { %8359 = vst [vmem:[#allocation259_spill] sm:$0xff] %v6221_v28  ;;  %v6246_v28 = vld [vmem:[%s8099_s9 + $0x160] sm:$0xff] }
 0x10d   : > { %8360 = vst [vmem:[#allocation260_spill] sm:$0xff] %v6226_v29  ;;  %v6251_v29 = vld [vmem:[%s8099_s9 + $0x168] sm:$0xff] }
 0x10e   : > { %8361 = vst [vmem:[#allocation261_spill] sm:$0xff] %v6231_v43  ;;  %v6256_v43 = vld [vmem:[%s8099_s9 + $0x170] sm:$0xff] }
 0x10f   : > { %8362 = vst [vmem:[#allocation262_spill] sm:$0xff] %v6236_v45  ;;  %v6261_v45 = vld [vmem:[%s8099_s9 + $0x178] sm:$0xff] }
 0x110   : > { %8363 = vst [vmem:[#allocation263_spill] sm:$0xff] %v6241_v44  ;;  %v6266_v44 = vld [vmem:[%s8099_s9 + $0x180] sm:$0xff] }
 0x111   : > { %8364 = vst [vmem:[#allocation264_spill] sm:$0xff] %v6246_v28  ;;  %v6271_v28 = vld [vmem:[%s8099_s9 + $0x188] sm:$0xff] }
 0x112   : > { %8365 = vst [vmem:[#allocation265_spill] sm:$0xff] %v6251_v29  ;;  %v6276_v29 = vld [vmem:[%s8099_s9 + $0x190] sm:$0xff] }
 0x113   : > { %8366 = vst [vmem:[#allocation266_spill] sm:$0xff] %v6256_v43  ;;  %v6281_v43 = vld [vmem:[%s8099_s9 + $0x198] sm:$0xff] }
 0x114   : > { %8367 = vst [vmem:[#allocation267_spill] sm:$0xff] %v6261_v45  ;;  %v6286_v45 = vld [vmem:[%s8099_s9 + $0x1a0] sm:$0xff] }
 0x115   : > { %8368 = vst [vmem:[#allocation268_spill] sm:$0xff] %v6266_v44  ;;  %v6291_v44 = vld [vmem:[%s8099_s9 + $0x1a8] sm:$0xff] }
 0x116   : > { %8369 = vst [vmem:[#allocation269_spill] sm:$0xff] %v6271_v28  ;;  %v6296_v28 = vld [vmem:[%s8099_s9 + $0x1b0] sm:$0xff] }
 0x117   : > { %8370 = vst [vmem:[#allocation270_spill] sm:$0xff] %v6276_v29  ;;  %v6301_v29 = vld [vmem:[%s8099_s9 + $0x1b8] sm:$0xff] }
 0x118   : > { %8371 = vst [vmem:[#allocation271_spill] sm:$0xff] %v6281_v43  ;;  %v6306_v43 = vld [vmem:[%s8099_s9 + $0x1c0] sm:$0xff] }
 0x119   : > { %8372 = vst [vmem:[#allocation272_spill] sm:$0xff] %v6286_v45  ;;  %v6311_v45 = vld [vmem:[%s8099_s9 + $0x1c8] sm:$0xff] }
 0x11a   : > { %8373 = vst [vmem:[#allocation273_spill] sm:$0xff] %v6291_v44  ;;  %v6316_v44 = vld [vmem:[%s8099_s9 + $0x1d0] sm:$0xff] }
 0x11b   : > { %8374 = vst [vmem:[#allocation274_spill] sm:$0xff] %v6296_v28  ;;  %v6321_v28 = vld [vmem:[%s8099_s9 + $0x1d8] sm:$0xff] }
 0x11c   : > { %8375 = vst [vmem:[#allocation275_spill] sm:$0xff] %v6301_v29  ;;  %v6326_v29 = vld [vmem:[%s8099_s9 + $0x1e0] sm:$0xff] }
 0x11d   : > { %8376 = vst [vmem:[#allocation276_spill] sm:$0xff] %v6306_v43  ;;  %v6331_v43 = vld [vmem:[%s8099_s9 + $0x1e8] sm:$0xff] }
 0x11e   : > { %8377 = vst [vmem:[#allocation277_spill] sm:$0xff] %v6311_v45  ;;  %v6336_v45 = vld [vmem:[%s8099_s9 + $0x1f0] sm:$0xff] }
 0x11f   : > { %8378 = vst [vmem:[#allocation278_spill] sm:$0xff] %v6316_v44  ;;  %v6341_v44 = vld [vmem:[%s8099_s9 + $0x1f8] sm:$0xff] }
 0x120   : > { %8379 = vst [vmem:[#allocation279_spill] sm:$0xff] %v6321_v28  ;;  %v6346_v28 = vld [vmem:[%s8099_s9 + $0x200] sm:$0xff] }
 0x121   : > { %8380 = vst [vmem:[#allocation280_spill] sm:$0xff] %v6326_v29  ;;  %v6351_v29 = vld [vmem:[%s8099_s9 + $0x208] sm:$0xff] }
 0x122   : > { %8381 = vst [vmem:[#allocation281_spill] sm:$0xff] %v6331_v43  ;;  %v6356_v43 = vld [vmem:[%s8099_s9 + $0x210] sm:$0xff] }
 0x123   : > { %8382 = vst [vmem:[#allocation282_spill] sm:$0xff] %v6336_v45  ;;  %v6361_v45 = vld [vmem:[%s8099_s9 + $0x218] sm:$0xff] }
 0x124   : > { %8383 = vst [vmem:[#allocation283_spill] sm:$0xff] %v6341_v44  ;;  %v6366_v44 = vld [vmem:[%s8099_s9 + $0x220] sm:$0xff] }
 0x125   : > { %8384 = vst [vmem:[#allocation284_spill] sm:$0xff] %v6346_v28  ;;  %v6371_v28 = vld [vmem:[%s8099_s9 + $0x228] sm:$0xff] }
 0x126   : > { %8385 = vst [vmem:[#allocation285_spill] sm:$0xff] %v6351_v29  ;;  %v6376_v29 = vld [vmem:[%s8099_s9 + $0x230] sm:$0xff] }
 0x127   : > { %8386 = vst [vmem:[#allocation286_spill] sm:$0xff] %v6356_v43  ;;  %v6381_v43 = vld [vmem:[%s8099_s9 + $0x238] sm:$0xff] }
 0x128   : > { %8387 = vst [vmem:[#allocation287_spill] sm:$0xff] %v6361_v45  ;;  %v6386_v45 = vld [vmem:[%s8099_s9 + $0x240] sm:$0xff] }
 0x129   : > { %8388 = vst [vmem:[#allocation288_spill] sm:$0xff] %v6366_v44  ;;  %v6391_v44 = vld [vmem:[%s8099_s9 + $0x248] sm:$0xff] }
 0x12a   : > { %8389 = vst [vmem:[#allocation289_spill] sm:$0xff] %v6371_v28  ;;  %v6396_v28 = vld [vmem:[%s8099_s9 + $0x250] sm:$0xff] }
 0x12b   : > { %8390 = vst [vmem:[#allocation290_spill] sm:$0xff] %v6376_v29  ;;  %v6401_v29 = vld [vmem:[%s8099_s9 + $0x258] sm:$0xff] }
 0x12c   : > { %8391 = vst [vmem:[#allocation291_spill] sm:$0xff] %v6381_v43  ;;  %v6406_v43 = vld [vmem:[%s8099_s9 + $0x260] sm:$0xff] }
 0x12d   : > { %8392 = vst [vmem:[#allocation292_spill] sm:$0xff] %v6386_v45  ;;  %v6411_v45 = vld [vmem:[%s8099_s9 + $0x268] sm:$0xff] }
 0x12e   : > { %8393 = vst [vmem:[#allocation293_spill] sm:$0xff] %v6391_v44  ;;  %v6416_v44 = vld [vmem:[%s8099_s9 + $0x270] sm:$0xff] }
 0x12f   : > { %8394 = vst [vmem:[#allocation294_spill] sm:$0xff] %v6396_v28  ;;  %v6421_v28 = vld [vmem:[%s8099_s9 + $0x278] sm:$0xff] }
 0x130   : > { %8395 = vst [vmem:[#allocation295_spill] sm:$0xff] %v6401_v29  ;;  %v6426_v29 = vld [vmem:[%s8099_s9 + $0x280] sm:$0xff] }
 0x131   : > { %8396 = vst [vmem:[#allocation296_spill] sm:$0xff] %v6406_v43  ;;  %v6431_v43 = vld [vmem:[%s8099_s9 + $0x288] sm:$0xff] }
 0x132   : > { %8397 = vst [vmem:[#allocation297_spill] sm:$0xff] %v6411_v45  ;;  %v6436_v45 = vld [vmem:[%s8099_s9 + $0x290] sm:$0xff] }
 0x133   : > { %8398 = vst [vmem:[#allocation298_spill] sm:$0xff] %v6416_v44  ;;  %v6441_v44 = vld [vmem:[%s8099_s9 + $0x298] sm:$0xff] }
 0x134   : > { %8399 = vst [vmem:[#allocation299_spill] sm:$0xff] %v6421_v28  ;;  %v6446_v28 = vld [vmem:[%s8099_s9 + $0x2a0] sm:$0xff] }
 0x135   : > { %8400 = vst [vmem:[#allocation300_spill] sm:$0xff] %v6426_v29  ;;  %v6451_v29 = vld [vmem:[%s8099_s9 + $0x2a8] sm:$0xff] }
 0x136   : > { %8401 = vst [vmem:[#allocation301_spill] sm:$0xff] %v6431_v43  ;;  %v6456_v43 = vld [vmem:[%s8099_s9 + $0x2b0] sm:$0xff] }
 0x137   : > { %8402 = vst [vmem:[#allocation302_spill] sm:$0xff] %v6436_v45  ;;  %v6461_v45 = vld [vmem:[%s8099_s9 + $0x2b8] sm:$0xff] }
 0x138   : > { %8403 = vst [vmem:[#allocation303_spill] sm:$0xff] %v6441_v44  ;;  %v6466_v44 = vld [vmem:[%s8099_s9 + $0x2c0] sm:$0xff] }
 0x139   : > { %8404 = vst [vmem:[#allocation304_spill] sm:$0xff] %v6446_v28  ;;  %v6471_v28 = vld [vmem:[%s8099_s9 + $0x2c8] sm:$0xff] }
 0x13a   : > { %8405 = vst [vmem:[#allocation305_spill] sm:$0xff] %v6451_v29  ;;  %v6476_v29 = vld [vmem:[%s8099_s9 + $0x2d0] sm:$0xff] }
 0x13b   : > { %8406 = vst [vmem:[#allocation306_spill] sm:$0xff] %v6456_v43  ;;  %v6481_v43 = vld [vmem:[%s8099_s9 + $0x2d8] sm:$0xff] }
 0x13c   : > { %8407 = vst [vmem:[#allocation307_spill] sm:$0xff] %v6461_v45  ;;  %v6486_v45 = vld [vmem:[%s8099_s9 + $0x2e0] sm:$0xff] }
 0x13d   : > { %8408 = vst [vmem:[#allocation308_spill] sm:$0xff] %v6466_v44  ;;  %v6491_v44 = vld [vmem:[%s8099_s9 + $0x2e8] sm:$0xff] }
 0x13e   : > { %8409 = vst [vmem:[#allocation309_spill] sm:$0xff] %v6471_v28  ;;  %v6496_v28 = vld [vmem:[%s8099_s9 + $0x2f0] sm:$0xff] }
 0x13f   : > { %8410 = vst [vmem:[#allocation310_spill] sm:$0xff] %v6476_v29  ;;  %v6501_v29 = vld [vmem:[%s8099_s9 + $0x2f8] sm:$0xff] }
 0x140   : > { %8411 = vst [vmem:[#allocation311_spill] sm:$0xff] %v6481_v43  ;;  %v6506_v43 = vld [vmem:[%s8099_s9 + $0x300] sm:$0xff] }
 0x141   : > { %8412 = vst [vmem:[#allocation312_spill] sm:$0xff] %v6486_v45  ;;  %v6511_v45 = vld [vmem:[%s8099_s9 + $0x308] sm:$0xff] }
 0x142   : > { %8413 = vst [vmem:[#allocation313_spill] sm:$0xff] %v6491_v44  ;;  %v6516_v44 = vld [vmem:[%s8099_s9 + $0x310] sm:$0xff] }
 0x143   : > { %8414 = vst [vmem:[#allocation314_spill] sm:$0xff] %v6496_v28  ;;  %v6521_v28 = vld [vmem:[%s8099_s9 + $0x318] sm:$0xff] }
 0x144   : > { %8415 = vst [vmem:[#allocation315_spill] sm:$0xff] %v6501_v29  ;;  %v6526_v29 = vld [vmem:[%s8099_s9 + $0x320] sm:$0xff] }
 0x145   : > { %8416 = vst [vmem:[#allocation316_spill] sm:$0xff] %v6506_v43  ;;  %v6531_v43 = vld [vmem:[%s8099_s9 + $0x328] sm:$0xff] }
 0x146   : > { %8417 = vst [vmem:[#allocation317_spill] sm:$0xff] %v6511_v45  ;;  %v6536_v45 = vld [vmem:[%s8099_s9 + $0x330] sm:$0xff] }
 0x147   : > { %8418 = vst [vmem:[#allocation318_spill] sm:$0xff] %v6516_v44  ;;  %v6541_v44 = vld [vmem:[%s8099_s9 + $0x338] sm:$0xff] }
 0x148   : > { %8419 = vst [vmem:[#allocation319_spill] sm:$0xff] %v6521_v28  ;;  %v6546_v28 = vld [vmem:[%s8099_s9 + $0x340] sm:$0xff] }
 0x149   : > { %8420 = vst [vmem:[#allocation320_spill] sm:$0xff] %v6526_v29  ;;  %v6551_v29 = vld [vmem:[%s8099_s9 + $0x348] sm:$0xff] }
 0x14a   : > { %8421 = vst [vmem:[#allocation321_spill] sm:$0xff] %v6531_v43  ;;  %v6556_v43 = vld [vmem:[%s8099_s9 + $0x350] sm:$0xff] }
 0x14b   : > { %8422 = vst [vmem:[#allocation322_spill] sm:$0xff] %v6536_v45  ;;  %v6561_v45 = vld [vmem:[%s8099_s9 + $0x358] sm:$0xff] }
 0x14c   : > { %8423 = vst [vmem:[#allocation323_spill] sm:$0xff] %v6541_v44  ;;  %v6566_v44 = vld [vmem:[%s8099_s9 + $0x360] sm:$0xff] }
 0x14d   : > { %8424 = vst [vmem:[#allocation324_spill] sm:$0xff] %v6546_v28  ;;  %v6571_v28 = vld [vmem:[%s8099_s9 + $0x368] sm:$0xff] }
 0x14e   : > { %8425 = vst [vmem:[#allocation325_spill] sm:$0xff] %v6551_v29  ;;  %v6576_v29 = vld [vmem:[%s8099_s9 + $0x370] sm:$0xff] }
 0x14f   : > { %8426 = vst [vmem:[#allocation326_spill] sm:$0xff] %v6556_v43  ;;  %v6581_v43 = vld [vmem:[%s8099_s9 + $0x378] sm:$0xff] }
 0x150   : > { %8427 = vst [vmem:[#allocation327_spill] sm:$0xff] %v6561_v45  ;;  %v6586_v45 = vld [vmem:[%s8099_s9 + $0x380] sm:$0xff] }
 0x151   : > { %8428 = vst [vmem:[#allocation328_spill] sm:$0xff] %v6566_v44  ;;  %v6591_v44 = vld [vmem:[%s8099_s9 + $0x388] sm:$0xff] }
 0x152   : > { %8429 = vst [vmem:[#allocation329_spill] sm:$0xff] %v6571_v28  ;;  %v6596_v28 = vld [vmem:[%s8099_s9 + $0x390] sm:$0xff] }
 0x153   : > { %8430 = vst [vmem:[#allocation330_spill] sm:$0xff] %v6576_v29  ;;  %v6601_v29 = vld [vmem:[%s8099_s9 + $0x398] sm:$0xff] }
 0x154   : > { %8431 = vst [vmem:[#allocation331_spill] sm:$0xff] %v6581_v43  ;;  %v6606_v43 = vld [vmem:[%s8099_s9 + $0x3a0] sm:$0xff] }
 0x155   : > { %8432 = vst [vmem:[#allocation332_spill] sm:$0xff] %v6586_v45  ;;  %v6611_v45 = vld [vmem:[%s8099_s9 + $0x3a8] sm:$0xff] }
 0x156   : > { %8433 = vst [vmem:[#allocation333_spill] sm:$0xff] %v6591_v44  ;;  %v6616_v44 = vld [vmem:[%s8099_s9 + $0x3b0] sm:$0xff] }
 0x157   : > { %8434 = vst [vmem:[#allocation334_spill] sm:$0xff] %v6596_v28  ;;  %v6621_v28 = vld [vmem:[%s8099_s9 + $0x3b8] sm:$0xff] }
 0x158   : > { %8435 = vst [vmem:[#allocation335_spill] sm:$0xff] %v6601_v29  ;;  %v6626_v29 = vld [vmem:[%s8099_s9 + $0x3c0] sm:$0xff] }
 0x159   : > { %8436 = vst [vmem:[#allocation336_spill] sm:$0xff] %v6606_v43  ;;  %v6631_v43 = vld [vmem:[%s8099_s9 + $0x3c8] sm:$0xff] }
 0x15a   : > { %8437 = vst [vmem:[#allocation337_spill] sm:$0xff] %v6611_v45  ;;  %v6636_v45 = vld [vmem:[%s8099_s9 + $0x3d0] sm:$0xff] }
 0x15b   : > { %8438 = vst [vmem:[#allocation338_spill] sm:$0xff] %v6616_v44  ;;  %v6641_v44 = vld [vmem:[%s8099_s9 + $0x3d8] sm:$0xff] }
 0x15c   : > { %8439 = vst [vmem:[#allocation339_spill] sm:$0xff] %v6621_v28  ;;  %v6646_v28 = vld [vmem:[%s8099_s9 + $0x3e0] sm:$0xff] }
 0x15d   : > { %8440 = vst [vmem:[#allocation340_spill] sm:$0xff] %v6626_v29  ;;  %v6651_v29 = vld [vmem:[%s8099_s9 + $0x3e8] sm:$0xff] }
 0x15e   : > { %8441 = vst [vmem:[#allocation341_spill] sm:$0xff] %v6631_v43  ;;  %v6656_v43 = vld [vmem:[%s8099_s9 + $0x3f0] sm:$0xff] }
 0x15f   : > { %8442 = vst [vmem:[#allocation342_spill] sm:$0xff] %v6636_v45  ;;  %v6661_v45 = vld [vmem:[%s8099_s9 + $0x3f8] sm:$0xff] }
 0x160   : > { %8443 = vst [vmem:[#allocation343_spill] sm:$0xff] %v6641_v44  ;;  %v6666_v44 = vld [vmem:[%s8100_s10] sm:$0xff] }
 0x161   : > { %8444 = vst [vmem:[#allocation344_spill] sm:$0xff] %v6646_v28  ;;  %v6671_v28 = vld [vmem:[%s8100_s10 + $0x8] sm:$0xff] }
 0x162   : > { %8445 = vst [vmem:[#allocation345_spill] sm:$0xff] %v6651_v29  ;;  %v6676_v29 = vld [vmem:[%s8100_s10 + $0x10] sm:$0xff] }
 0x163   : > { %8446 = vst [vmem:[#allocation346_spill] sm:$0xff] %v6656_v43  ;;  %v6681_v43 = vld [vmem:[%s8100_s10 + $0x18] sm:$0xff] }
 0x164   : > { %8447 = vst [vmem:[#allocation347_spill] sm:$0xff] %v6661_v45  ;;  %v6686_v45 = vld [vmem:[%s8101_s11] sm:$0xf] }
 0x165   : > { %8448 = vst [vmem:[#allocation348_spill] sm:$0xff] %v6676_v29 }
 0x166 LB: >> { %s4287_s26 = sshll.u32 %s4663_s24, 2  ;;  %s4665_s28 = smov 127   ;;  %vm826_vm0 = vcmask 1043456   ;;  %vm813_vm1 = vcmask 31744   ;;  %v8449_v15 = vld [vmem:[#allocation18_spill] sm:$0xff]  ;;  %v8450_v14 = vld [vmem:[#allocation17_spill] sm:$0xff]  ;;  %s4663_s24 = sphi %s6688_s24, %s806_s24  }
 0x167   : >> { %s808_s27 = scalar_lea.vmem %s4841_s15, %s4287_s26  ;;  %s4666_s29 = smov 126   ;;  %4303 = vmatpush.msk.msra.mxu3 %vm826_vm0, %v8449_v15  ;;  %v8451_v13 = vld [vmem:[#allocation16_spill] sm:$0xff]  ;;  %v8452_v12 = vld [vmem:[#allocation15_spill] sm:$0xff]  ;;  %v8453_v11 = vld [vmem:[#allocation14_spill] sm:$0xff]  ;;  %vm1010_vm2 = vcmask 1014784   ;;  %vm1075_vm3 = vcmask 261120  }
 0x168   : >> { %v809_v29 = vld [vmem:[%s808_s27] sm:$0xf]  ;;  %v8454_v10 = vld [vmem:[#allocation13_spill] sm:$0xff]  ;;  %v8455_v9 = vld [vmem:[#allocation12_spill] sm:$0xff]  ;;  %vm1288_vm4 = vcmask 1041408   ;;  %vm1275_vm5 = vcmask 474112  }
 0x169   : >> { %811 = vrot.lane.b32.xlu0 %v809_v29, %s4665_s28  ;;  %4516 = vmatpush.msk.msra.mxu1 %vm826_vm0, %v809_v29  ;;  %v8456_v8 = vld [vmem:[#allocation11_spill] sm:$0xff]  ;;  %v8457_v7 = vld [vmem:[#allocation10_spill] sm:$0xff]  ;;  %v8459_v6 = vld [vmem:[#allocation9_spill] sm:$0xff]  ;;  %vm1553_vm6 = vcmask 1040384   ;;  %vm1540_vm7 = vcmask 203776   ;;  %vm1805_vm8 = vcmask 72704  }
 0x16a   : >> { %4295 = vmatmul.msk.f32.vlgmr.msra.gmra.mxu1 %vm813_vm1, %v5331_v27  ;;  %1027 = vmatpush.msra.mxu3 %v8450_v14  ;;  %v8458_v24 = vld [vmem:[#allocation90_spill] sm:$0xff]  ;;  %v8460_v5 = vld [vmem:[#allocation8_spill] sm:$0xff]  ;;  %v8461_v4 = vld [vmem:[#allocation7_spill] sm:$0xff]  ;;  %s4383_s25 = sshll.u32 %s4663_s24, 5  ;;  %vm2202_vm9 = vcmask 7168   ;;  %s806_s24 = sadd.s32 1, %s4663_s24  }
 0x16b   : >> { %v8462_v3 = vld [vmem:[#allocation6_spill] sm:$0xff]  ;;  %v8463_v2 = vld [vmem:[#allocation5_spill] sm:$0xff]  ;;  %v8464_v1 = vld [vmem:[#allocation4_spill] sm:$0xff]  ;;  %s2201_s30 = scalar_lea.vmem [#allocation2], %s4383_s25  ;;  %p803_p5 = scmp.ge.s32.totalorder %s806_s24, 8  }
 0x16c   : >> { %1028 = vmatpush.msra.mxu3 %v8451_v13  ;;  %v8465_v0 = vld [vmem:[#allocation3_spill] sm:$0xff]  ;;  %v8467_v19 = vld [vmem:[#allocation22_spill] sm:$0xff]  ;;  %v8468_v18 = vld [vmem:[#allocation21_spill] sm:$0xff]  ;;  %4010 = vst [vmem:[#allocation1] ss:$2 sm:$0xff] (%p803_p5), %v6666_v44  ;;  %vm3012_vm10 = vcmask (%p803_p5), 130112  }
 0x16d   : >> { %v8466_v25 = vld [vmem:[#allocation91_spill] sm:$0xff]  ;;  %v8469_v17 = vld [vmem:[#allocation20_spill] sm:$0xff]  ;;  %4012 = vst [vmem:[#allocation1 + $0x10] ss:$2 sm:$0xff] (%p803_p5), %v6671_v28  ;;  %v8549_v28 = vld [vmem:[#allocation230_spill] sm:$0xff] (%p803_p5)  ;;  %vm3016_vm11 = vcmask (%p803_p5), 195712  }
 0x16e   : >> { %1029 = vmatpush.msra.mxu3 %v8452_v12  ;;  %v8470_v16 = vld [vmem:[#allocation19_spill] sm:$0xff]  ;;  %4016 = vst [vmem:[#allocation1 + $0x30] ss:$2 sm:$0xff] (%p803_p5), %v6681_v43  ;;  %v8563_v43 = vld [vmem:[#allocation246_spill] sm:$0xff] (%p803_p5)  ;;  %v8564_v44 = vld [vmem:[#allocation245_spill] sm:$0xff] (%p803_p5)  ;;  %vm3071_vm12 = vcmask (%p803_p5), 1041409  }
 0x16f   : > { %v8548_v27 = vld [vmem:[#allocation231_spill] sm:$0xff] (%p803_p5)  ;;  %vm3020_vm13 = vcmask (%p803_p5), 261312   ;;  %vm3073_vm14 = vcmask (%p803_p5), 1042434   ;;  %vm3075_vm15 = vcmask (%p803_p5), 1043459  }
 0x170   : >> { %1030 = vmatpush.msra.mxu3 %v8453_v11 }
 0x171   : >> { %901 = vrot.lane.b32.xlu0 %v809_v29, %s4666_s29 }
 0x172   : >> { %4296 = vmatmul.msk.f32.gmra.mxu1 %vm813_vm1, %v5336_v49  ;;  %1031 = vmatpush.msra.mxu3 %v8454_v10  ;;  %v8568_v49 = vld [vmem:[#allocation247_spill] sm:$0xff] (%p803_p5) }
 0x174   : >> { %1032 = vmatpush.msra.mxu3 %v8455_v9 }
 0x176   : >> { %1033 = vmatpush.msra.mxu3 %v8456_v8 }
 0x178   : >> { %1034 = vmatpush.msra.mxu3 %v8457_v7 }
 0x17a   : >> { %4297 = vmatmul.msk.f32.gmra.mxu1 %vm813_vm1, %v8458_v24  ;;  %1035 = vmatpush.msra.mxu3 %v8459_v6 }
 0x17c   : >> { %1036 = vmatpush.msra.mxu3 %v8460_v5 }
 0x17e   : >> { %1037 = vmatpush.msra.mxu3 %v8461_v4 }
 0x180   : >> { %1038 = vmatpush.msra.mxu3 %v8462_v3  ;;  %v4667_v3 = vmov 0  }
 0x181   : >> { %4541 = vset.pattern.permute.xlu1 %v4667_v3  ;;  %4542 = vset.pattern.permute.xlu2 %v4667_v3 }
 0x182   : >> { %1039 = vmatpush.msra.mxu3 %v8463_v2  ;;  %952 = vperm.xlu1 %4541, %v5206_v60  }
 0x183   : >> { %962 = vperm.xlu2 %4542, %v5216_v58   ;;  %4563 = vset.pattern.permute.xlu0 %v4667_v3  ;;  %v8576_v58 = vld [vmem:[#allocation257_spill] sm:$0xff] (%p803_p5) }
 0x184   : >> { %1040 = vmatpush.msra.mxu3 %v8464_v1 }
 0x186   : >> { %1041 = vmatpush.msra.mxu3 %v8465_v0 }
 0x188   : >> { %4320 = vmatpush.msk.msrb.mxu3 %vm1288_vm4, %v4871_v23  ;;  %v8546_v23 = vld [vmem:[#allocation227_spill] sm:$0xff] (%p803_p5)  ;;  %vm3083_vm4 = vcmask (%p803_p5), 1047559  }
 0x18a   : >> { %957 = vperm.xlu1 %4541, %v5211_v61   ;;  %1301 = vmatpush.msrb.mxu3 %v4866_v22  ;;  %v8545_v22 = vld [vmem:[#allocation228_spill] sm:$0xff] (%p803_p5)  ;;  %v8578_v61 = vld [vmem:[#allocation261_spill] sm:$0xff] (%p803_p5) }
 0x18b   : >> { %967 = vperm.xlu2 %4542, %v5221_v63   ;;  %v8580_v63 = vld [vmem:[#allocation259_spill] sm:$0xff] (%p803_p5) }
 0x18c   : >> { %1302 = vmatpush.msrb.mxu3 %v4861_v21  ;;  %v8544_v21 = vld [vmem:[#allocation221_spill] sm:$0xff] (%p803_p5) }
 0x18e   : >> { %1303 = vmatpush.msrb.mxu3 %v4856_v20  ;;  %v8543_v20 = vld [vmem:[#allocation223_spill] sm:$0xff] (%p803_p5) }
 0x190   : >> { %1304 = vmatpush.msrb.mxu3 %v8467_v19 }
 0x192   : >> { %1305 = vmatpush.msrb.mxu3 %v8468_v18 }
 0x194   : >> { %1306 = vmatpush.msrb.mxu3 %v8469_v17 }
 0x196   : >> { %1307 = vmatpush.msrb.mxu3 %v8470_v16 }
 0x1db   : >> { %v812_v8 = vpop.permute.xlu0 %811 }
 0x1dc   : >> { %4288 = vmatpush.msk.msra.mxu0 %vm826_vm0, %v812_v8  ;;  %4515 = vmatpush.msk.msra.mxu2 %vm826_vm0, %v812_v8 }
 0x1dd   : >> { %4290 = vmatmul.msk.f32.vlgmr.msra.gmra.mxu2 %vm813_vm1, %v5351_v53  ;;  %4289 = vmatmul.msk.f32.vlgmr.msra.gmra.mxu0 %vm813_vm1, %v8466_v25  ;;  %v8572_v53 = vld [vmem:[#allocation255_spill] sm:$0xff] (%p803_p5) }
 0x1de   : >> { %4293 = vmatpush.msk.msrb.mxu0 %vm826_vm0, %v809_v29 }
 0x1e3   : >> { %v902_v0 = vpop.permute.xlu0 %901 }
 0x1e4   : >> { %4298 = vmatpush.msk.msrb.mxu2 %vm826_vm0, %v902_v0  ;;  %vm3077_vm0 = vcmask (%p803_p5), 1044484  }
 0x1e5   : >> { %4291 = vmatmul.msk.f32.gmra.mxu2 %vm813_vm1, %v5356_v48  ;;  %4294 = vmatmul.msk.f32.vlgmr.msrb.gmra.mxu0 %vm813_vm1, %v5326_v26  ;;  %v8547_v26 = vld [vmem:[#allocation226_spill] sm:$0xff] (%p803_p5)  ;;  %v8567_v48 = vld [vmem:[#allocation248_spill] sm:$0xff] (%p803_p5) }
 0x1e7   : >> { %v892_v2 = vpop.f32.mrf.mxu1 }
 0x1ed   : >> { %4292 = vmatmul.msk.f32.gmra.mxu2 %vm813_vm1, %v5361_v52  ;;  %v8571_v52 = vld [vmem:[#allocation250_spill] sm:$0xff] (%p803_p5) }
 0x1ef   : >> { %v895_v13 = vpop.f32.mrf.mxu1 }
 0x1f4   : >> { %v953_v5 = vpop.permute.xlu1 %952 }
 0x1f5   : >> { %4299 = vmatmul.msk.f32.vlgmr.msrb.gmra.mxu2 %vm813_vm1, %v5366_v47  ;;  %v8566_v47 = vld [vmem:[#allocation249_spill] sm:$0xff] (%p803_p5) }
 0x1fc   : >> { %v958_v14 = vpop.permute.xlu1 %957 }
 0x1fd   : >> { %4300 = vmatmul.msk.f32.gmra.mxu2 %vm813_vm1, %v5371_v51  ;;  %v8570_v51 = vld [vmem:[#allocation251_spill] sm:$0xff] (%p803_p5) }
 0x205   : >> { %4301 = vmatmul.msk.f32.gmra.mxu2 %vm813_vm1, %v5376_v46  ;;  %v8565_v46 = vld [vmem:[#allocation244_spill] sm:$0xff] (%p803_p5) }
 0x20d   : >> { %4302 = vmatmul.msk.f32.gmra.mxu2 %vm813_vm1, %v5381_v50  ;;  %v8569_v50 = vld [vmem:[#allocation252_spill] sm:$0xff] (%p803_p5)  ;;  %vm3079_vm1 = vcmask (%p803_p5), 1045509  }
 0x25a   : >> { %v846_v8 = vpop.f32.mrf.mxu0 }
 0x260   : >> { %v849_v0 = vpop.f32.mrf.mxu2 }
 0x261   : >> { %v893_v10 = vadd.f32 %v892_v2, %v849_v0 }
 0x262   : >> { %v889_v1 = vpop.f32.mrf.mxu0 }
 0x263   : >> { %v890_v4 = vadd.f32 %v889_v1, %v846_v8  ;;  %v963_v1 = vpop.permute.xlu2 %962 }
 0x268   : >> { %v852_v3 = vpop.f32.mrf.mxu2 }
 0x269   : >> { %v896_v24 = vadd.f32 %v895_v13, %v852_v3 }
 0x270   : >> { %v855_v29 = vpop.f32.mrf.mxu2 }
 0x278   : >> { %v934_v6 = vpop.f32.mrf.mxu2 }
 0x279   : >> { %v946_v7 = vadd.f32 %v934_v6, %v890_v4 }
 0x27b   : >> { %v970_v9 = vadd.f32 %v953_v5, %v946_v7  ;;  %v898_v5 = vpop.f32.mrf.mxu1 }
 0x27c   : >> { %v899_v2 = vadd.f32 %v898_v5, %v855_v29 }
 0x27d   : >> { %994 = vrot.lane.b32.xlu1 %v970_v9, %s4666_s29  ;;  %978 = vrot.lane.b32.xlu0 %v970_v9, %s4665_s28 }
 0x280   : >> { %v937_v11 = vpop.f32.mrf.mxu2 }
 0x281   : >> { %v947_v12 = vadd.f32 %v937_v11, %v893_v10  ;;  %v968_v10 = vpop.permute.xlu2 %967 }
 0x283   : >> { %v971_v15 = vadd.f32 %v958_v14, %v947_v12 }
 0x285   : >> { %996 = vrot.lane.b32.xlu0 %v971_v15, %s4666_s29  ;;  %980 = vrot.lane.b32.xlu2 %v971_v15, %s4665_s28 }
 0x288   : >> { %v940_v8 = vpop.f32.mrf.mxu2 }
 0x289   : >> { %v948_v25 = vadd.f32 %v940_v8, %v896_v24 }
 0x28b   : >> { %v972_v4 = vadd.f32 %v963_v1, %v948_v25 }
 0x28d   : >> { %982 = vrot.lane.b32.xlu1 %v972_v4, %s4665_s28  ;;  %998 = vrot.lane.b32.xlu2 %v972_v4, %s4666_s29 }
 0x290   : >> { %v943_v6 = vpop.f32.mrf.mxu2 }
 0x291   : >> { %v949_v7 = vadd.f32 %v943_v6, %v899_v2 }
 0x293   : >> { %v973_v11 = vadd.f32 %v968_v10, %v949_v7 }
 0x295   : >> { %1000 = vrot.lane.b32.xlu1 %v973_v11, %s4666_s29  ;;  %984 = vrot.lane.b32.xlu0 %v973_v11, %s4665_s28 }
 0x2df   : >> { %v981_v25 = vpop.permute.xlu2 %980 }
 0x2e0   : >> { %v991_v3 = vmax.f32 %v971_v15, %v981_v25 }
 0x2e7   : >> { %v999_v5 = vpop.permute.xlu2 %998 }
 0x2ef   : >> { %v979_v12 = vpop.permute.xlu0 %978  ;;  %v995_v14 = vpop.permute.xlu1 %994 }
 0x2f0   : >> { %v990_v13 = vmax.f32 %v970_v9, %v979_v12 }
 0x2f2   : >> { %v1006_v24 = vmax.f32 %v990_v13, %v995_v14 }
 0x2f4   : >> { %4304 = vmatmul.msk.f32.vlgmr.msra.gmra.mxu3 %vm1010_vm2, %v1006_v24 }
 0x2f7   : >> { %v997_v0 = vpop.permute.xlu0 %996 }
 0x2f8   : >> { %v1007_v1 = vmax.f32 %v991_v3, %v997_v0 }
 0x2fc   : >> { %4305 = vmatmul.msk.f32.gmra.mxu3 %vm1010_vm2, %v1007_v1 }
 0x2ff   : >> { %v983_v29 = vpop.permute.xlu1 %982 }
 0x300   : >> { %v992_v8 = vmax.f32 %v972_v4, %v983_v29 }
 0x302   : >> { %v1008_v2 = vmax.f32 %v992_v8, %v999_v5 }
 0x304   : >> { %4306 = vmatmul.msk.f32.gmra.mxu3 %vm1010_vm2, %v1008_v2 }
 0x307   : >> { %v985_v6 = vpop.permute.xlu0 %984  ;;  %v1001_v9 = vpop.permute.xlu1 %1000 }
 0x308   : >> { %v993_v7 = vmax.f32 %v973_v11, %v985_v6 }
 0x30a   : >> { %v1009_v10 = vmax.f32 %v993_v7, %v1001_v9 }
 0x30c   : >> { %4307 = vmatmul.msk.f32.gmra.mxu3 %vm1010_vm2, %v1009_v10  ;;  %vm3081_vm2 = vcmask (%p803_p5), 1046534  }
 0x377   : >> { %v1043_v12 = vpop.f32.mrf.mxu3 }
 0x378   : >> { %v1055_v14 = vmax.f32 %v1043_v12, 0.0 }
 0x37f   : >> { %v1046_v13 = vpop.f32.mrf.mxu3 }
 0x380   : >> { %v1056_v24 = vmax.f32 %v1046_v13, 0.0 }
 0x382   : >> { %v4553_v15 = vpack.i.bf16 %v1055_v14, %v1056_v24 }
 0x384   : >> { %4554 = vrot.lane.b32.xlu1 %v4553_v15, %s4666_s29 }
 0x387   : >> { %v1049_v25 = vpop.f32.mrf.mxu3 }
 0x388   : >> { %v1057_v0 = vmax.f32 %v1049_v25, 0.0 }
 0x38c   : >> { %1222 = vperm.xlu1 %4541, %v5231_v62   ;;  %v8579_v62 = vld [vmem:[#allocation260_spill] sm:$0xff] (%p803_p5) }
 0x38f   : >> { %v1052_v4 = vpop.f32.mrf.mxu3 }
 0x390   : >> { %v1058_v3 = vmax.f32 %v1052_v4, 0.0 }
 0x392   : >> { %1141 = vmatpush.msrb.mxu1 %v1058_v3  ;;  %v4548_v1 = vpack.i.bf16 %v1057_v0, %v1058_v3 }
 0x394   : >> { %1232 = vperm.xlu1 %4541, %v5241_v56   ;;  %4549 = vrot.lane.b32.xlu0 %v4548_v1, %s4665_s28 }
 0x395   : >> { %4544 = vrot.lane.b32.xlu2 %v4548_v1, %s4666_s29  ;;  %1142 = vmatpush.msrb.mxu1 %v1057_v0 }
 0x397   : >> { %1143 = vmatpush.msrb.mxu1 %v1056_v24 }
 0x399   : >> { %1144 = vmatpush.msrb.mxu1 %v1055_v14 }
 0x39a   : >> { %4312 = vmatmul.msk.f32.vlgmr.msrb.gmra.mxu1 %vm1075_vm3, %v4906_v30  ;;  %v8550_v30 = vld [vmem:[#allocation229_spill] sm:$0xff] (%p803_p5) }
 0x39c   : >> { %1217 = vperm.xlu0 %4563, %v5226_v59   ;;  %v8577_v59 = vld [vmem:[#allocation256_spill] sm:$0xff] (%p803_p5) }
 0x39d   : >> { %4559 = vrot.lane.b32.xlu2 %v4553_v15, %s4665_s28 }
 0x3a2   : >> { %4313 = vmatmul.msk.f32.gmra.mxu1 %vm1075_vm3, %v4911_v31  ;;  %v8551_v31 = vld [vmem:[#allocation234_spill] sm:$0xff] (%p803_p5) }
 0x3a5   : >> { %1227 = vperm.xlu2 %4542, %v5236_v57   ;;  %v8575_v57 = vld [vmem:[#allocation258_spill] sm:$0xff] (%p803_p5) }
 0x3aa   : >> { %4314 = vmatmul.msk.f32.gmra.mxu1 %vm1075_vm3, %v4916_v32  ;;  %v8552_v32 = vld [vmem:[#allocation233_spill] sm:$0xff] (%p803_p5) }
 0x3b2   : >> { %4315 = vmatmul.msk.f32.gmra.mxu1 %vm1075_vm3, %v4921_v33  ;;  %v8553_v33 = vld [vmem:[#allocation232_spill] sm:$0xff] (%p803_p5) }
 0x3ef   : >> { %v4545_v11 = vpop.permute.xlu2 %4544 }
 0x3f0   : >> { %v4546_v29 = vunpack.i.l.bf16 %v4545_v11  ;;  %v4547_v8 = vunpack.i.h.bf16 %v4545_v11 }
 0x3f2   : >> { %1194 = vmatpush.msra.mxu2 %v4546_v29 }
 0x3f4   : >> { %1195 = vmatpush.msra.mxu2 %v4547_v8 }
 0x3f6   : >> { %v4555_v5 = vpop.permute.xlu1 %4554 }
 0x3f7   : >> { %v4556_v2 = vunpack.i.l.bf16 %v4555_v5  ;;  %v4557_v6 = vunpack.i.h.bf16 %v4555_v5  ;;  %v4560_v10 = vpop.permute.xlu2 %4559 }
 0x3f8   : >> { %v4561_v13 = vunpack.i.l.bf16 %v4560_v10  ;;  %v4562_v14 = vunpack.i.h.bf16 %v4560_v10 }
 0x3f9   : >> { %1196 = vmatpush.msra.mxu2 %v4556_v2 }
 0x3fb   : >> { %1197 = vmatpush.msra.mxu2 %v4557_v6 }
 0x3fc   : >> { %4316 = vmatmul.msk.f32.vlgmr.msra.gmra.mxu2 %vm1075_vm3, %v4946_v38  ;;  %v8558_v38 = vld [vmem:[#allocation239_spill] sm:$0xff] (%p803_p5) }
 0x3fe   : >> { %v1223_v6 = vpop.permute.xlu1 %1222 }
 0x404   : >> { %4317 = vmatmul.msk.f32.gmra.mxu2 %vm1075_vm3, %v4951_v39  ;;  %v8559_v39 = vld [vmem:[#allocation238_spill] sm:$0xff] (%p803_p5) }
 0x406   : >> { %v4550_v7 = vpop.permute.xlu0 %4549 }
 0x407   : >> { %v4551_v9 = vunpack.i.l.bf16 %v4550_v7  ;;  %v4552_v12 = vunpack.i.h.bf16 %v4550_v7 }
 0x409   : >> { %1100 = vmatpush.msra.mxu0 %v4551_v9 }
 0x40b   : >> { %1101 = vmatpush.msra.mxu0 %v4552_v12 }
 0x40c   : >> { %4318 = vmatmul.msk.f32.gmra.mxu2 %vm1075_vm3, %v4956_v40  ;;  %v8560_v40 = vld [vmem:[#allocation243_spill] sm:$0xff] (%p803_p5) }
 0x40d   : >> { %1102 = vmatpush.msra.mxu0 %v4561_v13 }
 0x40e   : >> { %v1218_v0 = vpop.permute.xlu0 %1217 }
 0x40f   : >> { %1103 = vmatpush.msra.mxu0 %v4562_v14 }
 0x410   : >> { %4308 = vmatmul.msk.f32.vlgmr.msra.gmra.mxu0 %vm1075_vm3, %v4926_v34  ;;  %v8554_v34 = vld [vmem:[#allocation237_spill] sm:$0xff] (%p803_p5) }
 0x414   : >> { %4319 = vmatmul.msk.f32.gmra.mxu2 %vm1075_vm3, %v4961_v41  ;;  %v8561_v41 = vld [vmem:[#allocation242_spill] sm:$0xff] (%p803_p5) }
 0x417   : >> { %v1146_v24 = vpop.f32.mrf.mxu1 }
 0x418   : >> { %4309 = vmatmul.msk.f32.gmra.mxu0 %vm1075_vm3, %v4931_v35  ;;  %v8555_v35 = vld [vmem:[#allocation236_spill] sm:$0xff] (%p803_p5) }
 0x41f   : >> { %v1149_v3 = vpop.f32.mrf.mxu1 }
 0x420   : >> { %4310 = vmatmul.msk.f32.gmra.mxu0 %vm1075_vm3, %v4936_v36  ;;  %v8556_v36 = vld [vmem:[#allocation235_spill] sm:$0xff] (%p803_p5) }
 0x427   : >> { %v1152_v7 = vpop.f32.mrf.mxu1 }
 0x428   : >> { %4311 = vmatmul.msk.f32.gmra.mxu0 %vm1075_vm3, %v4941_v37  ;;  %v8557_v37 = vld [vmem:[#allocation240_spill] sm:$0xff] (%p803_p5) }
 0x47f   : >> { %v1199_v15 = vpop.f32.mrf.mxu2 }
 0x487   : >> { %v1202_v11 = vpop.f32.mrf.mxu2 }
 0x48d   : >> { %v1105_v25 = vpop.f32.mrf.mxu0 }
 0x48e   : >> { %v1147_v4 = vadd.f32 %v1146_v24, %v1105_v25  ;;  %v1228_v24 = vpop.permute.xlu2 %1227  ;;  %v1155_v25 = vpop.f32.mrf.mxu1 }
 0x48f   : >> { %v1205_v10 = vpop.f32.mrf.mxu2 }
 0x490   : >> { %v1211_v1 = vadd.f32 %v1199_v15, %v1147_v4 }
 0x492   : >> { %v1235_v29 = vadd.f32 %v1218_v0, %v1211_v1 }
 0x494   : >> { %1259 = vrot.lane.b32.xlu0 %v1235_v29, %s4666_s29  ;;  %1243 = vrot.lane.b32.xlu2 %v1235_v29, %s4665_s28 }
 0x495   : >> { %v1108_v8 = vpop.f32.mrf.mxu0 }
 0x496   : >> { %v1150_v5 = vadd.f32 %v1149_v3, %v1108_v8 }
 0x497   : >> { %v1208_v0 = vpop.f32.mrf.mxu2 }
 0x498   : >> { %v1212_v2 = vadd.f32 %v1202_v11, %v1150_v5  ;;  %v1233_v11 = vpop.permute.xlu1 %1232 }
 0x49a   : >> { %v1236_v9 = vadd.f32 %v1223_v6, %v1212_v2 }
 0x49c   : >> { %1245 = vrot.lane.b32.xlu1 %v1236_v9, %s4665_s28  ;;  %1261 = vrot.lane.b32.xlu2 %v1236_v9, %s4666_s29 }
 0x49d   : >> { %v1111_v12 = vpop.f32.mrf.mxu0 }
 0x49e   : >> { %v1153_v13 = vadd.f32 %v1152_v7, %v1111_v12 }
 0x4a0   : >> { %v1213_v14 = vadd.f32 %v1205_v10, %v1153_v13 }
 0x4a2   : >> { %v1237_v15 = vadd.f32 %v1228_v24, %v1213_v14 }
 0x4a4   : >> { %1263 = vrot.lane.b32.xlu1 %v1237_v15, %s4666_s29  ;;  %1247 = vrot.lane.b32.xlu0 %v1237_v15, %s4665_s28 }
 0x4a5   : >> { %v1114_v4 = vpop.f32.mrf.mxu0 }
 0x4a6   : >> { %v1156_v3 = vadd.f32 %v1155_v25, %v1114_v4 }
 0x4a8   : >> { %v1214_v1 = vadd.f32 %v1208_v0, %v1156_v3 }
 0x4aa   : >> { %v1238_v8 = vadd.f32 %v1233_v11, %v1214_v1 }
 0x4ac   : >> { %1265 = vrot.lane.b32.xlu0 %v1238_v8, %s4666_s29  ;;  %1249 = vrot.lane.b32.xlu2 %v1238_v8, %s4665_s28 }
 0x4ee   : >> { %v1244_v5 = vpop.permute.xlu2 %1243 }
 0x4ef   : >> { %v1255_v2 = vmax.f32 %v1235_v29, %v1244_v5 }
 0x4f6   : >> { %v1262_v13 = vpop.permute.xlu2 %1261 }
 0x506   : >> { %v1260_v6 = vpop.permute.xlu0 %1259  ;;  %v1250_v3 = vpop.permute.xlu2 %1249 }
 0x507   : >> { %v1271_v7 = vmax.f32 %v1255_v2, %v1260_v6  ;;  %v1258_v29 = vmax.f32 %v1238_v8, %v1250_v3  ;;  %v8471_v8 = vld [vmem:[#allocation29_spill] sm:$0xff] }
 0x509   : >> { %4321 = vmatmul.msk.f32.vlgmr.msrb.gmra.mxu3 %vm1275_vm5, %v1271_v7 }
 0x50e   : >> { %v1246_v10 = vpop.permute.xlu1 %1245 }
 0x50f   : >> { %v1256_v12 = vmax.f32 %v1236_v9, %v1246_v10 }
 0x511   : >> { %v1272_v14 = vmax.f32 %v1256_v12, %v1262_v13 }
 0x513   : >> { %4322 = vmatmul.msk.f32.gmra.mxu3 %vm1275_vm5, %v1272_v14 }
 0x516   : >> { %v1248_v24 = vpop.permute.xlu0 %1247  ;;  %v1264_v4 = vpop.permute.xlu1 %1263 }
 0x517   : >> { %v1257_v25 = vmax.f32 %v1237_v15, %v1248_v24  ;;  %v8472_v24 = vld [vmem:[#allocation77_spill] sm:$0xff] }
 0x519   : >> { %v1273_v0 = vmax.f32 %v1257_v25, %v1264_v4  ;;  %v8473_v25 = vld [vmem:[#allocation76_spill] sm:$0xff]  ;;  %v8474_v4 = vld [vmem:[#allocation30_spill] sm:$0xff] }
 0x51b   : >> { %4323 = vmatmul.msk.f32.gmra.mxu3 %vm1275_vm5, %v1273_v0  ;;  %v8475_v0 = vld [vmem:[#allocation31_spill] sm:$0xff] }
 0x51e   : >> { %v1266_v1 = vpop.permute.xlu0 %1265 }
 0x51f   : >> { %v1274_v11 = vmax.f32 %v1258_v29, %v1266_v1 }
 0x523   : >> { %4324 = vmatmul.msk.f32.gmra.mxu3 %vm1275_vm5, %v1274_v11 }
 0x58c   : >> { %v1309_v5 = vpop.f32.mrf.mxu3 }
 0x58d   : >> { %v1321_v6 = vmax.f32 %v1309_v5, 0.0 }
 0x596   : >> { %v1312_v2 = vpop.f32.mrf.mxu3 }
 0x597   : >> { %v1322_v9 = vmax.f32 %v1312_v2, 0.0 }
 0x599   : >> { %v4574_v7 = vpack.i.bf16 %v1321_v6, %v1322_v9 }
 0x59b   : >> { %4575 = vrot.lane.b32.xlu0 %v4574_v7, %s4666_s29 }
 0x59e   : >> { %v1315_v10 = vpop.f32.mrf.mxu3 }
 0x59f   : >> { %v1323_v12 = vmax.f32 %v1315_v10, 0.0 }
 0x5a3   : >> { %1487 = vperm.xlu0 %4563, %v5251_v54   ;;  %v8573_v54 = vld [vmem:[#allocation254_spill] sm:$0xff] (%p803_p5) }
 0x5a6   : >> { %v1318_v15 = vpop.f32.mrf.mxu3 }
 0x5a7   : >> { %v1324_v13 = vmax.f32 %v1318_v15, 0.0 }
 0x5a9   : >> { %1406 = vmatpush.msra.mxu1 %v1324_v13  ;;  %v4569_v14 = vpack.i.bf16 %v1323_v12, %v1324_v13 }
 0x5ab   : >> { %4570 = vrot.lane.b32.xlu2 %v4569_v14, %s4665_s28  ;;  %4565 = vrot.lane.b32.xlu1 %v4569_v14, %s4666_s29  ;;  %v8477_v14 = vld [vmem:[#allocation32_spill] sm:$0xff] }
 0x5ac   : >> { %1407 = vmatpush.msra.mxu1 %v1323_v12  ;;  %v8476_v12 = vld [vmem:[#allocation36_spill] sm:$0xff] }
 0x5ae   : >> { %1408 = vmatpush.msra.mxu1 %v1322_v9 }
 0x5b0   : >> { %1409 = vmatpush.msra.mxu1 %v1321_v6 }
 0x5b1   : >> { %4329 = vmatmul.msk.f32.vlgmr.msra.gmra.mxu1 %vm1075_vm3, %v4966_v42  ;;  %v8562_v42 = vld [vmem:[#allocation241_spill] sm:$0xff] (%p803_p5) }
 0x5b3   : >> { %1482 = vperm.xlu2 %4542, %v5246_v55   ;;  %4580 = vrot.lane.b32.xlu1 %v4574_v7, %s4665_s28  ;;  %v8574_v55 = vld [vmem:[#allocation253_spill] sm:$0xff] (%p803_p5) }
 0x5b9   : >> { %4330 = vmatmul.msk.f32.gmra.mxu1 %vm1075_vm3, %v8471_v8  ;;  %v8478_v8 = vld [vmem:[#allocation37_spill] sm:$0xff] }
 0x5bb   : >> { %1497 = vperm.xlu2 %4542, %v8472_v24   ;;  %1492 = vperm.xlu1 %4541, %v8473_v25   ;;  %v8479_v24 = vld [vmem:[#allocation33_spill] sm:$0xff]  ;;  %v8480_v25 = vld [vmem:[#allocation38_spill] sm:$0xff] }
 0x5c1   : >> { %4331 = vmatmul.msk.f32.gmra.mxu1 %vm1075_vm3, %v8474_v4  ;;  %v8481_v4 = vld [vmem:[#allocation34_spill] sm:$0xff] }
 0x5c9   : >> { %4332 = vmatmul.msk.f32.gmra.mxu1 %vm1075_vm3, %v8475_v0  ;;  %v8482_v0 = vld [vmem:[#allocation39_spill] sm:$0xff] }
 0x605   : >> { %v4571_v3 = vpop.permute.xlu2 %4570 }
 0x606   : >> { %v4572_v1 = vunpack.i.l.bf16 %v4571_v3  ;;  %v4573_v29 = vunpack.i.h.bf16 %v4571_v3  ;;  %v8483_v3 = vld [vmem:[#allocation35_spill] sm:$0xff] }
 0x608   : >> { %1365 = vmatpush.msrb.mxu0 %v4572_v1 }
 0x60a   : >> { %1366 = vmatpush.msrb.mxu0 %v4573_v29 }
 0x60d   : >> { %v4576_v2 = vpop.permute.xlu0 %4575 }
 0x60e   : >> { %v4577_v9 = vunpack.i.l.bf16 %v4576_v2  ;;  %v4578_v7 = vunpack.i.h.bf16 %v4576_v2 }
 0x61d   : >> { %v4566_v11 = vpop.permute.xlu1 %4565 }
 0x61e   : >> { %v4567_v5 = vunpack.i.l.bf16 %v4566_v11  ;;  %v4568_v6 = vunpack.i.h.bf16 %v4566_v11 }
 0x620   : >> { %1459 = vmatpush.msrb.mxu2 %v4567_v5 }
 0x622   : >> { %1460 = vmatpush.msrb.mxu2 %v4568_v6 }
 0x624   : >> { %1461 = vmatpush.msrb.mxu2 %v4577_v9  ;;  %v1483_v9 = vpop.permute.xlu2 %1482 }
 0x625   : >> { %v4581_v10 = vpop.permute.xlu1 %4580 }
 0x626   : >> { %v4582_v15 = vunpack.i.l.bf16 %v4581_v10  ;;  %1462 = vmatpush.msrb.mxu2 %v4578_v7  ;;  %v4583_v13 = vunpack.i.h.bf16 %v4581_v10 }
 0x627   : >> { %4333 = vmatmul.msk.f32.vlgmr.msrb.gmra.mxu2 %vm1075_vm3, %v8476_v12 }
 0x628   : >> { %1367 = vmatpush.msrb.mxu0 %v4582_v15 }
 0x62a   : >> { %1368 = vmatpush.msrb.mxu0 %v4583_v13 }
 0x62b   : >> { %4325 = vmatmul.msk.f32.vlgmr.msrb.gmra.mxu0 %vm1075_vm3, %v8477_v14  ;;  %v1488_v14 = vpop.permute.xlu0 %1487 }
 0x62e   : >> { %v1411_v1 = vpop.f32.mrf.mxu1 }
 0x62f   : >> { %4334 = vmatmul.msk.f32.gmra.mxu2 %vm1075_vm3, %v8478_v8 }
 0x633   : >> { %4326 = vmatmul.msk.f32.gmra.mxu0 %vm1075_vm3, %v8479_v24 }
 0x636   : >> { %v1414_v2 = vpop.f32.mrf.mxu1 }
 0x637   : >> { %4335 = vmatmul.msk.f32.gmra.mxu2 %vm1075_vm3, %v8480_v25 }
 0x63b   : >> { %4327 = vmatmul.msk.f32.gmra.mxu0 %vm1075_vm3, %v8481_v4 }
 0x63e   : >> { %v1417_v8 = vpop.f32.mrf.mxu1 }
 0x63f   : >> { %4336 = vmatmul.msk.f32.gmra.mxu2 %vm1075_vm3, %v8482_v0 }
 0x643   : >> { %4328 = vmatmul.msk.f32.gmra.mxu0 %vm1075_vm3, %v8483_v3 }
 0x6a8   : >> { %v1370_v29 = vpop.f32.mrf.mxu0 }
 0x6a9   : >> { %v1412_v11 = vadd.f32 %v1411_v1, %v1370_v29  ;;  %v1493_v1 = vpop.permute.xlu1 %1492 }
 0x6aa   : >> { %v1464_v5 = vpop.f32.mrf.mxu2 }
 0x6ab   : >> { %v1476_v6 = vadd.f32 %v1464_v5, %v1412_v11  ;;  %v1420_v11 = vpop.f32.mrf.mxu1 }
 0x6ad   : >> { %v1500_v7 = vadd.f32 %v1483_v9, %v1476_v6 }
 0x6af   : >> { %1524 = vrot.lane.b32.xlu1 %v1500_v7, %s4666_s29  ;;  %1508 = vrot.lane.b32.xlu0 %v1500_v7, %s4665_s28 }
 0x6b0   : >> { %v1373_v10 = vpop.f32.mrf.mxu0 }
 0x6b1   : >> { %v1415_v15 = vadd.f32 %v1414_v2, %v1373_v10  ;;  %v1498_v10 = vpop.permute.xlu2 %1497 }
 0x6b2   : >> { %v1467_v12 = vpop.f32.mrf.mxu2 }
 0x6b3   : >> { %v1477_v13 = vadd.f32 %v1467_v12, %v1415_v15  ;;  %v8484_v12 = vld [vmem:[#allocation26_spill] sm:$0xff] }
 0x6b4   : >> { %4337 = vmatpush.msk.msra.mxu3 %vm1553_vm6, %v8484_v12 }
 0x6b5   : >> { %v1501_v24 = vadd.f32 %v1488_v14, %v1477_v13  ;;  %v8485_v13 = vld [vmem:[#allocation25_spill] sm:$0xff]  ;;  %v8486_v14 = vld [vmem:[#allocation24_spill] sm:$0xff] }
 0x6b6   : >> { %1570 = vmatpush.msra.mxu3 %v8485_v13 }
 0x6b7   : >> { %1510 = vrot.lane.b32.xlu2 %v1501_v24, %s4665_s28  ;;  %1526 = vrot.lane.b32.xlu0 %v1501_v24, %s4666_s29 }
 0x6b8   : >> { %v1376_v25 = vpop.f32.mrf.mxu0  ;;  %1571 = vmatpush.msra.mxu3 %v8486_v14 }
 0x6b9   : >> { %v1418_v4 = vadd.f32 %v1417_v8, %v1376_v25  ;;  %v8487_v8 = vld [vmem:[#allocation23_spill] sm:$0xff]  ;;  %v8488_v25 = vld [vmem:[#allocation28_spill] sm:$0xff] }
 0x6ba   : >> { %v1470_v0 = vpop.f32.mrf.mxu2  ;;  %1572 = vmatpush.msra.mxu3 %v8487_v8 }
 0x6bb   : >> { %v1478_v3 = vadd.f32 %v1470_v0, %v1418_v4  ;;  %v8489_v4 = vld [vmem:[#allocation27_spill] sm:$0xff] }
 0x6bc   : >> { %4354 = vmatpush.msk.msrb.mxu3 %vm1553_vm6, %v8488_v25  ;;  %vm4215_vm6 = vcmask (%p803_p5), 60417  }
 0x6bd   : >> { %v1502_v29 = vadd.f32 %v1493_v1, %v1478_v3 }
 0x6be   : >> { %1836 = vmatpush.msrb.mxu3 %v8489_v4 }
 0x6bf   : >> { %1528 = vrot.lane.b32.xlu2 %v1502_v29, %s4666_s29  ;;  %1512 = vrot.lane.b32.xlu1 %v1502_v29, %s4665_s28 }
 0x6c0   : >> { %v1379_v5 = vpop.f32.mrf.mxu0 }
 0x6c1   : >> { %v1421_v2 = vadd.f32 %v1420_v11, %v1379_v5 }
 0x6c2   : >> { %v1473_v6 = vpop.f32.mrf.mxu2 }
 0x6c3   : >> { %v1479_v9 = vadd.f32 %v1473_v6, %v1421_v2 }
 0x6c5   : >> { %v1503_v15 = vadd.f32 %v1498_v10, %v1479_v9 }
 0x6c7   : >> { %1530 = vrot.lane.b32.xlu1 %v1503_v15, %s4666_s29  ;;  %1514 = vrot.lane.b32.xlu0 %v1503_v15, %s4665_s28 }
 0x711   : >> { %v1511_v5 = vpop.permute.xlu2 %1510 }
 0x712   : >> { %v1521_v6 = vmax.f32 %v1501_v24, %v1511_v5 }
 0x719   : >> { %v1529_v13 = vpop.permute.xlu2 %1528 }
 0x721   : >> { %v1509_v0 = vpop.permute.xlu0 %1508  ;;  %v1525_v1 = vpop.permute.xlu1 %1524 }
 0x722   : >> { %v1520_v3 = vmax.f32 %v1500_v7, %v1509_v0 }
 0x724   : >> { %v1536_v11 = vmax.f32 %v1520_v3, %v1525_v1 }
 0x726   : >> { %4338 = vmatmul.msk.f32.vlgmr.msra.gmra.mxu3 %vm1540_vm7, %v1536_v11 }
 0x729   : >> { %v1527_v2 = vpop.permute.xlu0 %1526 }
 0x72a   : >> { %v1537_v9 = vmax.f32 %v1521_v6, %v1527_v2  ;;  %v8490_v2 = vld [vmem:[#allocation79_spill] sm:$0xff] }
 0x72e   : >> { %4339 = vmatmul.msk.f32.gmra.mxu3 %vm1540_vm7, %v1537_v9 }
 0x731   : >> { %v1513_v10 = vpop.permute.xlu1 %1512 }
 0x732   : >> { %v1522_v12 = vmax.f32 %v1502_v29, %v1513_v10 }
 0x734   : >> { %v1538_v14 = vmax.f32 %v1522_v12, %v1529_v13  ;;  %v8492_v12 = vld [vmem:[#allocation78_spill] sm:$0xff]  ;;  %v8493_v13 = vld [vmem:[#allocation41_spill] sm:$0xff] }
 0x736   : >> { %4340 = vmatmul.msk.f32.gmra.mxu3 %vm1540_vm7, %v1538_v14  ;;  %v8494_v14 = vld [vmem:[#allocation81_spill] sm:$0xff] }
 0x739   : >> { %v1515_v8 = vpop.permute.xlu0 %1514  ;;  %v1531_v7 = vpop.permute.xlu1 %1530 }
 0x73a   : >> { %v1523_v25 = vmax.f32 %v1503_v15, %v1515_v8  ;;  %v8491_v15 = vld [vmem:[#allocation40_spill] sm:$0xff] }
 0x73b   : >> { %v8495_v8 = vld [vmem:[#allocation80_spill] sm:$0xff] }
 0x73c   : >> { %v1539_v4 = vmax.f32 %v1523_v25, %v1531_v7  ;;  %v8496_v25 = vld [vmem:[#allocation42_spill] sm:$0xff]  ;;  %v8497_v7 = vld [vmem:[#allocation43_spill] sm:$0xff] }
 0x73e   : >> { %4341 = vmatmul.msk.f32.gmra.mxu3 %vm1540_vm7, %v1539_v4 }
 0x7a9   : >> { %v1574_v0 = vpop.f32.mrf.mxu3 }
 0x7aa   : >> { %v1586_v1 = vmax.f32 %v1574_v0, 0.0 }
 0x7b1   : >> { %v1577_v3 = vpop.f32.mrf.mxu3 }
 0x7b2   : >> { %v1587_v11 = vmax.f32 %v1577_v3, 0.0 }
 0x7b4   : >> { %v4594_v24 = vpack.i.bf16 %v1586_v1, %v1587_v11 }
 0x7b6   : >> { %4595 = vrot.lane.b32.xlu1 %v4594_v24, %s4666_s29 }
 0x7b9   : >> { %v1580_v5 = vpop.f32.mrf.mxu3 }
 0x7ba   : >> { %v1588_v6 = vmax.f32 %v1580_v5, 0.0  ;;  %v8498_v5 = vld [vmem:[#allocation48_spill] sm:$0xff] }
 0x7be   : >> { %1752 = vperm.xlu1 %4541, %v8490_v2   ;;  %v8499_v2 = vld [vmem:[#allocation49_spill] sm:$0xff] }
 0x7c1   : >> { %v1583_v29 = vpop.f32.mrf.mxu3 }
 0x7c2   : >> { %v1589_v9 = vmax.f32 %v1583_v29, 0.0 }
 0x7c4   : >> { %1671 = vmatpush.msrb.mxu1 %v1589_v9  ;;  %v4589_v10 = vpack.i.bf16 %v1588_v6, %v1589_v9 }
 0x7c6   : >> { %4590 = vrot.lane.b32.xlu0 %v4589_v10, %s4665_s28  ;;  %4585 = vrot.lane.b32.xlu2 %v4589_v10, %s4666_s29 }
 0x7c7   : >> { %1672 = vmatpush.msrb.mxu1 %v1588_v6 }
 0x7c9   : >> { %1673 = vmatpush.msrb.mxu1 %v1587_v11 }
 0x7cb   : >> { %1674 = vmatpush.msrb.mxu1 %v1586_v1 }
 0x7cc   : >> { %4346 = vmatmul.msk.f32.vlgmr.msrb.gmra.mxu1 %vm1075_vm3, %v8491_v15 }
 0x7ce   : >> { %1747 = vperm.xlu0 %4563, %v8492_v12   ;;  %4600 = vrot.lane.b32.xlu2 %v4594_v24, %s4665_s28  ;;  %v8500_v12 = vld [vmem:[#allocation50_spill] sm:$0xff] }
 0x7d4   : >> { %4347 = vmatmul.msk.f32.gmra.mxu1 %vm1075_vm3, %v8493_v13 }
 0x7d6   : >> { %1762 = vperm.xlu0 %4563, %v8494_v14   ;;  %1757 = vperm.xlu2 %4542, %v8495_v8   ;;  %v8501_v14 = vld [vmem:[#allocation44_spill] sm:$0xff]  ;;  %v8502_v8 = vld [vmem:[#allocation51_spill] sm:$0xff] }
 0x7dc   : >> { %4348 = vmatmul.msk.f32.gmra.mxu1 %vm1075_vm3, %v8496_v25  ;;  %v8503_v25 = vld [vmem:[#allocation45_spill] sm:$0xff] }
 0x7e4   : >> { %4349 = vmatmul.msk.f32.gmra.mxu1 %vm1075_vm3, %v8497_v7  ;;  %v8504_v7 = vld [vmem:[#allocation46_spill] sm:$0xff] }
 0x820   : >> { %v4586_v4 = vpop.permute.xlu2 %4585 }
 0x821   : >> { %v4587_v0 = vunpack.i.l.bf16 %v4586_v4  ;;  %v4588_v3 = vunpack.i.h.bf16 %v4586_v4  ;;  %v8505_v4 = vld [vmem:[#allocation47_spill] sm:$0xff] }
 0x823   : >> { %1724 = vmatpush.msra.mxu2 %v4587_v0 }
 0x825   : >> { %1725 = vmatpush.msra.mxu2 %v4588_v3 }
 0x828   : >> { %v4596_v1 = vpop.permute.xlu1 %4595  ;;  %v4601_v9 = vpop.permute.xlu2 %4600 }
 0x829   : >> { %v4597_v11 = vunpack.i.l.bf16 %v4596_v1  ;;  %v4598_v24 = vunpack.i.h.bf16 %v4596_v1  ;;  %v4602_v15 = vunpack.i.l.bf16 %v4601_v9  ;;  %v4603_v13 = vunpack.i.h.bf16 %v4601_v9 }
 0x82b   : >> { %1726 = vmatpush.msra.mxu2 %v4597_v11 }
 0x82d   : >> { %1727 = vmatpush.msra.mxu2 %v4598_v24 }
 0x82e   : >> { %4350 = vmatmul.msk.f32.vlgmr.msra.gmra.mxu2 %vm1075_vm3, %v8498_v5 }
 0x836   : >> { %4351 = vmatmul.msk.f32.gmra.mxu2 %vm1075_vm3, %v8499_v2 }
 0x838   : >> { %v4591_v29 = vpop.permute.xlu0 %4590 }
 0x839   : >> { %v4592_v6 = vunpack.i.l.bf16 %v4591_v29  ;;  %v4593_v10 = vunpack.i.h.bf16 %v4591_v29 }
 0x83b   : >> { %1630 = vmatpush.msra.mxu0 %v4592_v6 }
 0x83d   : >> { %1631 = vmatpush.msra.mxu0 %v4593_v10 }
 0x83e   : >> { %4352 = vmatmul.msk.f32.gmra.mxu2 %vm1075_vm3, %v8500_v12  ;;  %v1753_v12 = vpop.permute.xlu1 %1752 }
 0x83f   : >> { %1632 = vmatpush.msra.mxu0 %v4602_v15 }
 0x840   : >> { %v1748_v2 = vpop.permute.xlu0 %1747 }
 0x841   : >> { %1633 = vmatpush.msra.mxu0 %v4603_v13 }
 0x842   : >> { %4342 = vmatmul.msk.f32.vlgmr.msra.gmra.mxu0 %vm1075_vm3, %v8501_v14 }
 0x846   : >> { %4353 = vmatmul.msk.f32.gmra.mxu2 %vm1075_vm3, %v8502_v8 }
 0x849   : >> { %v1676_v0 = vpop.f32.mrf.mxu1 }
 0x84a   : >> { %4343 = vmatmul.msk.f32.gmra.mxu0 %vm1075_vm3, %v8503_v25 }
 0x851   : >> { %v1679_v24 = vpop.f32.mrf.mxu1 }
 0x852   : >> { %4344 = vmatmul.msk.f32.gmra.mxu0 %vm1075_vm3, %v8504_v7 }
 0x859   : >> { %v1682_v13 = vpop.f32.mrf.mxu1 }
 0x85a   : >> { %4345 = vmatmul.msk.f32.gmra.mxu0 %vm1075_vm3, %v8505_v4 }
 0x8b1   : >> { %v1729_v3 = vpop.f32.mrf.mxu2 }
 0x8b9   : >> { %v1732_v29 = vpop.f32.mrf.mxu2 }
 0x8bf   : >> { %v1635_v1 = vpop.f32.mrf.mxu0 }
 0x8c0   : >> { %v1677_v11 = vadd.f32 %v1676_v0, %v1635_v1  ;;  %v1758_v0 = vpop.permute.xlu2 %1757  ;;  %v1685_v1 = vpop.f32.mrf.mxu1 }
 0x8c1   : >> { %v1735_v8 = vpop.f32.mrf.mxu2 }
 0x8c2   : >> { %v1741_v5 = vadd.f32 %v1729_v3, %v1677_v11 }
 0x8c4   : >> { %v1765_v6 = vadd.f32 %v1748_v2, %v1741_v5 }
 0x8c6   : >> { %1789 = vrot.lane.b32.xlu2 %v1765_v6, %s4666_s29  ;;  %1773 = vrot.lane.b32.xlu1 %v1765_v6, %s4665_s28 }
 0x8c7   : >> { %v1638_v9 = vpop.f32.mrf.mxu0 }
 0x8c8   : >> { %v1680_v10 = vadd.f32 %v1679_v24, %v1638_v9 }
 0x8c9   : >> { %v1738_v24 = vpop.f32.mrf.mxu2 }
 0x8ca   : >> { %v1742_v15 = vadd.f32 %v1732_v29, %v1680_v10  ;;  %v1763_v29 = vpop.permute.xlu0 %1762 }
 0x8cc   : >> { %v1766_v14 = vadd.f32 %v1753_v12, %v1742_v15 }
 0x8ce   : >> { %1775 = vrot.lane.b32.xlu0 %v1766_v14, %s4665_s28  ;;  %1791 = vrot.lane.b32.xlu1 %v1766_v14, %s4666_s29 }
 0x8cf   : >> { %v1641_v25 = vpop.f32.mrf.mxu0 }
 0x8d0   : >> { %v1683_v7 = vadd.f32 %v1682_v13, %v1641_v25 }
 0x8d2   : >> { %v1743_v4 = vadd.f32 %v1735_v8, %v1683_v7 }
 0x8d4   : >> { %v1767_v3 = vadd.f32 %v1758_v0, %v1743_v4 }
 0x8d6   : >> { %1793 = vrot.lane.b32.xlu0 %v1767_v3, %s4666_s29  ;;  %1777 = vrot.lane.b32.xlu2 %v1767_v3, %s4665_s28 }
 0x8d7   : >> { %v1644_v11 = vpop.f32.mrf.mxu0 }
 0x8d8   : >> { %v1686_v5 = vadd.f32 %v1685_v1, %v1644_v11 }
 0x8da   : >> { %v1744_v2 = vadd.f32 %v1738_v24, %v1686_v5 }
 0x8dc   : >> { %v1768_v9 = vadd.f32 %v1763_v29, %v1744_v2 }
 0x8de   : >> { %1795 = vrot.lane.b32.xlu2 %v1768_v9, %s4666_s29  ;;  %1779 = vrot.lane.b32.xlu1 %v1768_v9, %s4665_s28 }
 0x920   : >> { %v1790_v12 = vpop.permute.xlu2 %1789 }
 0x930   : >> { %v1778_v0 = vpop.permute.xlu2 %1777 }
 0x931   : >> { %v1787_v11 = vmax.f32 %v1767_v3, %v1778_v0 }
 0x938   : >> { %v1774_v10 = vpop.permute.xlu1 %1773 }
 0x939   : >> { %v1785_v15 = vmax.f32 %v1765_v6, %v1774_v10  ;;  %v1796_v6 = vpop.permute.xlu2 %1795 }
 0x93b   : >> { %v1801_v13 = vmax.f32 %v1785_v15, %v1790_v12 }
 0x93d   : >> { %4355 = vmatmul.msk.f32.vlgmr.msrb.gmra.mxu3 %vm1805_vm8, %v1801_v13 }
 0x940   : >> { %v1776_v8 = vpop.permute.xlu0 %1775  ;;  %v1792_v7 = vpop.permute.xlu1 %1791 }
 0x941   : >> { %v1786_v25 = vmax.f32 %v1766_v14, %v1776_v8 }
 0x943   : >> { %v1802_v4 = vmax.f32 %v1786_v25, %v1792_v7  ;;  %v8506_v25 = vld [vmem:[#allocation84_spill] sm:$0xff] }
 0x945   : >> { %4356 = vmatmul.msk.f32.gmra.mxu3 %vm1805_vm8, %v1802_v4 }
 0x948   : >> { %v1794_v1 = vpop.permute.xlu0 %1793 }
 0x949   : >> { %v1803_v24 = vmax.f32 %v1787_v11, %v1794_v1  ;;  %v8508_v1 = vld [vmem:[#allocation85_spill] sm:$0xff] }
 0x94a   : >> { %v8509_v11 = vld [vmem:[#allocation53_spill] sm:$0xff] }
 0x94d   : >> { %4357 = vmatmul.msk.f32.gmra.mxu3 %vm1805_vm8, %v1803_v24  ;;  %v8510_v24 = vld [vmem:[#allocation82_spill] sm:$0xff] }
 0x950   : >> { %v1780_v5 = vpop.permute.xlu1 %1779 }
 0x951   : >> { %v1788_v2 = vmax.f32 %v1768_v9, %v1780_v5  ;;  %v8507_v9 = vld [vmem:[#allocation52_spill] sm:$0xff]  ;;  %v8511_v5 = vld [vmem:[#allocation83_spill] sm:$0xff] }
 0x953   : >> { %v1804_v29 = vmax.f32 %v1788_v2, %v1796_v6  ;;  %v8512_v2 = vld [vmem:[#allocation54_spill] sm:$0xff]  ;;  %v8513_v6 = vld [vmem:[#allocation55_spill] sm:$0xff] }
 0x955   : >> { %4358 = vmatmul.msk.f32.gmra.mxu3 %vm1805_vm8, %v1804_v29 }
 0x9c0   : >> { %v1838_v10 = vpop.f32.mrf.mxu3 }
 0x9c1   : >> { %v1850_v12 = vmax.f32 %v1838_v10, 0.0 }
 0x9c8   : >> { %v1841_v15 = vpop.f32.mrf.mxu3 }
 0x9c9   : >> { %v1851_v14 = vmax.f32 %v1841_v15, 0.0 }
 0x9cb   : >> { %v4614_v13 = vpack.i.bf16 %v1850_v12, %v1851_v14 }
 0x9cd   : >> { %4615 = vrot.lane.b32.xlu2 %v4614_v13, %s4666_s29 }
 0x9d0   : >> { %v1844_v8 = vpop.f32.mrf.mxu3 }
 0x9d1   : >> { %v1852_v7 = vmax.f32 %v1844_v8, 0.0 }
 0x9d5   : >> { %2021 = vperm.xlu2 %4542, %v8506_v25  }
 0x9d8   : >> { %v1847_v3 = vpop.f32.mrf.mxu3 }
 0x9d9   : >> { %v1853_v4 = vmax.f32 %v1847_v3, 0.0 }
 0x9db   : >> { %1935 = vmatpush.msra.mxu1 %v1853_v4  ;;  %v4609_v0 = vpack.i.bf16 %v1852_v7, %v1853_v4 }
 0x9dd   : >> { %4610 = vrot.lane.b32.xlu1 %v4609_v0, %s4665_s28  ;;  %4605 = vrot.lane.b32.xlu0 %v4609_v0, %s4666_s29  ;;  %v8514_v0 = vld [vmem:[#allocation60_spill] sm:$0xff] }
 0x9de   : >> { %1936 = vmatpush.msra.mxu1 %v1852_v7 }
 0x9e0   : >> { %1937 = vmatpush.msra.mxu1 %v1851_v14 }
 0x9e2   : >> { %1938 = vmatpush.msra.mxu1 %v1850_v12 }
 0x9e3   : >> { %4363 = vmatmul.msk.f32.vlgmr.msra.gmra.mxu1 %vm1075_vm3, %v8507_v9 }
 0x9e5   : >> { %2026 = vperm.xlu1 %4541, %v8508_v1   ;;  %4620 = vrot.lane.b32.xlu0 %v4614_v13, %s4665_s28  ;;  %v8515_v1 = vld [vmem:[#allocation56_spill] sm:$0xff] }
 0x9eb   : >> { %4364 = vmatmul.msk.f32.gmra.mxu1 %vm1075_vm3, %v8509_v11  ;;  %v8516_v11 = vld [vmem:[#allocation61_spill] sm:$0xff] }
 0x9ed   : >> { %2011 = vperm.xlu1 %4541, %v8510_v24   ;;  %2016 = vperm.xlu0 %4563, %v8511_v5   ;;  %v8517_v24 = vld [vmem:[#allocation57_spill] sm:$0xff]  ;;  %v8518_v5 = vld [vmem:[#allocation62_spill] sm:$0xff] }
 0x9f3   : >> { %4365 = vmatmul.msk.f32.gmra.mxu1 %vm1075_vm3, %v8512_v2  ;;  %v8519_v2 = vld [vmem:[#allocation58_spill] sm:$0xff] }
 0x9fb   : >> { %4366 = vmatmul.msk.f32.gmra.mxu1 %vm1075_vm3, %v8513_v6  ;;  %v8520_v6 = vld [vmem:[#allocation63_spill] sm:$0xff] }
 0xa27   : >> { %v4616_v14 = vpop.permute.xlu2 %4615 }
 0xa28   : >> { %v4617_v25 = vunpack.i.l.bf16 %v4616_v14  ;;  %v4618_v3 = vunpack.i.h.bf16 %v4616_v14 }
 0xa4f   : >> { %v4611_v29 = vpop.permute.xlu1 %4610  ;;  %v4606_v10 = vpop.permute.xlu0 %4605 }
 0xa50   : >> { %v4612_v15 = vunpack.i.l.bf16 %v4611_v29  ;;  %v4607_v12 = vunpack.i.l.bf16 %v4606_v10  ;;  %v4613_v8 = vunpack.i.h.bf16 %v4611_v29  ;;  %v4608_v13 = vunpack.i.h.bf16 %v4606_v10  ;;  %v8521_v29 = vld [vmem:[#allocation59_spill] sm:$0xff] }
 0xa52   : >> { %1894 = vmatpush.msrb.mxu0 %v4612_v15  ;;  %1988 = vmatpush.msrb.mxu2 %v4607_v12 }
 0xa54   : >> { %1895 = vmatpush.msrb.mxu0 %v4613_v8  ;;  %1989 = vmatpush.msrb.mxu2 %v4608_v13 }
 0xa56   : >> { %1990 = vmatpush.msrb.mxu2 %v4617_v25 }
 0xa57   : >> { %v4621_v7 = vpop.permute.xlu0 %4620  ;;  %v2027_v15 = vpop.permute.xlu1 %2026 }
 0xa58   : >> { %v4622_v4 = vunpack.i.l.bf16 %v4621_v7  ;;  %1991 = vmatpush.msrb.mxu2 %v4618_v3  ;;  %v4623_v9 = vunpack.i.h.bf16 %v4621_v7 }
 0xa59   : >> { %4367 = vmatmul.msk.f32.vlgmr.msrb.gmra.mxu2 %vm1075_vm3, %v8514_v0 }
 0xa5a   : >> { %1896 = vmatpush.msrb.mxu0 %v4622_v4 }
 0xa5c   : >> { %1897 = vmatpush.msrb.mxu0 %v4623_v9 }
 0xa5d   : >> { %4359 = vmatmul.msk.f32.vlgmr.msrb.gmra.mxu0 %vm1075_vm3, %v8515_v1 }
 0xa5f   : >> { %v2012_v4 = vpop.permute.xlu1 %2011 }
 0xa60   : >> { %v1940_v10 = vpop.f32.mrf.mxu1 }
 0xa61   : >> { %4368 = vmatmul.msk.f32.gmra.mxu2 %vm1075_vm3, %v8516_v11  ;;  %v2017_v11 = vpop.permute.xlu0 %2016 }
 0xa65   : >> { %4360 = vmatmul.msk.f32.gmra.mxu0 %vm1075_vm3, %v8517_v24 }
 0xa68   : >> { %v1943_v8 = vpop.f32.mrf.mxu1 }
 0xa69   : >> { %4369 = vmatmul.msk.f32.gmra.mxu2 %vm1075_vm3, %v8518_v5 }
 0xa6d   : >> { %4361 = vmatmul.msk.f32.gmra.mxu0 %vm1075_vm3, %v8519_v2 }
 0xa70   : >> { %v1946_v24 = vpop.f32.mrf.mxu1 }
 0xa71   : >> { %4370 = vmatmul.msk.f32.gmra.mxu2 %vm1075_vm3, %v8520_v6 }
 0xa75   : >> { %4362 = vmatmul.msk.f32.gmra.mxu0 %vm1075_vm3, %v8521_v29 }
 0xa78   : >> { %v1949_v19 = vpop.f32.mrf.mxu1 }
 0xada   : >> { %v1899_v12 = vpop.f32.mrf.mxu0 }
 0xadb   : >> { %v1941_v13 = vadd.f32 %v1940_v10, %v1899_v12 }
 0xadc   : >> { %v1993_v14 = vpop.f32.mrf.mxu2 }
 0xadd   : >> { %v2005_v25 = vadd.f32 %v1993_v14, %v1941_v13 }
 0xadf   : >> { %v2029_v9 = vadd.f32 %v2012_v4, %v2005_v25 }
 0xae1   : >> { %v2033_v2 = vmax.f32 %v2029_v9, 0.0 }
 0xae2   : >> { %v1902_v3 = vpop.f32.mrf.mxu0 }
 0xae3   : >> { %v1944_v7 = vadd.f32 %v1943_v8, %v1902_v3  ;;  %v2022_v8 = vpop.permute.xlu2 %2021 }
 0xae4   : >> { %v1996_v0 = vpop.f32.mrf.mxu2 }
 0xae5   : >> { %v2006_v1 = vadd.f32 %v1996_v0, %v1944_v7 }
 0xae7   : >> { %v2030_v5 = vadd.f32 %v2017_v11, %v2006_v1 }
 0xae9   : >> { %v2034_v6 = vmax.f32 %v2030_v5, 0.0 }
 0xaea   : >> { %v1905_v16 = vpop.f32.mrf.mxu0 }
 0xaeb   : >> { %v4629_v29 = vpack.i.bf16 %v2033_v2, %v2034_v6  ;;  %v1947_v18 = vadd.f32 %v1946_v24, %v1905_v16  ;;  %v8522_v16 = vld [vmem:[#allocation64_spill] sm:$0xff] }
 0xaec   : >> { %v1999_v17 = vpop.f32.mrf.mxu2 }
 0xaed   : >> { %4630 = vrot.lane.b32.xlu0 %v4629_v29, %s4665_s28  ;;  %v2007_v10 = vadd.f32 %v1999_v17, %v1947_v18  ;;  %v8523_v17 = vld [vmem:[#allocation65_spill] sm:$0xff]  ;;  %v8524_v18 = vld [vmem:[#allocation66_spill] sm:$0xff] }
 0xaef   : >> { %v2031_v3 = vadd.f32 %v2022_v8, %v2007_v10 }
 0xaf1   : >> { %v2035_v4 = vmax.f32 %v2031_v3, 0.0  ;;  %v8528_v3 = vld [vmem:[#allocation70_spill] sm:$0xff] }
 0xaf2   : >> { %v1908_v12 = vpop.f32.mrf.mxu0 }
 0xaf3   : >> { %v1950_v14 = vadd.f32 %v1949_v19, %v1908_v12  ;;  %v8525_v19 = vld [vmem:[#allocation67_spill] sm:$0xff] }
 0xaf4   : >> { %v2002_v13 = vpop.f32.mrf.mxu2 }
 0xaf5   : >> { %v2008_v25 = vadd.f32 %v2002_v13, %v1950_v14 }
 0xaf7   : >> { %v2032_v7 = vadd.f32 %v2027_v15, %v2008_v25 }
 0xaf9   : >> { %v2036_v0 = vmax.f32 %v2032_v7, 0.0  ;;  %v8529_v7 = vld [vmem:[#allocation72_spill] sm:$0xff] }
 0xafb   : >> { %2118 = vmatpush.msra.mxu0 %v2036_v0  ;;  %v4634_v9 = vpack.i.bf16 %v2035_v4, %v2036_v0  ;;  %v8531_v0 = vld [vmem:[#allocation73_spill] sm:$0xff] }
 0xafd   : >> { %4635 = vrot.lane.b32.xlu1 %v4634_v9, %s4666_s29  ;;  %4625 = vrot.lane.b32.xlu2 %v4634_v9, %s4665_s28  ;;  %v8532_v9 = vld [vmem:[#allocation74_spill] sm:$0xff] }
 0xafe   : >> { %2119 = vmatpush.msra.mxu0 %v2035_v4  ;;  %v8530_v4 = vld [vmem:[#allocation71_spill] sm:$0xff] }
 0xb00   : >> { %2120 = vmatpush.msra.mxu0 %v2034_v6  ;;  %v8526_v6 = vld [vmem:[#allocation68_spill] sm:$0xff] }
 0xb02   : >> { %2121 = vmatpush.msra.mxu0 %v2033_v2 }
 0xb03   : >> { %4375 = vmatmul.msk.f32.vlgmr.msra.gmra.mxu0 %vm1075_vm3, %v8522_v16  ;;  %v8533_v16 = vld [vmem:[#allocation75_spill] sm:$0xff] }
 0xb05   : >> { %4640 = vrot.lane.b32.xlu2 %v4629_v29, %s4666_s29  ;;  %v8527_v29 = vld [vmem:[#allocation69_spill] sm:$0xff] }
 0xb0b   : >> { %4376 = vmatmul.msk.f32.gmra.mxu0 %vm1075_vm3, %v8523_v17 }
 0xb13   : >> { %4377 = vmatmul.msk.f32.gmra.mxu0 %vm1075_vm3, %v8524_v18 }
 0xb1b   : >> { %4378 = vmatmul.msk.f32.gmra.mxu0 %vm1075_vm3, %v8525_v19 }
 0xb57   : >> { %v4626_v15 = vpop.permute.xlu2 %4625 }
 0xb58   : >> { %v4627_v1 = vunpack.i.l.bf16 %v4626_v15  ;;  %v4628_v11 = vunpack.i.h.bf16 %v4626_v15 }
 0xb5a   : >> { %2077 = vmatpush.msra.mxu3 %v4627_v1 }
 0xb5c   : >> { %2078 = vmatpush.msra.mxu3 %v4628_v11 }
 0xb5f   : >> { %v4631_v24 = vpop.permute.xlu0 %4630  ;;  %v4641_v14 = vpop.permute.xlu2 %4640 }
 0xb60   : >> { %v4632_v5 = vunpack.i.l.bf16 %v4631_v24  ;;  %v4633_v2 = vunpack.i.h.bf16 %v4631_v24  ;;  %v4642_v13 = vunpack.i.l.bf16 %v4641_v14  ;;  %v4643_v25 = vunpack.i.h.bf16 %v4641_v14 }
 0xb62   : >> { %2079 = vmatpush.msra.mxu3 %v4632_v5  ;;  %v8534_v5 = vld [vmem:[#allocation86_spill] sm:$0xff] }
 0xb64   : >> { %2080 = vmatpush.msra.mxu3 %v4633_v2 }
 0xb65   : >> { %4371 = vmatmul.msk.f32.vlgmr.msra.gmra.mxu3 %vm1075_vm3, %v8526_v6 }
 0xb6d   : >> { %4372 = vmatmul.msk.f32.gmra.mxu3 %vm1075_vm3, %v8527_v29 }
 0xb6f   : >> { %v4636_v10 = vpop.permute.xlu1 %4635 }
 0xb70   : >> { %v4637_v12 = vunpack.i.l.bf16 %v4636_v10  ;;  %v4638_v8 = vunpack.i.h.bf16 %v4636_v10 }
 0xb72   : >> { %2171 = vmatpush.msrb.mxu1 %v4637_v12 }
 0xb74   : >> { %2172 = vmatpush.msrb.mxu1 %v4638_v8 }
 0xb75   : >> { %4373 = vmatmul.msk.f32.gmra.mxu3 %vm1075_vm3, %v8528_v3 }
 0xb76   : >> { %2173 = vmatpush.msrb.mxu1 %v4642_v13  ;;  %v8535_v13 = vld [vmem:[#allocation87_spill] sm:$0xff] }
 0xb78   : >> { %2174 = vmatpush.msrb.mxu1 %v4643_v25 }
 0xb79   : >> { %4379 = vmatmul.msk.f32.vlgmr.msrb.gmra.mxu1 %vm1075_vm3, %v8529_v7 }
 0xb7d   : >> { %4374 = vmatmul.msk.f32.gmra.mxu3 %vm1075_vm3, %v8530_v4 }
 0xb80   : >> { %v2123_v17 = vpop.f32.mrf.mxu0 }
 0xb81   : >> { %4380 = vmatmul.msk.f32.gmra.mxu1 %vm1075_vm3, %v8531_v0 }
 0xb88   : >> { %v2126_v15 = vpop.f32.mrf.mxu0 }
 0xb89   : >> { %4381 = vmatmul.msk.f32.gmra.mxu1 %vm1075_vm3, %v8532_v9 }
 0xb90   : >> { %v2129_v10 = vpop.f32.mrf.mxu0 }
 0xb91   : >> { %4382 = vmatmul.msk.f32.gmra.mxu1 %vm1075_vm3, %v8533_v16 }
 0xb98   : >> { %v2132_v16 = vpop.f32.mrf.mxu0 }
 0xbe8   : >> { %v2082_v18 = vpop.f32.mrf.mxu3 }
 0xbe9   : >> { %v2124_v19 = vadd.f32 %v2123_v17, %v2082_v18  ;;  %v8536_v17 = vld [vmem:[#allocation88_spill] sm:$0xff] }
 0xbf0   : >> { %v2085_v1 = vpop.f32.mrf.mxu3 }
 0xbf1   : >> { %v2127_v29 = vadd.f32 %v2126_v15, %v2085_v1 }
 0xbf6   : >> { %v2176_v11 = vpop.f32.mrf.mxu1 }
 0xbf7   : >> { %v2188_v24 = vadd.f32 %v2176_v11, %v2124_v19 }
 0xbf8   : >> { %v2088_v14 = vpop.f32.mrf.mxu3 }
 0xbf9   : >> { %v2192_v2 = vadd.f32 %v2188_v24, %v8534_v5  ;;  %v2130_v7 = vadd.f32 %v2129_v10, %v2088_v14  ;;  %v8537_v24 = vld [vmem:[#allocation89_spill] sm:$0xff]  ;;  %v8539_v10 = vld [vmem:[#allocation348_spill] sm:$0xff] (%p803_p5) }
 0xbfa   : > { %4014 = vst [vmem:[#allocation1 + $0x20] ss:$2 sm:$0xff] (%p803_p5), %v8539_v10  ;;  %v8541_v14 = vld [vmem:[#allocation220_spill] sm:$0xff] (%p803_p5) }
 0xbfb   : >> { %v2196_v6 = vmax.f32 %v2192_v2, 0.0 }
 0xbfd   : >> { %2203 = vst.msk [vmem:[%s2201_s30] sm:$0xff] %vm2202_vm9, %v2196_v6  ;;  %v4668_v6 = vmov (%p803_p5), 0  }
 0xbfe   : >> { %v2179_v12 = vpop.f32.mrf.mxu1  ;;  %4646 = vset.pattern.permute.xlu2 (%p803_p5), %v4668_v6  ;;  %4645 = vset.pattern.permute.xlu1 (%p803_p5), %v4668_v6 }
 0xbff   : >> { %v2189_v8 = vadd.f32 %v2179_v12, %v2127_v29  ;;  %4644 = vset.pattern.permute.xlu0 (%p803_p5), %v4668_v6  ;;  %v8538_v29 = vld [vmem:[#allocation224_spill] sm:$0xff] (%p803_p5)  ;;  %v8540_v12 = vld [vmem:[#allocation222_spill] sm:$0xff] (%p803_p5) }
 0xc00   : >> { %v2091_v9 = vpop.f32.mrf.mxu3  ;;  %2261 = vperm.xlu2 (%p803_p5), %4646, %v8538_v29   ;;  %2251 = vperm.xlu1 (%p803_p5), %4645, %v8540_v12  }
 0xc01   : >> { %v2193_v3 = vadd.f32 %v2189_v8, %v8535_v13  ;;  %v2133_v15 = vadd.f32 %v2132_v16, %v2091_v9  ;;  %2241 = vperm.xlu0 (%p803_p5), %4644, %v8541_v14   ;;  %v8542_v8 = vld [vmem:[#allocation225_spill] sm:$0xff] (%p803_p5)  ;;  %v8584_v16 = vld [vmem:[#allocation267_spill] sm:$0xff] (%p803_p5) }
 0xc03   : >> { %v2197_v25 = vmax.f32 %v2193_v3, 0.0  ;;  %v8581_v3 = vld [vmem:[#allocation264_spill] sm:$0xff] (%p803_p5) }
 0xc05   : >> { %2204 = vst.msk [vmem:[%s2201_s30 + $0x8] sm:$0xff] %vm2202_vm9, %v2197_v25  ;;  %v8582_v25 = vld [vmem:[#allocation263_spill] sm:$0xff] (%p803_p5) }
 0xc06   : >> { %v2182_v4 = vpop.f32.mrf.mxu1 }
 0xc07   : >> { %v2190_v0 = vadd.f32 %v2182_v4, %v2130_v7  ;;  %v8583_v7 = vld [vmem:[#allocation262_spill] sm:$0xff] (%p803_p5) }
 0xc08   : > { %2266 = vperm.xlu2 (%p803_p5), %4646, %v8542_v8   ;;  %2256 = vperm.xlu1 (%p803_p5), %4645, %v8543_v20  }
 0xc09   : >> { %v2194_v18 = vadd.f32 %v2190_v0, %v8536_v17  ;;  %2246 = vperm.xlu0 (%p803_p5), %4644, %v8544_v21   ;;  %v8585_v17 = vld [vmem:[#allocation266_spill] sm:$0xff] (%p803_p5) }
 0xc0b   : >> { %v2198_v19 = vmax.f32 %v2194_v18, 0.0  ;;  %v8586_v18 = vld [vmem:[#allocation265_spill] sm:$0xff] (%p803_p5) }
 0xc0d   : >> { %2205 = vst.msk [vmem:[%s2201_s30 + $0x10] sm:$0xff] %vm2202_vm9, %v2198_v19 }
 0xc0e   : >> { %v2185_v1 = vpop.f32.mrf.mxu1 }
 0xc0f   : >> { %v2191_v11 = vadd.f32 %v2185_v1, %v2133_v15 }
 0xc10   : > { %2281 = vperm.xlu2 (%p803_p5), %4646, %v8545_v22   ;;  %2276 = vperm.xlu1 (%p803_p5), %4645, %v8546_v23  }
 0xc11   : >> { %v2195_v5 = vadd.f32 %v2191_v11, %v8537_v24  ;;  %805 = sbr.rel (!%p803_p5) target bundleno = 358 (0x166), region = 110  ;;  %2271 = vperm.xlu0 (%p803_p5), %4644, %v8547_v26  }
 0xc13   : >> { %v2199_v2 = vmax.f32 %v2195_v5, 0.0  ;;  %v8587_v5 = vld [vmem:[#allocation268_spill] sm:$0xff] (%p803_p5) }
 0xc15   : >> { %2206 = vst.msk [vmem:[%s2201_s30 + $0x18] sm:$0xff] %vm2202_vm9, %v2199_v2 }
 0xc18   : > { %2296 = vperm.xlu2 %4646, %v8548_v27   ;;  %2291 = vperm.xlu1 %4645, %v8549_v28  }
 0xc19   : > { %2286 = vperm.xlu0 %4644, %v8550_v30  }
 0xc1c   : > { %v2208_v11 = vld [vmem:[#allocation2 + $0x8] sm:$0xff]  ;;  %v2207_v24 = vld [vmem:[#allocation2] sm:$0xff]  ;;  %v2209_v10 = vld [vmem:[#allocation2 + $0x10] sm:$0xff] }
 0xc1d   : > { %v2211_v12 = vld [vmem:[#allocation2 + $0x20] sm:$0xff]  ;;  %v2212_v14 = vld [vmem:[#allocation2 + $0x28] sm:$0xff]  ;;  %v2213_v23 = vld [vmem:[#allocation2 + $0x30] sm:$0xff] }
 0xc1e   : > { %v2216_v22 = vld [vmem:[#allocation2 + $0x48] sm:$0xff]  ;;  %v2215_v26 = vld [vmem:[#allocation2 + $0x40] sm:$0xff] }
 0xc20   : > { %2311 = vperm.xlu2 %4646, %v8551_v31   ;;  %2306 = vperm.xlu1 %4645, %v8552_v32   ;;  %v2217_v31 = vld [vmem:[#allocation2 + $0x50] sm:$0xff]  ;;  %v2210_v32 = vld [vmem:[#allocation2 + $0x18] sm:$0xff] }
 0xc21   : > { %2301 = vperm.xlu0 %4644, %v8553_v33   ;;  %v2214_v33 = vld [vmem:[#allocation2 + $0x38] sm:$0xff] }
 0xc28   : > { %2326 = vperm.xlu2 %4646, %v8554_v34   ;;  %2321 = vperm.xlu1 %4645, %v8555_v35  }
 0xc29   : > { %2316 = vperm.xlu0 %4644, %v8556_v36  }
 0xc30   : > { %2341 = vperm.xlu2 %4646, %v8557_v37   ;;  %2336 = vperm.xlu1 %4645, %v8558_v38   ;;  %v2218_v37 = vld [vmem:[#allocation2 + $0x58] sm:$0xff]  ;;  %v2219_v38 = vld [vmem:[#allocation2 + $0x60] sm:$0xff] }
 0xc31   : > { %2331 = vperm.xlu0 %4644, %v8559_v39   ;;  %v2220_v39 = vld [vmem:[#allocation2 + $0x68] sm:$0xff] }
 0xc38   : > { %2356 = vperm.xlu2 %4646, %v8560_v40   ;;  %2351 = vperm.xlu1 %4645, %v8561_v41  }
 0xc39   : > { %2346 = vperm.xlu0 %4644, %v8562_v42  }
 0xc40   : > { %2371 = vperm.xlu2 %4646, %v8563_v43   ;;  %2366 = vperm.xlu1 %4645, %v8564_v44   ;;  %v2224_v43 = vld [vmem:[#allocation2 + $0x88] sm:$0xff]  ;;  %v2221_v44 = vld [vmem:[#allocation2 + $0x70] sm:$0xff] }
 0xc41   : > { %2361 = vperm.xlu0 %4644, %v8565_v46   ;;  %v2223_v46 = vld [vmem:[#allocation2 + $0x80] sm:$0xff] }
 0xc48   : > { %2386 = vperm.xlu2 %4646, %v8566_v47   ;;  %2381 = vperm.xlu1 %4645, %v8567_v48  }
 0xc49   : > { %2376 = vperm.xlu0 %4644, %v8568_v49  }
 0xc50   : > { %2401 = vperm.xlu2 %4646, %v8569_v50   ;;  %2396 = vperm.xlu1 %4645, %v8570_v51   ;;  %v2227_v50 = vld [vmem:[#allocation2 + $0xa0] sm:$0xff]  ;;  %v2222_v51 = vld [vmem:[#allocation2 + $0x78] sm:$0xff] }
 0xc51   : > { %2391 = vperm.xlu0 %4644, %v8571_v52   ;;  %v2225_v52 = vld [vmem:[#allocation2 + $0x90] sm:$0xff] }
 0xc58   : > { %2416 = vperm.xlu2 %4646, %v8572_v53   ;;  %2411 = vperm.xlu1 %4645, %v8573_v54  }
 0xc59   : > { %2406 = vperm.xlu0 %4644, %v8574_v55  }
 0xc5a   : > { %v7017_v56 = vpop.permute.xlu2 %2261 }
 0xc60   : > { %2431 = vperm.xlu2 %4646, %v8575_v57   ;;  %2426 = vperm.xlu1 %4645, %v8576_v58   ;;  %v2229_v57 = vld [vmem:[#allocation2 + $0xb0] sm:$0xff]  ;;  %v2228_v58 = vld [vmem:[#allocation2 + $0xa8] sm:$0xff] }
 0xc61   : > { %2421 = vperm.xlu0 %4644, %v8577_v59   ;;  %v2226_v59 = vld [vmem:[#allocation2 + $0x98] sm:$0xff] }
 0xc62   : > { %v7022_v60 = vpop.permute.xlu2 %2266 }
 0xc68   : > { %2446 = vperm.xlu2 %4646, %v8578_v61   ;;  %2441 = vperm.xlu1 %4645, %v8579_v62  }
 0xc69   : > { %2436 = vperm.xlu0 %4644, %v8580_v63  }
 0xc6a   : > { %v7027_v13 = vpop.permute.xlu2 %2281 }
 0xc70   : > { %2461 = vperm.xlu2 %4646, %v8581_v3   ;;  %2456 = vperm.xlu1 %4645, %v8582_v25   ;;  %v2230_v3 = vld [vmem:[#allocation2 + $0xb8] sm:$0xff]  ;;  %v2231_v25 = vld [vmem:[#allocation2 + $0xc0] sm:$0xff] }
 0xc71   : > { %2451 = vperm.xlu0 %4644, %v8583_v7   ;;  %v2232_v7 = vld [vmem:[#allocation2 + $0xc8] sm:$0xff] }
 0xc72   : > { %v7032_v4 = vpop.permute.xlu2 %2296  ;;  %v7034_v0 = vpop.permute.xlu1 %2251 }
 0xc73   : > { %v7036_v9 = vpop.permute.xlu0 %2241 }
 0xc78   : > { %2476 = vperm.xlu2 %4646, %v8584_v16   ;;  %2471 = vperm.xlu1 %4645, %v8585_v17  }
 0xc79   : > { %2466 = vperm.xlu0 %4644, %v8586_v18  }
 0xc7a   : > { %v7041_v19 = vpop.permute.xlu2 %2311  ;;  %v7043_v15 = vpop.permute.xlu1 %2256 }
 0xc7b   : > { %v7045_v1 = vpop.permute.xlu0 %2246 }
 0xc80   : > { %2915 = vperm.xlu2 %4646, %v2208_v11   ;;  %2912 = vperm.xlu1 %4645, %v2207_v24   ;;  %v2236_v11 = vld [vmem:[#allocation2 + $0xe8] sm:$0xff]  ;;  %v2233_v24 = vld [vmem:[#allocation2 + $0xd0] sm:$0xff] }
 0xc81   : > { %2481 = vperm.xlu0 %4644, %v8587_v5   ;;  %v2235_v5 = vld [vmem:[#allocation2 + $0xe0] sm:$0xff] }
 0xc82   : > { %v7048_v2 = vpop.permute.xlu2 %2326  ;;  %v7050_v6 = vpop.permute.xlu1 %2276 }
 0xc83   : > { %8588 = vst [vmem:[#allocation3_spill] sm:$0xff] %v7048_v2  ;;  %v7052_v29 = vpop.permute.xlu0 %2271 }
 0xc88   : > { %2918 = vperm.xlu2 %4646, %v2209_v10   ;;  %2927 = vperm.xlu1 %4645, %v2212_v14  }
 0xc89   : > { %2924 = vperm.xlu0 %4644, %v2211_v12  }
 0xc8a   : > { %v7054_v8 = vpop.permute.xlu2 %2341  ;;  %v7056_v20 = vpop.permute.xlu1 %2291 }
 0xc8b   : > { %8589 = vst [vmem:[#allocation4_spill] sm:$0xff] %v7054_v8  ;;  %v7058_v21 = vpop.permute.xlu0 %2286 }
 0xc90   : > { %2939 = vperm.xlu2 %4646, %v2216_v22   ;;  %2936 = vperm.xlu1 %4645, %v2215_v26   ;;  %v2238_v22 = vld [vmem:[#allocation2 + $0xf8] sm:$0xff]  ;;  %v2237_v26 = vld [vmem:[#allocation2 + $0xf0] sm:$0xff] }
 0xc91   : > { %2930 = vperm.xlu0 %4644, %v2213_v23   ;;  %v2234_v23 = vld [vmem:[#allocation2 + $0xd8] sm:$0xff] }
 0xc92   : > { %v7060_v27 = vpop.permute.xlu2 %2356  ;;  %v7062_v28 = vpop.permute.xlu1 %2306 }
 0xc93   : > { %8590 = vst [vmem:[#allocation5_spill] sm:$0xff] %v7060_v27  ;;  %v7064_v30 = vpop.permute.xlu0 %2301 }
 0xc98   : > { %2942 = vperm.xlu2 %4646, %v2217_v31   ;;  %2933 = vperm.xlu1 %4645, %v2214_v33  }
 0xc99   : > { %2921 = vperm.xlu0 %4644, %v2210_v32  }
 0xc9a   : > { %v7066_v34 = vpop.permute.xlu2 %2371  ;;  %v7068_v35 = vpop.permute.xlu1 %2321 }
 0xc9b   : > { %8591 = vst [vmem:[#allocation6_spill] sm:$0xff] %v7066_v34  ;;  %v7070_v36 = vpop.permute.xlu0 %2316  ;;  %v8650_v34 = vld [vmem:[#allocation305_spill] sm:$0xff] }
 0xc9c   : > { %8592 = vst [vmem:[#allocation7_spill] sm:$0xff] %v7068_v35  ;;  %v8636_v35 = vld [vmem:[#allocation291_spill] sm:$0xff] }
 0xca0   : > { %2945 = vperm.xlu2 %4646, %v2218_v37   ;;  %2951 = vperm.xlu1 %4645, %v2220_v39   ;;  %v8611_v37 = vld [vmem:[#allocation271_spill] sm:$0xff]  ;;  %v8613_v39 = vld [vmem:[#allocation270_spill] sm:$0xff] }
 0xca1   : > { %2948 = vperm.xlu0 %4644, %v2219_v38   ;;  %v8612_v38 = vld [vmem:[#allocation269_spill] sm:$0xff] }
 0xca2   : > { %v7072_v40 = vpop.permute.xlu2 %2386  ;;  %v7074_v41 = vpop.permute.xlu1 %2336 }
 0xca3   : > { %8593 = vst [vmem:[#allocation8_spill] sm:$0xff] %v7072_v40  ;;  %v7076_v42 = vpop.permute.xlu0 %2331 }
 0xca4   : > { %8594 = vst [vmem:[#allocation9_spill] sm:$0xff] %v7074_v41  ;;  %v8644_v41 = vld [vmem:[#allocation299_spill] sm:$0xff] }
 0xca5   : > { %8595 = vst [vmem:[#allocation10_spill] sm:$0xff] %v7076_v42  ;;  %v8637_v42 = vld [vmem:[#allocation295_spill] sm:$0xff] }
 0xca8   : > { %2963 = vperm.xlu2 %4646, %v2224_v43   ;;  %2960 = vperm.xlu1 %4645, %v2223_v46  }
 0xca9   : > { %2954 = vperm.xlu0 %4644, %v2221_v44  }
 0xcaa   : > { %v7078_v47 = vpop.permute.xlu2 %2401  ;;  %v7080_v48 = vpop.permute.xlu1 %2351 }
 0xcab   : > { %8596 = vst [vmem:[#allocation11_spill] sm:$0xff] %v7078_v47  ;;  %v7082_v49 = vpop.permute.xlu0 %2346  ;;  %v8627_v47 = vld [vmem:[#allocation282_spill] sm:$0xff] }
 0xcac   : > { %8597 = vst [vmem:[#allocation12_spill] sm:$0xff] %v7080_v48  ;;  %v8647_v48 = vld [vmem:[#allocation302_spill] sm:$0xff] }
 0xcad   : > { %8598 = vst [vmem:[#allocation13_spill] sm:$0xff] %v7082_v49  ;;  %v8646_v49 = vld [vmem:[#allocation304_spill] sm:$0xff] }
 0xcb0   : > { %2972 = vperm.xlu2 %4646, %v2227_v50   ;;  %2966 = vperm.xlu1 %4645, %v2225_v52   ;;  %v8615_v50 = vld [vmem:[#allocation274_spill] sm:$0xff]  ;;  %v8617_v52 = vld [vmem:[#allocation273_spill] sm:$0xff] }
 0xcb1   : > { %2957 = vperm.xlu0 %4644, %v2222_v51   ;;  %v8616_v51 = vld [vmem:[#allocation272_spill] sm:$0xff] }
 0xcb2   : > { %v7084_v53 = vpop.permute.xlu2 %2416  ;;  %v7086_v54 = vpop.permute.xlu1 %2366 }
 0xcb3   : > { %8599 = vst [vmem:[#allocation14_spill] sm:$0xff] %v7084_v53  ;;  %v7088_v55 = vpop.permute.xlu0 %2361 }
 0xcb4   : > { %8600 = vst [vmem:[#allocation15_spill] sm:$0xff] %v7086_v54  ;;  %v8649_v54 = vld [vmem:[#allocation307_spill] sm:$0xff] }
 0xcb5   : > { %8601 = vst [vmem:[#allocation16_spill] sm:$0xff] %v7088_v55 }
 0xcb8   : > { %2978 = vperm.xlu2 %4646, %v2229_v57   ;;  %2969 = vperm.xlu1 %4645, %v2226_v59   ;;  %v3007_v59 = vlaneseq }
 0xcb9   : > { %2975 = vperm.xlu0 %4644, %v2228_v58  }
 0xcba   : > { %v7090_v61 = vpop.permute.xlu2 %2431  ;;  %v7092_v62 = vpop.permute.xlu1 %2381 }
 0xcbb   : > { %8602 = vst [vmem:[#allocation17_spill] sm:$0xff] %v7090_v61  ;;  %v7094_v63 = vpop.permute.xlu0 %2376  ;;  %v8635_v61 = vld [vmem:[#allocation290_spill] sm:$0xff] }
 0xcbc   : > { %8603 = vst [vmem:[#allocation18_spill] sm:$0xff] %v7092_v62  ;;  %v8800_v62 = vld [vmem:[#allocation113_spill] sm:$0xff] }
 0xcbd   : > { %8604 = vst [vmem:[#allocation19_spill] sm:$0xff] %v7094_v63 }
 0xcc0   : > { %2981 = vperm.xlu2 %4646, %v2230_v3   ;;  %2987 = vperm.xlu1 %4645, %v2232_v7   ;;  %v8619_v7 = vld [vmem:[#allocation275_spill] sm:$0xff] }
 0xcc1   : > { %2984 = vperm.xlu0 %4644, %v2231_v25   ;;  %v8618_v25 = vld [vmem:[#allocation277_spill] sm:$0xff] }
 0xcc2   : > { %v7096_v16 = vpop.permute.xlu2 %2446  ;;  %v7098_v17 = vpop.permute.xlu1 %2396 }
 0xcc3   : > { %8605 = vst [vmem:[#allocation20_spill] sm:$0xff] %v7098_v17  ;;  %v7100_v18 = vpop.permute.xlu0 %2391 }
 0xcc4   : > { %8606 = vst [vmem:[#allocation21_spill] sm:$0xff] %v7100_v18  ;;  %v8806_v18 = vld [vmem:[#allocation114_spill] sm:$0xff] }
 0xcc8   : > { %2999 = vperm.xlu2 %4646, %v2236_v11   ;;  %2996 = vperm.xlu1 %4645, %v2235_v5   ;;  %v8620_v11 = vld [vmem:[#allocation276_spill] sm:$0xff] }
 0xcc9   : > { %2990 = vperm.xlu0 %4644, %v2233_v24  }
 0xcca   : > { %v7102_v10 = vpop.permute.xlu2 %2461  ;;  %v7104_v12 = vpop.permute.xlu1 %2411 }
 0xccb   : > { %8607 = vst [vmem:[#allocation22_spill] sm:$0xff] %v7104_v12  ;;  %v7106_v14 = vpop.permute.xlu0 %2406 }
 0xccc   : > { %8608 = vst [vmem:[#allocation23_spill] sm:$0xff] %v7106_v14 }
 0xcd0   : > { %3005 = vperm.xlu2 %4646, %v2238_v22   ;;  %3002 = vperm.xlu1 %4645, %v2237_v26   ;;  %v7135_v22 = vand.u32 127, %v3007_v59  ;;  %v8621_v26 = vld [vmem:[#allocation280_spill] sm:$0xff] }
 0xcd1   : > { %2993 = vperm.xlu0 %4644, %v2234_v23  }
 0xcd2   : > { %v7108_v31 = vpop.permute.xlu1 %2426  ;;  %v7112_v33 = vpop.permute.xlu2 %2476  ;;  %v7138_v23 = vadd.s32 4294967288, %v7135_v22 }
 0xcd3   : > { %8609 = vst [vmem:[#allocation24_spill] sm:$0xff] %v7108_v31  ;;  %v7110_v32 = vpop.permute.xlu0 %2421  ;;  %v8632_v31 = vld [vmem:[#allocation287_spill] sm:$0xff] }
 0xcd4   : > { %8610 = vst [vmem:[#allocation25_spill] sm:$0xff] %v7110_v32  ;;  %v8628_v32 = vld [vmem:[#allocation286_spill] sm:$0xff] }
 0xcd8   : > { %2496 = vperm.xlu2 %4646, %v8611_v37   ;;  %2491 = vperm.xlu1 %4645, %v8613_v39   ;;  %v7142_v37 = vadd.s32 4294967280, %v7135_v22  ;;  %v8623_v39 = vld [vmem:[#allocation279_spill] sm:$0xff] }
 0xcd9   : > { %2486 = vperm.xlu0 %4644, %v8612_v38   ;;  %v8622_v38 = vld [vmem:[#allocation278_spill] sm:$0xff] }
 0xcda   : > { %v7117_v43 = vpop.permute.xlu1 %2441  ;;  %v2916_v46 = vpop.permute.xlu2 %2915 }
 0xcdb   : > { %v7119_v44 = vpop.permute.xlu0 %2436  ;;  %v3011_v59 = vperm.slane %v2916_v46, %v7138_v23 }
 0xcdc   : > { %8614 = vst [vmem:[#allocation26_spill] sm:$0xff] %v7119_v44 }
 0xce0   : > { %2511 = vperm.xlu2 %4646, %v8615_v50   ;;  %2506 = vperm.xlu1 %4645, %v8617_v52  }
 0xce1   : > { %2501 = vperm.xlu0 %4644, %v8616_v51  }
 0xce2   : > { %v7124_v57 = vpop.permute.xlu1 %2456  ;;  %v2919_v3 = vpop.permute.xlu2 %2918 }
 0xce3   : > { %v7126_v58 = vpop.permute.xlu0 %2451 }
 0xce8   : > { %2526 = vperm.xlu2 %4646, %v8618_v25   ;;  %2521 = vperm.xlu1 %4645, %v8620_v11  }
 0xce9   : > { %2516 = vperm.xlu0 %4644, %v8619_v7   ;;  %v3015_v7 = vperm.slane %v2919_v3, %v7142_v37 }
 0xcea   : > { %v7131_v24 = vpop.permute.xlu1 %2471  ;;  %v7146_v50 = vpop.permute.xlu2 %2939 }
 0xceb   : > { %v7133_v5 = vpop.permute.xlu0 %2466 }
 0xcf0   : > { %2541 = vperm.xlu2 %4646, %v8621_v26   ;;  %2536 = vperm.xlu1 %4645, %v8623_v39   ;;  %v8626_v39 = vld [vmem:[#allocation281_spill] sm:$0xff] }
 0xcf1   : > { %2531 = vperm.xlu0 %4644, %v8622_v38   ;;  %v8625_v38 = vld [vmem:[#allocation283_spill] sm:$0xff] }
 0xcf2   : > { %v2913_v52 = vpop.permute.xlu1 %2912  ;;  %v7158_v53 = vpop.permute.xlu2 %2942 }
 0xcf3   : > { %v7148_v51 = vpop.permute.xlu0 %2481  ;;  %v3009_v25 = vperm.slane %v2913_v52, %v7135_v22 }
 0xcf4   : > { %8624 = vst [vmem:[#allocation27_spill] sm:$0xff] %v7148_v51  ;;  %v8814_v51 = vld [vmem:[#allocation184_spill] sm:$0xff] }
 0xcf5   : > { %v3013_v11 = vsel %vm3012_vm10, %v3011_v59, %v3009_v25  ;;  %v8629_v59 = vld [vmem:[#allocation284_spill] sm:$0xff]  ;;  %v8630_v25 = vld [vmem:[#allocation285_spill] sm:$0xff] }
 0xcf6   : > { %v3017_v26 = vsel %vm3016_vm11, %v3015_v7, %v3013_v11 }
 0xcf8   : > { %2556 = vperm.xlu2 %4646, %v8625_v38   ;;  %2551 = vperm.xlu1 %4645, %v8627_v47   ;;  %v8631_v47 = vld [vmem:[#allocation289_spill] sm:$0xff] }
 0xcf9   : > { %2546 = vperm.xlu0 %4644, %v8626_v39  }
 0xcfa   : > { %v2928_v12 = vpop.permute.xlu1 %2927  ;;  %v7166_v38 = vpop.permute.xlu2 %2945 }
 0xcfb   : > { %v2925_v14 = vpop.permute.xlu0 %2924  ;;  %v3023_v52 = vperm.slane %v2928_v12, %v7138_v23  ;;  %v7173_v12 = vadd.s32 4294967272, %v7135_v22 }
 0xcfc   : > { %v3022_v46 = vperm.slane %v2925_v14, %v7135_v22  ;;  %v8633_v14 = vld [vmem:[#allocation288_spill] sm:$0xff] }
 0xcfe   : > { %v3024_v3 = vsel %vm3012_vm10, %v3023_v52, %v3022_v46 }
 0xd00   : > { %2571 = vperm.xlu2 %4646, %v8628_v32   ;;  %2566 = vperm.xlu1 %4645, %v8630_v25  }
 0xd01   : > { %2561 = vperm.xlu0 %4644, %v8629_v59  }
 0xd02   : > { %v2937_v11 = vpop.permute.xlu1 %2936  ;;  %v2964_v44 = vpop.permute.xlu2 %2963 }
 0xd03   : > { %v2931_v7 = vpop.permute.xlu0 %2930  ;;  %v3029_v27 = vperm.slane %v2937_v11, %v7135_v22  ;;  %v8651_v11 = vld [vmem:[#allocation306_spill] sm:$0xff] }
 0xd04   : > { %v3025_v39 = vperm.slane %v2931_v7, %v7142_v37 }
 0xd06   : > { %v3026_v25 = vsel %vm3016_vm11, %v3025_v39, %v3024_v3  ;;  %v8639_v3 = vld [vmem:[#allocation294_spill] sm:$0xff] }
 0xd08   : > { %2586 = vperm.xlu2 %4646, %v8631_v47   ;;  %2581 = vperm.xlu1 %4645, %v8633_v14   ;;  %v8634_v14 = vld [vmem:[#allocation292_spill] sm:$0xff] }
 0xd09   : > { %2576 = vperm.xlu0 %4644, %v8632_v31  }
 0xd0a   : > { %v2934_v46 = vpop.permute.xlu1 %2933  ;;  %v2973_v39 = vpop.permute.xlu2 %2972 }
 0xd0b   : > { %v2922_v32 = vpop.permute.xlu0 %2921  ;;  %v3027_v59 = vperm.slane %v2934_v46, %v7173_v12  ;;  %v8638_v46 = vld [vmem:[#allocation293_spill] sm:$0xff] }
 0xd0c   : > { %v3019_v52 = vperm.slane %v2922_v32, %v7173_v12 }
 0xd0d   : > { %v3028_v7 = vsel %vm3020_vm13, %v3027_v59, %v3026_v25  ;;  %v8640_v59 = vld [vmem:[#allocation298_spill] sm:$0xff]  ;;  %v8641_v25 = vld [vmem:[#allocation296_spill] sm:$0xff] }
 0xd0e   : > { %v3021_v47 = vsel %vm3020_vm13, %v3019_v52, %v3017_v26 }
 0xd0f   : > { %v3072_v31 = vsel %vm3071_vm12, %v3028_v7, %v3021_v47  ;;  %v8642_v47 = vld [vmem:[#allocation297_spill] sm:$0xff] }
 0xd10   : > { %2601 = vperm.xlu2 %4646, %v8634_v14   ;;  %2596 = vperm.xlu1 %4645, %v8636_v35   ;;  %v8643_v14 = vld [vmem:[#allocation301_spill] sm:$0xff] }
 0xd11   : > { %2591 = vperm.xlu0 %4644, %v8635_v61  }
 0xd12   : > { %v2952_v32 = vpop.permute.xlu1 %2951  ;;  %v2979_v35 = vpop.permute.xlu2 %2978 }
 0xd13   : > { %v2949_v2 = vpop.permute.xlu0 %2948 }
 0xd18   : > { %2616 = vperm.xlu2 %4646, %v8637_v42   ;;  %2611 = vperm.xlu1 %4645, %v8639_v3   ;;  %v8645_v42 = vld [vmem:[#allocation300_spill] sm:$0xff] }
 0xd19   : > { %2606 = vperm.xlu0 %4644, %v8638_v46  }
 0xd1a   : > { %v2961_v52 = vpop.permute.xlu1 %2960  ;;  %v2982_v8 = vpop.permute.xlu2 %2981 }
 0xd1b   : > { %v2955_v26 = vpop.permute.xlu0 %2954  ;;  %v3043_v63 = vperm.slane %v2961_v52, %v7135_v22 }
 0xd20   : > { %2631 = vperm.xlu2 %4646, %v8640_v59   ;;  %2626 = vperm.xlu1 %4645, %v8642_v47   ;;  %v8648_v59 = vld [vmem:[#allocation303_spill] sm:$0xff] }
 0xd21   : > { %2621 = vperm.xlu0 %4644, %v8641_v25  }
 0xd22   : > { %v2967_v7 = vpop.permute.xlu1 %2966  ;;  %v3000_v55 = vpop.permute.xlu2 %2999 }
 0xd23   : > { %v2958_v61 = vpop.permute.xlu0 %2957 }
 0xd28   : > { %2646 = vperm.xlu2 %4646, %v8643_v14   ;;  %2641 = vperm.xlu1 %4645, %v8645_v42   ;;  %v3030_v14 = vperm.slane %v7146_v50, %v7138_v23  ;;  %v3039_v50 = vperm.slane %v2955_v26, %v7142_v37 }
 0xd29   : > { %2636 = vperm.xlu0 %4644, %v8644_v41   ;;  %v3032_v41 = vperm.slane %v7158_v53, %v7142_v37 }
 0xd2a   : > { %v2970_v3 = vpop.permute.xlu1 %2969  ;;  %v3031_v42 = vsel %vm3012_vm10, %v3030_v14, %v3029_v27  ;;  %v3050_v27 = vperm.slane %v2973_v39, %v7135_v22 }
 0xd2b   : > { %v2976_v46 = vpop.permute.xlu0 %2975  ;;  %v3033_v53 = vsel %vm3016_vm11, %v3032_v41, %v3031_v42  ;;  %v3048_v26 = vperm.slane %v2970_v3, %v7173_v12 }
 0xd30   : > { %2661 = vperm.xlu2 %4646, %v8646_v49   ;;  %2656 = vperm.xlu1 %4645, %v8648_v59   ;;  %v3036_v49 = vperm.slane %v2949_v2, %v7135_v22  ;;  %v3051_v59 = vperm.slane %v2976_v46, %v7138_v23  ;;  %v3046_v2 = vperm.slane %v2967_v7, %v7142_v37 }
 0xd31   : > { %2651 = vperm.xlu0 %4644, %v8647_v48   ;;  %v3037_v48 = vperm.slane %v2952_v32, %v7138_v23  ;;  %v3034_v46 = vperm.slane %v7166_v38, %v7173_v12 }
 0xd32   : > { %v2988_v47 = vpop.permute.xlu1 %2987  ;;  %v3052_v41 = vsel %vm3012_vm10, %v3051_v59, %v3050_v27  ;;  %v8654_v27 = vld [vmem:[#allocation309_spill] sm:$0xff] }
 0xd33   : > { %v2985_v25 = vpop.permute.xlu0 %2984  ;;  %v3038_v52 = vsel %vm3012_vm10, %v3037_v48, %v3036_v49  ;;  %v3035_v39 = vsel %vm3020_vm13, %v3034_v46, %v3033_v53  ;;  %v3058_v59 = vperm.slane %v2988_v47, %v7138_v23  ;;  %v8652_v53 = vld [vmem:[#allocation310_spill] sm:$0xff]  ;;  %v3065_v46 = vperm.slane %v3000_v55, %v7138_v23 }
 0xd34   : > { %v3040_v7 = vsel %vm3016_vm11, %v3039_v50, %v3038_v52  ;;  %v3057_v48 = vperm.slane %v2985_v25, %v7135_v22 }
 0xd38   : > { %2676 = vperm.xlu2 %4646, %v8649_v54   ;;  %2671 = vperm.xlu1 %4645, %v8651_v11   ;;  %v3041_v54 = vperm.slane %v2958_v61, %v7173_v12  ;;  %v3053_v61 = vperm.slane %v2979_v35, %v7142_v37  ;;  %v3074_v11 = vsel %vm3073_vm14, %v3035_v39, %v3072_v31  ;;  %v8653_v31 = vld [vmem:[#allocation308_spill] sm:$0xff] }
 0xd39   : > { %2666 = vperm.xlu0 %4644, %v8650_v34   ;;  %v3044_v34 = vperm.slane %v2964_v44, %v7138_v23  ;;  %v3055_v35 = vperm.slane %v2982_v8, %v7173_v12  ;;  %v3059_v8 = vsel %vm3012_vm10, %v3058_v59, %v3057_v48  ;;  %v8660_v48 = vld [vmem:[#allocation161_spill] sm:$0xff]  ;;  %v8661_v59 = vld [vmem:[#allocation186_spill] sm:$0xff] }
 0xd3a   : > { %v2997_v32 = vpop.permute.xlu1 %2996  ;;  %v3042_v38 = vsel %vm3020_vm13, %v3041_v54, %v3040_v7  ;;  %v3054_v3 = vsel %vm3016_vm11, %v3053_v61, %v3052_v41 }
 0xd3b   : > { %v2991_v14 = vpop.permute.xlu0 %2990  ;;  %v3045_v42 = vsel %vm3012_vm10, %v3044_v34, %v3043_v63  ;;  %v3064_v50 = vperm.slane %v2997_v32, %v7135_v22  ;;  %v3076_v54 = vsel %vm3075_vm15, %v3042_v38, %v3074_v11  ;;  %v3056_v25 = vsel %vm3020_vm13, %v3055_v35, %v3054_v3  ;;  %v8657_v11 = vld [vmem:[#allocation314_spill] sm:$0xff]  ;;  %v8658_v3 = vld [vmem:[#allocation92_spill] sm:$0xff]  ;;  %v8663_v35 = vld [vmem:[#allocation347_spill] sm:$0xff] }
 0xd3c   : > { %v3047_v44 = vsel %vm3016_vm11, %v3046_v2, %v3045_v42  ;;  %v3060_v63 = vperm.slane %v2991_v14, %v7142_v37  ;;  %v3006_v2 = vpop.permute.xlu2 %3005  ;;  %v8655_v42 = vld [vmem:[#allocation313_spill] sm:$0xff] }
 0xd3d   : > { %v3049_v49 = vsel %vm3020_vm13, %v3048_v26, %v3047_v44  ;;  %v3069_v32 = vperm.slane %v3006_v2, %v7173_v12  ;;  %v3066_v41 = vsel %vm3012_vm10, %v3065_v46, %v3064_v50  ;;  %v8668_v2 = vld [vmem:[#allocation187_spill] sm:$0xff] }
 0xd3e   : > { %v3078_v47 = vsel %vm3077_vm0, %v3049_v49, %v3076_v54  ;;  %v3061_v52 = vsel %vm3016_vm11, %v3060_v63, %v3059_v8  ;;  %v8659_v49 = vld [vmem:[#allocation132_spill] sm:$0xff]  ;;  %v8667_v54 = vld [vmem:[#allocation162_spill] sm:$0xff] }
 0xd3f   : > { %v3080_v39 = vsel %vm3079_vm1, %v3056_v25, %v3078_v47  ;;  %v8664_v63 = vld [vmem:[#allocation312_spill] sm:$0xff]  ;;  %v8669_v25 = vld [vmem:[#allocation345_spill] sm:$0xff]  ;;  %v8670_v47 = vld [vmem:[#allocation311_spill] sm:$0xff] }
 0xd40   : > { %2691 = vperm.xlu2 %4646, %v8652_v53   ;;  %2686 = vperm.xlu1 %4645, %v8654_v27   ;;  %v8662_v53 = vld [vmem:[#allocation346_spill] sm:$0xff]  ;;  %v8666_v27 = vld [vmem:[#allocation133_spill] sm:$0xff] }
 0xd41   : > { %2681 = vperm.xlu0 %4644, %v8653_v31   ;;  %v8665_v31 = vld [vmem:[#allocation93_spill] sm:$0xff]  ;;  %v8672_v8 = vld [vmem:[#allocation94_spill] sm:$0xff] }
 0xd42   : > { %v3003_v26 = vpop.permute.xlu1 %3002 }
 0xd43   : > { %v2994_v34 = vpop.permute.xlu0 %2993  ;;  %v3067_v22 = vperm.slane %v3003_v26, %v7142_v37  ;;  %v8656_v37 = vld [vmem:[#allocation315_spill] sm:$0xff] }
 0xd44   : > { %v3062_v14 = vperm.slane %v2994_v34, %v7173_v12  ;;  %v8671_v34 = vld [vmem:[#allocation331_spill] sm:$0xff] }
 0xd45   : > { %v3068_v23 = vsel %vm3016_vm11, %v3067_v22, %v3066_v41  ;;  %v8674_v22 = vld [vmem:[#allocation163_spill] sm:$0xff] }
 0xd46   : > { %v3063_v55 = vsel %vm3020_vm13, %v3062_v14, %v3061_v52  ;;  %v3070_v61 = vsel %vm3020_vm13, %v3069_v32, %v3068_v23  ;;  %v8673_v14 = vld [vmem:[#allocation134_spill] sm:$0xff]  ;;  %v8675_v32 = vld [vmem:[#allocation188_spill] sm:$0xff]  ;;  %v8676_v52 = vld [vmem:[#allocation329_spill] sm:$0xff] }
 0xd47   : > { %v3082_v7 = vsel %vm3081_vm2, %v3063_v55, %v3080_v39  ;;  %v8677_v55 = vld [vmem:[#allocation330_spill] sm:$0xff]  ;;  %v8678_v23 = vld [vmem:[#allocation344_spill] sm:$0xff] }
 0xd48   : > { %2706 = vperm.xlu2 %4646, %v8655_v42   ;;  %v3084_v38 = vsel %vm3083_vm4, %v3070_v61, %v3082_v7  ;;  %2711 = vperm.xlu1 %4645, %v8657_v11   ;;  %v8679_v61 = vld [vmem:[#allocation95_spill] sm:$0xff]  ;;  %v8681_v42 = vld [vmem:[#allocation164_spill] sm:$0xff] }
 0xd49   : > { %2716 = vperm.xlu0 %4644, %v8656_v37   ;;  %4384 = vmatpush.xpose.msk.msra.mxu0 %vm1075_vm3, %v3084_v38  ;;  %v8680_v7 = vld [vmem:[#allocation135_spill] sm:$0xff]  ;;  %v8683_v37 = vld [vmem:[#allocation342_spill] sm:$0xff] }
 0xd4a   : > { %4517 = vmatpush.xpose.msk.msra.mxu1 %vm1075_vm3, %v3084_v38  ;;  %4518 = vmatpush.xpose.msk.msra.mxu2 %vm1075_vm3, %v3084_v38  ;;  %v7254_v12 = vpop.permute.xlu1 %2491  ;;  %v8684_v11 = vld [vmem:[#allocation343_spill] sm:$0xff] }
 0xd4b   : > { %4519 = vmatpush.xpose.msk.msra.mxu3 %vm1075_vm3, %v3084_v38  ;;  %v7256_v44 = vpop.permute.xlu0 %2486  ;;  %v8682_v38 = vld [vmem:[#allocation189_spill] sm:$0xff] }
 0xd4c   : > { %4385 = vmatmul.msk.f32.vlgmr.msra.gmra.mxu0 %vm1075_vm3, %v8658_v3  ;;  %v8685_v3 = vld [vmem:[#allocation328_spill] sm:$0xff] }
 0xd4d   : > { %4425 = vmatmul.msk.f32.vlgmr.msra.gmra.mxu1 %vm1075_vm3, %v8659_v49  ;;  %4454 = vmatmul.msk.f32.vlgmr.msra.gmra.mxu2 %vm1075_vm3, %v8660_v48 }
 0xd4e   : > { %4479 = vmatmul.msk.f32.vlgmr.msra.gmra.mxu3 %vm1075_vm3, %v8661_v59  ;;  %v8686_v59 = vld [vmem:[#allocation96_spill] sm:$0xff] }
 0xd50   : > { %2871 = vperm.xlu2 %4646, %v8662_v53   ;;  %2701 = vperm.xlu1 %4645, %v8664_v63   ;;  %v8687_v53 = vld [vmem:[#allocation136_spill] sm:$0xff]  ;;  %v8689_v63 = vld [vmem:[#allocation190_spill] sm:$0xff] }
 0xd51   : > { %2876 = vperm.xlu0 %4644, %v8663_v35   ;;  %v8688_v35 = vld [vmem:[#allocation165_spill] sm:$0xff] }
 0xd52   : > { %v7269_v50 = vpop.permute.xlu1 %2506 }
 0xd53   : > { %v7279_v46 = vpop.permute.xlu0 %2501 }
 0xd54   : > { %4386 = vmatmul.msk.f32.gmra.mxu0 %vm1075_vm3, %v8665_v31  ;;  %v8690_v31 = vld [vmem:[#allocation326_spill] sm:$0xff] }
 0xd55   : > { %4426 = vmatmul.msk.f32.gmra.mxu1 %vm1075_vm3, %v8666_v27  ;;  %4455 = vmatmul.msk.f32.gmra.mxu2 %vm1075_vm3, %v8667_v54  ;;  %v8691_v27 = vld [vmem:[#allocation327_spill] sm:$0xff]  ;;  %v8692_v54 = vld [vmem:[#allocation341_spill] sm:$0xff] }
 0xd56   : > { %4480 = vmatmul.msk.f32.gmra.mxu3 %vm1075_vm3, %v8668_v2 }
 0xd58   : > { %2866 = vperm.xlu2 %4646, %v8669_v25   ;;  %2796 = vperm.xlu1 %4645, %v8671_v34   ;;  %v8693_v25 = vld [vmem:[#allocation97_spill] sm:$0xff]  ;;  %v8695_v34 = vld [vmem:[#allocation166_spill] sm:$0xff] }
 0xd59   : > { %2696 = vperm.xlu0 %4644, %v8670_v47   ;;  %v8694_v47 = vld [vmem:[#allocation137_spill] sm:$0xff] }
 0xd5a   : > { %v7284_v26 = vpop.permute.xlu1 %2521 }
 0xd5b   : > { %v7295_v41 = vpop.permute.xlu0 %2516 }
 0xd5c   : > { %4387 = vmatmul.msk.f32.gmra.mxu0 %vm1075_vm3, %v8672_v8  ;;  %v8696_v8 = vld [vmem:[#allocation191_spill] sm:$0xff] }
 0xd5d   : > { %4427 = vmatmul.msk.f32.gmra.mxu1 %vm1075_vm3, %v8673_v14  ;;  %4456 = vmatmul.msk.f32.gmra.mxu2 %vm1075_vm3, %v8674_v22  ;;  %v8698_v22 = vld [vmem:[#allocation339_spill] sm:$0xff] }
 0xd5e   : > { %4481 = vmatmul.msk.f32.gmra.mxu3 %vm1075_vm3, %v8675_v32  ;;  %v8699_v32 = vld [vmem:[#allocation340_spill] sm:$0xff] }
 0xd60   : > { %2786 = vperm.xlu2 %4646, %v8676_v52   ;;  %2861 = vperm.xlu1 %4645, %v8678_v23   ;;  %v8700_v52 = vld [vmem:[#allocation325_spill] sm:$0xff]  ;;  %v8702_v23 = vld [vmem:[#allocation138_spill] sm:$0xff] }
 0xd61   : > { %2791 = vperm.xlu0 %4644, %v8677_v55   ;;  %v8701_v55 = vld [vmem:[#allocation98_spill] sm:$0xff] }
 0xd62   : > { %v7299_v39 = vpop.permute.xlu1 %2536 }
 0xd63   : > { %v7312_v49 = vpop.permute.xlu0 %2531 }
 0xd64   : > { %4388 = vmatmul.msk.f32.gmra.mxu0 %vm1075_vm3, %v8679_v61  ;;  %v8703_v61 = vld [vmem:[#allocation167_spill] sm:$0xff] }
 0xd65   : > { %4428 = vmatmul.msk.f32.gmra.mxu1 %vm1075_vm3, %v8680_v7  ;;  %4457 = vmatmul.msk.f32.gmra.mxu2 %vm1075_vm3, %v8681_v42  ;;  %v8704_v7 = vld [vmem:[#allocation192_spill] sm:$0xff] }
 0xd66   : > { %4482 = vmatmul.msk.f32.gmra.mxu3 %vm1075_vm3, %v8682_v38  ;;  %v8706_v38 = vld [vmem:[#allocation323_spill] sm:$0xff] }
 0xd68   : > { %2851 = vperm.xlu2 %4646, %v8683_v37   ;;  %2781 = vperm.xlu1 %4645, %v8685_v3   ;;  %v8709_v3 = vld [vmem:[#allocation338_spill] sm:$0xff] }
 0xd69   : > { %2856 = vperm.xlu0 %4644, %v8684_v11   ;;  %v8708_v11 = vld [vmem:[#allocation324_spill] sm:$0xff] }
 0xd6a   : > { %v7314_v48 = vpop.permute.xlu1 %2551 }
 0xd6b   : > { %v7327_v2 = vpop.permute.xlu0 %2546 }
 0xd6c   : > { %4389 = vmatmul.msk.f32.gmra.mxu0 %vm1075_vm3, %v8686_v59  ;;  %v8710_v59 = vld [vmem:[#allocation99_spill] sm:$0xff] }
 0xd6d   : > { %4429 = vmatmul.msk.f32.gmra.mxu1 %vm1075_vm3, %v8687_v53  ;;  %4458 = vmatmul.msk.f32.gmra.mxu2 %vm1075_vm3, %v8688_v35  ;;  %v8711_v53 = vld [vmem:[#allocation139_spill] sm:$0xff]  ;;  %v8712_v35 = vld [vmem:[#allocation168_spill] sm:$0xff] }
 0xd6e   : > { %4483 = vmatmul.msk.f32.gmra.mxu3 %vm1075_vm3, %v8689_v63  ;;  %v8713_v63 = vld [vmem:[#allocation193_spill] sm:$0xff] }
 0xd70   : > { %2771 = vperm.xlu2 %4646, %v8690_v31   ;;  %2846 = vperm.xlu1 %4645, %v8692_v54   ;;  %v8714_v31 = vld [vmem:[#allocation336_spill] sm:$0xff]  ;;  %v8716_v54 = vld [vmem:[#allocation337_spill] sm:$0xff] }
 0xd71   : > { %2776 = vperm.xlu0 %4644, %v8691_v27  }
 0xd72   : > { %v7337_v14 = vpop.permute.xlu1 %2566 }
 0xd73   : > { %8697 = vst [vmem:[#allocation28_spill] sm:$0xff] %v7337_v14  ;;  %v7350_v42 = vpop.permute.xlu0 %2561 }
 0xd74   : > { %4390 = vmatmul.msk.f32.gmra.mxu0 %vm1075_vm3, %v8693_v25  ;;  %8705 = vst [vmem:[#allocation29_spill] sm:$0xff] %v7350_v42  ;;  %v8717_v25 = vld [vmem:[#allocation322_spill] sm:$0xff]  ;;  %v8779_v42 = vld [vmem:[#allocation109_spill] sm:$0xff] }
 0xd75   : > { %4430 = vmatmul.msk.f32.gmra.mxu1 %vm1075_vm3, %v8694_v47  ;;  %4459 = vmatmul.msk.f32.gmra.mxu2 %vm1075_vm3, %v8695_v34  ;;  %v8719_v34 = vld [vmem:[#allocation100_spill] sm:$0xff] }
 0xd76   : > { %4484 = vmatmul.msk.f32.gmra.mxu3 %vm1075_vm3, %v8696_v8  ;;  %v8720_v8 = vld [vmem:[#allocation140_spill] sm:$0xff] }
 0xd78   : > { %2836 = vperm.xlu2 %4646, %v8698_v22   ;;  %2766 = vperm.xlu1 %4645, %v8700_v52   ;;  %v8721_v22 = vld [vmem:[#allocation169_spill] sm:$0xff]  ;;  %v8723_v52 = vld [vmem:[#allocation320_spill] sm:$0xff] }
 0xd79   : > { %2841 = vperm.xlu0 %4644, %v8699_v32   ;;  %v8722_v32 = vld [vmem:[#allocation194_spill] sm:$0xff] }
 0xd7a   : > { %v7353_v37 = vpop.permute.xlu1 %2581 }
 0xd7b   : > { %8707 = vst [vmem:[#allocation30_spill] sm:$0xff] %v7353_v37  ;;  %v7366_v27 = vpop.permute.xlu0 %2576  ;;  %v8784_v37 = vld [vmem:[#allocation110_spill] sm:$0xff] }
 0xd7c   : > { %4391 = vmatmul.msk.f32.gmra.mxu0 %vm1075_vm3, %v8701_v55  ;;  %8715 = vst [vmem:[#allocation31_spill] sm:$0xff] %v7366_v27  ;;  %v8724_v55 = vld [vmem:[#allocation321_spill] sm:$0xff] }
 0xd7d   : > { %4431 = vmatmul.msk.f32.gmra.mxu1 %vm1075_vm3, %v8702_v23  ;;  %4460 = vmatmul.msk.f32.gmra.mxu2 %vm1075_vm3, %v8703_v61  ;;  %v8725_v23 = vld [vmem:[#allocation335_spill] sm:$0xff] }
 0xd7e   : > { %4485 = vmatmul.msk.f32.gmra.mxu3 %vm1075_vm3, %v8704_v7 }
 0xd80   : > { %2756 = vperm.xlu2 %4646, %v8706_v38   ;;  %2831 = vperm.xlu1 %4645, %v8709_v3   ;;  %v8728_v38 = vld [vmem:[#allocation101_spill] sm:$0xff]  ;;  %v8730_v3 = vld [vmem:[#allocation170_spill] sm:$0xff] }
 0xd81   : > { %2761 = vperm.xlu0 %4644, %v8708_v11   ;;  %v8729_v11 = vld [vmem:[#allocation141_spill] sm:$0xff] }
 0xd82   : > { %v7370_v47 = vpop.permute.xlu1 %2596 }
 0xd83   : > { %8718 = vst [vmem:[#allocation32_spill] sm:$0xff] %v7370_v47  ;;  %v7383_v61 = vpop.permute.xlu0 %2591 }
 0xd84   : > { %4392 = vmatmul.msk.f32.gmra.mxu0 %vm1075_vm3, %v8710_v59  ;;  %8726 = vst [vmem:[#allocation33_spill] sm:$0xff] %v7383_v61  ;;  %v8731_v59 = vld [vmem:[#allocation195_spill] sm:$0xff] }
 0xd85   : > { %4432 = vmatmul.msk.f32.gmra.mxu1 %vm1075_vm3, %v8711_v53  ;;  %4461 = vmatmul.msk.f32.gmra.mxu2 %vm1075_vm3, %v8712_v35  ;;  %v8732_v53 = vld [vmem:[#allocation333_spill] sm:$0xff]  ;;  %v8733_v35 = vld [vmem:[#allocation334_spill] sm:$0xff]  ;;  %v8790_v61 = vld [vmem:[#allocation151_spill] sm:$0xff] }
 0xd86   : > { %4486 = vmatmul.msk.f32.gmra.mxu3 %vm1075_vm3, %v8713_v63  ;;  %v8734_v63 = vld [vmem:[#allocation319_spill] sm:$0xff] }
 0xd88   : > { %2821 = vperm.xlu2 %4646, %v8714_v31   ;;  %2751 = vperm.xlu1 %4645, %v8717_v25   ;;  %v8737_v25 = vld [vmem:[#allocation142_spill] sm:$0xff] }
 0xd89   : > { %2826 = vperm.xlu0 %4644, %v8716_v54   ;;  %v8736_v54 = vld [vmem:[#allocation102_spill] sm:$0xff] }
 0xd8a   : > { %v7385_v7 = vpop.permute.xlu1 %2611 }
 0xd8b   : > { %8727 = vst [vmem:[#allocation34_spill] sm:$0xff] %v7385_v7  ;;  %v7398_v31 = vpop.permute.xlu0 %2606  ;;  %v8794_v7 = vld [vmem:[#allocation112_spill] sm:$0xff] }
 0xd8c   : > { %4393 = vmatmul.msk.f32.gmra.mxu0 %vm1075_vm3, %v8719_v34  ;;  %8735 = vst [vmem:[#allocation35_spill] sm:$0xff] %v7398_v31  ;;  %v8738_v34 = vld [vmem:[#allocation171_spill] sm:$0xff] }
 0xd8d   : > { %4433 = vmatmul.msk.f32.gmra.mxu1 %vm1075_vm3, %v8720_v8  ;;  %4462 = vmatmul.msk.f32.gmra.mxu2 %vm1075_vm3, %v8721_v22  ;;  %v8739_v8 = vld [vmem:[#allocation196_spill] sm:$0xff] }
 0xd8e   : > { %4487 = vmatmul.msk.f32.gmra.mxu3 %vm1075_vm3, %v8722_v32  ;;  %v8741_v32 = vld [vmem:[#allocation317_spill] sm:$0xff] }
 0xd90   : > { %2741 = vperm.xlu2 %4646, %v8723_v52   ;;  %2816 = vperm.xlu1 %4645, %v8725_v23   ;;  %v8742_v52 = vld [vmem:[#allocation318_spill] sm:$0xff]  ;;  %v8744_v23 = vld [vmem:[#allocation103_spill] sm:$0xff] }
 0xd91   : > { %2746 = vperm.xlu0 %4644, %v8724_v55   ;;  %v8743_v55 = vld [vmem:[#allocation332_spill] sm:$0xff] }
 0xd92   : > { %v7408_v22 = vpop.permute.xlu1 %2626 }
 0xd93   : > { %8740 = vst [vmem:[#allocation36_spill] sm:$0xff] %v7408_v22 }
 0xd94   : > { %4394 = vmatmul.msk.f32.gmra.mxu0 %vm1075_vm3, %v8728_v38  ;;  %v8745_v38 = vld [vmem:[#allocation143_spill] sm:$0xff] }
 0xd95   : > { %4434 = vmatmul.msk.f32.gmra.mxu1 %vm1075_vm3, %v8729_v11  ;;  %4463 = vmatmul.msk.f32.gmra.mxu2 %vm1075_vm3, %v8730_v3  ;;  %v8746_v11 = vld [vmem:[#allocation172_spill] sm:$0xff]  ;;  %v8747_v3 = vld [vmem:[#allocation197_spill] sm:$0xff] }
 0xd96   : > { %4488 = vmatmul.msk.f32.gmra.mxu3 %vm1075_vm3, %v8731_v59  ;;  %v7421_v59 = vpop.permute.xlu0 %2621 }
 0xd97   : > { %8748 = vst [vmem:[#allocation37_spill] sm:$0xff] %v7421_v59 }
 0xd98   : > { %2806 = vperm.xlu2 %4646, %v8732_v53   ;;  %2736 = vperm.xlu1 %4645, %v8734_v63   ;;  %v8751_v63 = vld [vmem:[#allocation104_spill] sm:$0xff] }
 0xd99   : > { %2811 = vperm.xlu0 %4644, %v8733_v35   ;;  %v8750_v35 = vld [vmem:[#allocation316_spill] sm:$0xff] }
 0xd9a   : > { %v7423_v53 = vpop.permute.xlu1 %2641 }
 0xd9b   : > { %8749 = vst [vmem:[#allocation38_spill] sm:$0xff] %v7423_v53  ;;  %v8773_v53 = vld [vmem:[#allocation108_spill] sm:$0xff] }
 0xd9c   : > { %4395 = vmatmul.msk.f32.gmra.mxu0 %vm1075_vm3, %v8736_v54  ;;  %v8752_v54 = vld [vmem:[#allocation144_spill] sm:$0xff] }
 0xd9d   : > { %4435 = vmatmul.msk.f32.gmra.mxu1 %vm1075_vm3, %v8737_v25  ;;  %4464 = vmatmul.msk.f32.gmra.mxu2 %vm1075_vm3, %v8738_v34  ;;  %v8753_v25 = vld [vmem:[#allocation173_spill] sm:$0xff]  ;;  %v8754_v34 = vld [vmem:[#allocation198_spill] sm:$0xff] }
 0xd9e   : > { %4489 = vmatmul.msk.f32.gmra.mxu3 %vm1075_vm3, %v8739_v8  ;;  %v7435_v8 = vpop.permute.xlu0 %2636 }
 0xd9f   : > { %8755 = vst [vmem:[#allocation39_spill] sm:$0xff] %v7435_v8 }
 0xda0   : > { %2726 = vperm.xlu2 %4646, %v8741_v32   ;;  %2801 = vperm.xlu1 %4645, %v8743_v55   ;;  %v8759_v55 = vld [vmem:[#allocation174_spill] sm:$0xff] }
 0xda1   : > { %2731 = vperm.xlu0 %4644, %v8742_v52   ;;  %v8757_v52 = vld [vmem:[#allocation105_spill] sm:$0xff] }
 0xda2   : > { %v7437_v32 = vpop.permute.xlu1 %2656 }
 0xda3   : > { %8756 = vst [vmem:[#allocation40_spill] sm:$0xff] %v7437_v32 }
 0xda4   : > { %4396 = vmatmul.msk.f32.gmra.mxu0 %vm1075_vm3, %v8744_v23  ;;  %v8760_v23 = vld [vmem:[#allocation199_spill] sm:$0xff] }
 0xda5   : > { %4436 = vmatmul.msk.f32.gmra.mxu1 %vm1075_vm3, %v8745_v38  ;;  %4465 = vmatmul.msk.f32.gmra.mxu2 %vm1075_vm3, %v8746_v11 }
 0xda6   : > { %4490 = vmatmul.msk.f32.gmra.mxu3 %vm1075_vm3, %v8747_v3  ;;  %v7447_v38 = vpop.permute.xlu0 %2651  ;;  %v8763_v3 = vld [vmem:[#allocation106_spill] sm:$0xff] }
 0xda7   : > { %8761 = vst [vmem:[#allocation41_spill] sm:$0xff] %v7447_v38 }
 0xda8   : > { %4003 = vperm.xlu1 %4645, %v6686_v45   ;;  %v8758_v45 = vld [vmem:[#allocation145_spill] sm:$0xff] }
 0xda9   : > { %2721 = vperm.xlu0 %4644, %v8750_v35   ;;  %v8764_v35 = vld [vmem:[#allocation146_spill] sm:$0xff] }
 0xdaa   : > { %v7449_v11 = vpop.permute.xlu1 %2671 }
 0xdab   : > { %8762 = vst [vmem:[#allocation42_spill] sm:$0xff] %v7449_v11 }
 0xdac   : > { %4397 = vmatmul.msk.f32.gmra.mxu0 %vm1075_vm3, %v8751_v63  ;;  %v8765_v63 = vld [vmem:[#allocation175_spill] sm:$0xff] }
 0xdad   : > { %4437 = vmatmul.msk.f32.gmra.mxu1 %vm1075_vm3, %v8752_v54  ;;  %4466 = vmatmul.msk.f32.gmra.mxu2 %vm1075_vm3, %v8753_v25  ;;  %v8766_v54 = vld [vmem:[#allocation200_spill] sm:$0xff]  ;;  %v7459_v25 = vpop.permute.xlu2 %2496 }
 0xdae   : > { %4491 = vmatmul.msk.f32.gmra.mxu3 %vm1075_vm3, %v8754_v34  ;;  %v7461_v34 = vpop.permute.xlu0 %2666 }
 0xdaf   : > { %8767 = vst [vmem:[#allocation43_spill] sm:$0xff] %v7461_v34 }
 0xdb4   : > { %4398 = vmatmul.msk.f32.gmra.mxu0 %vm1075_vm3, %v8757_v52  ;;  %v8768_v52 = vld [vmem:[#allocation107_spill] sm:$0xff] }
 0xdb5   : > { %4438 = vmatmul.msk.f32.gmra.mxu1 %vm1075_vm3, %v8758_v45  ;;  %4467 = vmatmul.msk.f32.gmra.mxu2 %vm1075_vm3, %v8759_v55  ;;  %v8769_v45 = vld [vmem:[#allocation147_spill] sm:$0xff]  ;;  %v8770_v55 = vld [vmem:[#allocation176_spill] sm:$0xff] }
 0xdb6   : > { %4492 = vmatmul.msk.f32.gmra.mxu3 %vm1075_vm3, %v8760_v23  ;;  %v8771_v23 = vld [vmem:[#allocation201_spill] sm:$0xff] }
 0xdbc   : > { %4399 = vmatmul.msk.f32.gmra.mxu0 %vm1075_vm3, %v8763_v3  ;;  %v7471_v3 = vpop.permute.xlu1 %2686 }
 0xdbd   : > { %4439 = vmatmul.msk.f32.gmra.mxu1 %vm1075_vm3, %v8764_v35  ;;  %4468 = vmatmul.msk.f32.gmra.mxu2 %vm1075_vm3, %v8765_v63  ;;  %8772 = vst [vmem:[#allocation44_spill] sm:$0xff] %v7471_v3  ;;  %v7473_v35 = vpop.permute.xlu2 %2511 }
 0xdbe   : > { %4493 = vmatmul.msk.f32.gmra.mxu3 %vm1075_vm3, %v8766_v54 }
 0xdc4   : > { %4400 = vmatmul.msk.f32.gmra.mxu0 %vm1075_vm3, %v8768_v52  ;;  %v8774_v52 = vld [vmem:[#allocation148_spill] sm:$0xff]  ;;  %v2712_v38 = vpop.permute.xlu1 %2711 }
 0xdc5   : > { %4440 = vmatmul.msk.f32.gmra.mxu1 %vm1075_vm3, %v8769_v45  ;;  %4469 = vmatmul.msk.f32.gmra.mxu2 %vm1075_vm3, %v8770_v55  ;;  %v8775_v45 = vld [vmem:[#allocation177_spill] sm:$0xff]  ;;  %v8776_v55 = vld [vmem:[#allocation202_spill] sm:$0xff] }
 0xdc6   : > { %4494 = vmatmul.msk.f32.gmra.mxu3 %vm1075_vm3, %v8771_v23  ;;  %v7487_v23 = vpop.permute.xlu0 %2681 }
 0xdc7   : > { %8777 = vst [vmem:[#allocation45_spill] sm:$0xff] %v7487_v23 }
 0xdc9   : > { %v7475_v63 = vpop.f32.mrf.mxu0 }
 0xdca   : > { %v7477_v54 = vpop.f32.mrf.mxu1 }
 0xdcc   : > { %4401 = vmatmul.msk.f32.gmra.mxu0 %vm1075_vm3, %v8773_v53  ;;  %v7495_v53 = vpop.permute.xlu2 %2526 }
 0xdcd   : > { %4441 = vmatmul.msk.f32.gmra.mxu1 %vm1075_vm3, %v8774_v52  ;;  %4470 = vmatmul.msk.f32.gmra.mxu2 %vm1075_vm3, %v8775_v45  ;;  %v8780_v52 = vld [vmem:[#allocation149_spill] sm:$0xff]  ;;  %v8781_v45 = vld [vmem:[#allocation178_spill] sm:$0xff] }
 0xdce   : > { %4495 = vmatmul.msk.f32.gmra.mxu3 %vm1075_vm3, %v8776_v55  ;;  %v8782_v55 = vld [vmem:[#allocation203_spill] sm:$0xff] }
 0xdd1   : > { %v3771_v32 = vpop.f32.mrf.mxu3  ;;  %v7491_v11 = vpop.f32.mrf.mxu0 }
 0xdd2   : > { %v7489_v34 = vadd.f32 %v3771_v32, %v2712_v38  ;;  %v7493_v3 = vpop.f32.mrf.mxu1  ;;  %v2717_v32 = vpop.permute.xlu0 %2716 }
 0xdd4   : > { %8778 = vst [vmem:[#allocation46_spill] sm:$0xff] %v7489_v34  ;;  %4402 = vmatmul.msk.f32.gmra.mxu0 %vm1075_vm3, %v8779_v42  ;;  %v7509_v27 = vpop.permute.xlu2 %2541  ;;  %v8785_v42 = vld [vmem:[#allocation150_spill] sm:$0xff] }
 0xdd5   : > { %4442 = vmatmul.msk.f32.gmra.mxu1 %vm1075_vm3, %v8780_v52  ;;  %4471 = vmatmul.msk.f32.gmra.mxu2 %vm1075_vm3, %v8781_v45  ;;  %v8786_v52 = vld [vmem:[#allocation179_spill] sm:$0xff]  ;;  %v8787_v45 = vld [vmem:[#allocation204_spill] sm:$0xff] }
 0xdd6   : > { %4496 = vmatmul.msk.f32.gmra.mxu3 %vm1075_vm3, %v8782_v55 }
 0xdd9   : > { %v3774_v38 = vpop.f32.mrf.mxu3  ;;  %v7507_v34 = vpop.f32.mrf.mxu0 }
 0xdda   : > { %v7505_v23 = vadd.f32 %v3774_v38, %v2717_v32  ;;  %v3615_v14 = vpop.f32.mrf.mxu1 }
 0xddc   : > { %8783 = vst [vmem:[#allocation47_spill] sm:$0xff] %v7505_v23  ;;  %4403 = vmatmul.msk.f32.gmra.mxu0 %vm1075_vm3, %v8784_v37  ;;  %v8789_v23 = vld [vmem:[#allocation111_spill] sm:$0xff]  ;;  %v8791_v37 = vld [vmem:[#allocation180_spill] sm:$0xff] }
 0xddd   : > { %4443 = vmatmul.msk.f32.gmra.mxu1 %vm1075_vm3, %v8785_v42  ;;  %4472 = vmatmul.msk.f32.gmra.mxu2 %vm1075_vm3, %v8786_v52  ;;  %v8792_v42 = vld [vmem:[#allocation205_spill] sm:$0xff]  ;;  %v7531_v52 = vpop.permute.xlu2 %2556 }
 0xdde   : > { %4497 = vmatmul.msk.f32.gmra.mxu3 %vm1075_vm3, %v8787_v45 }
 0xde1   : > { %v7519_v55 = vpop.f32.mrf.mxu3  ;;  %v7521_v32 = vpop.f32.mrf.mxu0 }
 0xde2   : > { %8788 = vst [vmem:[#allocation48_spill] sm:$0xff] %v7519_v55  ;;  %v3618_v38 = vpop.f32.mrf.mxu1 }
 0xde4   : > { %4404 = vmatmul.msk.f32.gmra.mxu0 %vm1075_vm3, %v8789_v23  ;;  %v8795_v23 = vld [vmem:[#allocation152_spill] sm:$0xff] }
 0xde5   : > { %4444 = vmatmul.msk.f32.gmra.mxu1 %vm1075_vm3, %v8790_v61  ;;  %4473 = vmatmul.msk.f32.gmra.mxu2 %vm1075_vm3, %v8791_v37  ;;  %v8796_v61 = vld [vmem:[#allocation181_spill] sm:$0xff]  ;;  %v8797_v37 = vld [vmem:[#allocation206_spill] sm:$0xff] }
 0xde6   : > { %4498 = vmatmul.msk.f32.gmra.mxu3 %vm1075_vm3, %v8792_v42  ;;  %v7545_v42 = vpop.permute.xlu2 %2571 }
 0xde7   : > { %8798 = vst [vmem:[#allocation50_spill] sm:$0xff] %v7545_v42 }
 0xde9   : > { %v7533_v45 = vpop.f32.mrf.mxu3  ;;  %v7535_v47 = vpop.f32.mrf.mxu0 }
 0xdea   : > { %8793 = vst [vmem:[#allocation49_spill] sm:$0xff] %v7533_v45  ;;  %v3621_v31 = vpop.f32.mrf.mxu1 }
 0xdec   : > { %4405 = vmatmul.msk.f32.gmra.mxu0 %vm1075_vm3, %v8794_v7  ;;  %v8801_v7 = vld [vmem:[#allocation153_spill] sm:$0xff] }
 0xded   : > { %4445 = vmatmul.msk.f32.gmra.mxu1 %vm1075_vm3, %v8795_v23  ;;  %4474 = vmatmul.msk.f32.gmra.mxu2 %vm1075_vm3, %v8796_v61  ;;  %v8802_v23 = vld [vmem:[#allocation182_spill] sm:$0xff]  ;;  %v8803_v61 = vld [vmem:[#allocation207_spill] sm:$0xff] }
 0xdee   : > { %4499 = vmatmul.msk.f32.gmra.mxu3 %vm1075_vm3, %v8797_v37  ;;  %v7563_v17 = vpop.permute.xlu2 %2586 }
 0xdef   : > { %8805 = vst [vmem:[#allocation53_spill] sm:$0xff] %v7563_v17 }
 0xdf1   : > { %v7547_v59 = vpop.f32.mrf.mxu3  ;;  %v7549_v22 = vpop.f32.mrf.mxu0 }
 0xdf2   : > { %8799 = vst [vmem:[#allocation51_spill] sm:$0xff] %v7547_v59  ;;  %v3624_v8 = vpop.f32.mrf.mxu1 }
 0xdf4   : > { %4406 = vmatmul.msk.f32.gmra.mxu0 %vm1075_vm3, %v8800_v62  ;;  %v8807_v62 = vld [vmem:[#allocation154_spill] sm:$0xff] }
 0xdf5   : > { %4446 = vmatmul.msk.f32.gmra.mxu1 %vm1075_vm3, %v8801_v7  ;;  %4475 = vmatmul.msk.f32.gmra.mxu2 %vm1075_vm3, %v8802_v23  ;;  %v8808_v7 = vld [vmem:[#allocation183_spill] sm:$0xff]  ;;  %v8809_v23 = vld [vmem:[#allocation208_spill] sm:$0xff] }
 0xdf6   : > { %4500 = vmatmul.msk.f32.gmra.mxu3 %vm1075_vm3, %v8803_v61 }
 0xdf9   : > { %v7559_v37 = vpop.f32.mrf.mxu3  ;;  %v7561_v42 = vpop.f32.mrf.mxu0 }
 0xdfa   : > { %8804 = vst [vmem:[#allocation52_spill] sm:$0xff] %v7559_v37  ;;  %v3627_v40 = vpop.f32.mrf.mxu1  ;;  %v7579_v37 = vpop.permute.xlu2 %2601 }
 0xdfb   : > { %v3628_v59 = vadd.f32 %v3627_v40, %v7131_v24  ;;  %8811 = vst [vmem:[#allocation55_spill] sm:$0xff] %v7579_v37 }
 0xdfc   : > { %4407 = vmatmul.msk.f32.gmra.mxu0 %vm1075_vm3, %v8806_v18  ;;  %v3625_v18 = vadd.f32 %v3624_v8, %v7133_v5 }
 0xdfd   : > { %4447 = vmatmul.msk.f32.gmra.mxu1 %vm1075_vm3, %v8807_v62  ;;  %4476 = vmatmul.msk.f32.gmra.mxu2 %vm1075_vm3, %v8808_v7  ;;  %v8812_v62 = vld [vmem:[#allocation115_spill] sm:$0xff]  ;;  %v3919_v40 = vmax.f32 %v3628_v59, 0.0  ;;  %v8821_v59 = vld [vmem:[#allocation185_spill] sm:$0xff] }
 0xdfe   : > { %4501 = vmatmul.msk.f32.gmra.mxu3 %vm1075_vm3, %v8809_v23  ;;  %v8813_v7 = vld [vmem:[#allocation155_spill] sm:$0xff]  ;;  %v3918_v5 = vmax.f32 %v3625_v18, 0.0  ;;  %v8822_v18 = vld [vmem:[#allocation210_spill] sm:$0xff] }
 0xe01   : > { %v7573_v61 = vpop.f32.mrf.mxu3  ;;  %v7575_v55 = vpop.f32.mrf.mxu0 }
 0xe02   : > { %8810 = vst [vmem:[#allocation54_spill] sm:$0xff] %v7573_v61  ;;  %v3630_v45 = vpop.f32.mrf.mxu1  ;;  %v8815_v61 = vld [vmem:[#allocation209_spill] sm:$0xff] }
 0xe03   : > { %v3631_v17 = vadd.f32 %v3630_v45, %v7112_v33  ;;  %v3622_v33 = vadd.f32 %v3621_v31, %v7102_v10  ;;  %v7603_v31 = vpop.f32.mrf.mxu2 }
 0xe04   : > { %4408 = vmatmul.msk.f32.gmra.mxu0 %vm1075_vm3, %v8812_v62  ;;  %v8818_v62 = vld [vmem:[#allocation116_spill] sm:$0xff]  ;;  %8820 = vst [vmem:[#allocation58_spill] sm:$0xff] %v7603_v31 }
 0xe05   : > { %4448 = vmatmul.msk.f32.gmra.mxu1 %vm1075_vm3, %v8813_v7  ;;  %v3920_v23 = vmax.f32 %v3631_v17, 0.0  ;;  %4477 = vmatmul.msk.f32.gmra.mxu2 %vm1075_vm3, %v8814_v51  ;;  %v3619_v17 = vadd.f32 %v3618_v38, %v7124_v57  ;;  %v3616_v51 = vadd.f32 %v3615_v14, %v7126_v58  ;;  %v3917_v10 = vmax.f32 %v3622_v33, 0.0  ;;  %v7609_v7 = vpop.permute.xlu2 %2616  ;;  %v8841_v31 = vld [vmem:[#allocation120_spill] sm:$0xff] }
 0xe06   : > { %4502 = vmatmul.msk.f32.gmra.mxu3 %vm1075_vm3, %v8815_v61  ;;  %v8819_v61 = vld [vmem:[#allocation156_spill] sm:$0xff]  ;;  %8823 = vst [vmem:[#allocation59_spill] sm:$0xff] %v7609_v7  ;;  %v3613_v57 = vadd.f32 %v7493_v3, %v7096_v16  ;;  %v3610_v14 = vadd.f32 %v7477_v54, %v7117_v43  ;;  %v8826_v3 = vld [vmem:[#allocation157_spill] sm:$0xff] }
 0xe07   : > { %4073 = vmatpush.msrb.mxu3 %v3920_v23  ;;  %v3916_v58 = vmax.f32 %v3619_v17, 0.0  ;;  %v3915_v23 = vmax.f32 %v3616_v51, 0.0  ;;  %v8827_v17 = vld [vmem:[#allocation211_spill] sm:$0xff] }
 0xe08   : > { %v3913_v16 = vmax.f32 %v3610_v14, 0.0 }
 0xe09   : > { %v7591_v24 = vpop.f32.mrf.mxu3  ;;  %4074 = vmatpush.msrb.mxu3 %v3919_v40  ;;  %v7593_v8 = vpop.f32.mrf.mxu0 }
 0xe0a   : > { %8816 = vst [vmem:[#allocation56_spill] sm:$0xff] %v7591_v24  ;;  %v7595_v45 = vpop.f32.mrf.mxu1 }
 0xe0b   : > { %8817 = vst [vmem:[#allocation57_spill] sm:$0xff] %v7595_v45  ;;  %4075 = vmatpush.msrb.mxu3 %v3918_v5  ;;  %v3914_v5 = vmax.f32 %v3613_v57, 0.0 }
 0xe0c   : > { %4409 = vmatmul.msk.f32.gmra.mxu0 %vm1075_vm3, %v8818_v62  ;;  %v8825_v62 = vld [vmem:[#allocation117_spill] sm:$0xff] }
 0xe0d   : > { %4449 = vmatmul.msk.f32.gmra.mxu1 %vm1075_vm3, %v8819_v61  ;;  %4478 = vmatmul.msk.f32.gmra.mxu2 %vm1075_vm3, %v8821_v59  ;;  %v7627_v43 = vpop.permute.xlu2 %2631  ;;  %v8831_v59 = vld [vmem:[#allocation158_spill] sm:$0xff] }
 0xe0e   : > { %4503 = vmatmul.msk.f32.gmra.mxu3 %vm1075_vm3, %v8822_v18  ;;  %8828 = vst [vmem:[#allocation61_spill] sm:$0xff] %v7627_v43  ;;  %v8832_v18 = vld [vmem:[#allocation212_spill] sm:$0xff]  ;;  %v8846_v43 = vld [vmem:[#allocation121_spill] sm:$0xff] }
 0xe0f   : > { %4076 = vmatpush.msrb.mxu3 %v3917_v10  ;;  %v8830_v10 = vld [vmem:[#allocation118_spill] sm:$0xff] }
 0xe11   : > { %4077 = vmatpush.msrb.mxu3 %v3916_v58  ;;  %v7615_v38 = vpop.f32.mrf.mxu3  ;;  %v7617_v40 = vpop.f32.mrf.mxu0 }
 0xe12   : > { %8824 = vst [vmem:[#allocation60_spill] sm:$0xff] %v7615_v38  ;;  %v7619_v33 = vpop.f32.mrf.mxu1  ;;  %v8851_v38 = vld [vmem:[#allocation216_spill] sm:$0xff] }
 0xe13   : > { %4078 = vmatpush.msrb.mxu3 %v3915_v23 }
 0xe14   : > { %4410 = vmatmul.msk.f32.gmra.mxu0 %vm1075_vm3, %v8825_v62  ;;  %v8836_v62 = vld [vmem:[#allocation159_spill] sm:$0xff] }
 0xe15   : > { %4079 = vmatpush.msrb.mxu3 %v3914_v5  ;;  %4450 = vmatmul.msk.f32.gmra.mxu1 %vm1075_vm3, %v8826_v3  ;;  %v7643_v23 = vpop.permute.xlu2 %2646  ;;  %v8835_v5 = vld [vmem:[#allocation119_spill] sm:$0xff] }
 0xe16   : > { %4504 = vmatmul.msk.f32.gmra.mxu3 %vm1075_vm3, %v8827_v17  ;;  %8834 = vst [vmem:[#allocation64_spill] sm:$0xff] %v7643_v23  ;;  %v8842_v23 = vld [vmem:[#allocation160_spill] sm:$0xff] }
 0xe17   : > { %4080 = vmatpush.msrb.mxu3 %v3913_v16  ;;  %v8837_v16 = vld [vmem:[#allocation213_spill] sm:$0xff] }
 0xe19   : > { %v7629_v54 = vpop.f32.mrf.mxu3  ;;  %v3519_v51 = vpop.f32.mrf.mxu0 }
 0xe1a   : > { %8829 = vst [vmem:[#allocation62_spill] sm:$0xff] %v7629_v54  ;;  %v7631_v61 = vpop.f32.mrf.mxu1 }
 0xe1c   : > { %4411 = vmatmul.msk.f32.gmra.mxu0 %vm1075_vm3, %v8830_v10 }
 0xe1d   : > { %4451 = vmatmul.msk.f32.gmra.mxu1 %vm1075_vm3, %v8831_v59  ;;  %v7655_v59 = vpop.f32.mrf.mxu2 }
 0xe1e   : > { %4505 = vmatmul.msk.f32.gmra.mxu3 %vm1075_vm3, %v8832_v18  ;;  %8839 = vst [vmem:[#allocation66_spill] sm:$0xff] %v7655_v59  ;;  %v7657_v18 = vpop.permute.xlu2 %2661 }
 0xe1f   : > { %8840 = vst [vmem:[#allocation67_spill] sm:$0xff] %v7657_v18  ;;  %v8847_v18 = vld [vmem:[#allocation215_spill] sm:$0xff] }
 0xe21   : > { %v7639_v57 = vpop.f32.mrf.mxu3  ;;  %v3522_v58 = vpop.f32.mrf.mxu0 }
 0xe22   : > { %8833 = vst [vmem:[#allocation63_spill] sm:$0xff] %v7639_v57  ;;  %v7641_v14 = vpop.f32.mrf.mxu1  ;;  %v3523_v45 = vadd.f32 %v3522_v58, %v7032_v4  ;;  %v8859_v4 = vld [vmem:[#allocation124_spill] sm:$0xff]  ;;  %v8860_v58 = vld [vmem:[#allocation218_spill] sm:$0xff] }
 0xe24   : > { %4412 = vmatmul.msk.f32.gmra.mxu0 %vm1075_vm3, %v8835_v5  ;;  %v8843_v5 = vld [vmem:[#allocation214_spill] sm:$0xff] }
 0xe25   : > { %4452 = vmatmul.msk.f32.gmra.mxu1 %vm1075_vm3, %v8836_v62  ;;  %v7669_v7 = vpop.f32.mrf.mxu2 }
 0xe26   : > { %4506 = vmatmul.msk.f32.gmra.mxu3 %vm1075_vm3, %v8837_v16  ;;  %8845 = vst [vmem:[#allocation69_spill] sm:$0xff] %v7669_v7 }
 0xe29   : > { %v7651_v3 = vpop.f32.mrf.mxu3  ;;  %v3525_v17 = vpop.f32.mrf.mxu0 }
 0xe2a   : > { %8838 = vst [vmem:[#allocation65_spill] sm:$0xff] %v7651_v3  ;;  %v7653_v10 = vpop.f32.mrf.mxu1 }
 0xe2c   : > { %4413 = vmatmul.msk.f32.gmra.mxu0 %vm1075_vm3, %v8841_v31  ;;  %v7675_v31 = vpop.permute.xlu2 %2676 }
 0xe2d   : > { %4453 = vmatmul.msk.f32.gmra.mxu1 %vm1075_vm3, %v8842_v23  ;;  %8848 = vst [vmem:[#allocation70_spill] sm:$0xff] %v7675_v31  ;;  %v7685_v7 = vpop.f32.mrf.mxu2 }
 0xe2e   : > { %4507 = vmatmul.msk.f32.gmra.mxu3 %vm1075_vm3, %v8843_v5  ;;  %v8850_v5 = vld [vmem:[#allocation122_spill] sm:$0xff]  ;;  %8852 = vst [vmem:[#allocation72_spill] sm:$0xff] %v7685_v7 }
 0xe31   : > { %v7665_v62 = vpop.f32.mrf.mxu3  ;;  %v3528_v16 = vpop.f32.mrf.mxu0 }
 0xe32   : > { %8844 = vst [vmem:[#allocation68_spill] sm:$0xff] %v7665_v62  ;;  %v7667_v37 = vpop.f32.mrf.mxu1  ;;  %v3529_v62 = vadd.f32 %v3528_v16, %v7062_v28 }
 0xe34   : > { %4414 = vmatmul.msk.f32.gmra.mxu0 %vm1075_vm3, %v8846_v43  ;;  %v7687_v54 = vpop.permute.xlu2 %2691 }
 0xe35   : > { %8853 = vst [vmem:[#allocation73_spill] sm:$0xff] %v7687_v54  ;;  %v3526_v54 = vadd.f32 %v3525_v17, %v7064_v30  ;;  %v7713_v17 = vpop.permute.xlu0 %2876 }
 0xe36   : > { %4508 = vmatmul.msk.f32.gmra.mxu3 %vm1075_vm3, %v8847_v18  ;;  %8858 = vst [vmem:[#allocation76_spill] sm:$0xff] %v7713_v17 }
 0xe37   : > { %v3885_v30 = vmax.f32 %v3526_v54, 0.0  ;;  %v3511_v54 = vadd.f32 %v7575_v55, %v7050_v6  ;;  %v3505_v6 = vadd.f32 %v7549_v22, %v7022_v60  ;;  %v8862_v55 = vld [vmem:[#allocation125_spill] sm:$0xff] }
 0xe39   : > { %v7677_v59 = vpop.f32.mrf.mxu3  ;;  %v3531_v23 = vpop.f32.mrf.mxu0  ;;  %v3878_v60 = vmax.f32 %v3505_v6, 0.0  ;;  %v8868_v6 = vld [vmem:[#allocation127_spill] sm:$0xff] }
 0xe3a   : > { %8849 = vst [vmem:[#allocation71_spill] sm:$0xff] %v7677_v59  ;;  %v7679_v24 = vpop.f32.mrf.mxu1  ;;  %v3532_v31 = vadd.f32 %v3531_v23, %v7041_v19  ;;  %v8855_v59 = vld [vmem:[#allocation123_spill] sm:$0xff] }
 0xe3c   : > { %4415 = vmatmul.msk.f32.gmra.mxu0 %vm1075_vm3, %v8850_v5  ;;  %v3887_v7 = vmax.f32 %v3532_v31, 0.0  ;;  %v3517_v31 = vadd.f32 %v7617_v40, %v7058_v21 }
 0xe3e   : > { %4509 = vmatmul.msk.f32.gmra.mxu3 %vm1075_vm3, %v8851_v38  ;;  %v8856_v38 = vld [vmem:[#allocation217_spill] sm:$0xff] }
 0xe41   : > { %v7689_v43 = vpop.f32.mrf.mxu3  ;;  %v3534_v18 = vpop.f32.mrf.mxu0 }
 0xe42   : > { %8854 = vst [vmem:[#allocation74_spill] sm:$0xff] %v7689_v43  ;;  %v7691_v57 = vpop.f32.mrf.mxu1  ;;  %v3535_v3 = vadd.f32 %v3534_v18, %v7070_v36  ;;  %v7701_v43 = vpop.f32.mrf.mxu2  ;;  %v3886_v36 = vmax.f32 %v3529_v62, 0.0  ;;  %v3514_v62 = vadd.f32 %v7593_v8, %v7027_v13 }
 0xe44   : > { %4416 = vmatmul.msk.f32.gmra.mxu0 %vm1075_vm3, %v8855_v59  ;;  %v3888_v5 = vmax.f32 %v3535_v3, 0.0  ;;  %v7710_v3 = vpop.permute.xlu2 %2706  ;;  %v3520_v59 = vadd.f32 %v3519_v51, %v7056_v20  ;;  %v3882_v51 = vmax.f32 %v3517_v31, 0.0  ;;  %v3881_v13 = vmax.f32 %v3514_v62, 0.0  ;;  %v7753_v31 = vpop.permute.xlu1 %2701 }
 0xe45   : > { %8857 = vst [vmem:[#allocation75_spill] sm:$0xff] %v7710_v3 }
 0xe46   : > { %4510 = vmatmul.msk.f32.gmra.mxu3 %vm1075_vm3, %v8856_v38  ;;  %4033 = vmatpush.msrb.mxu1 %v3888_v5  ;;  %v3883_v20 = vmax.f32 %v3520_v59, 0.0  ;;  %v3880_v5 = vmax.f32 %v3511_v54, 0.0  ;;  %v8863_v38 = vld [vmem:[#allocation219_spill] sm:$0xff]  ;;  %v3499_v59 = vadd.f32 %v7521_v32, %v7043_v15  ;;  %8865 = vst [vmem:[#allocation79_spill] sm:$0xff] %v7753_v31  ;;  %v8866_v15 = vld [vmem:[#allocation126_spill] sm:$0xff] }
 0xe48   : > { %4034 = vmatpush.msrb.mxu1 %v3887_v7  ;;  %v3884_v7 = vmax.f32 %v3523_v45, 0.0  ;;  %v3508_v45 = vadd.f32 %v7561_v42, %v7052_v29  ;;  %v3502_v29 = vadd.f32 %v7535_v47, %v7017_v56  ;;  %v3493_v56 = vadd.f32 %v7491_v11, %v7045_v1 }
 0xe49   : > { %v7704_v19 = vpop.f32.mrf.mxu3  ;;  %v7706_v28 = vpop.f32.mrf.mxu0  ;;  %v3876_v32 = vmax.f32 %v3499_v59, 0.0 }
 0xe4a   : > { %v7708_v16 = vpop.f32.mrf.mxu1  ;;  %4035 = vmatpush.msrb.mxu1 %v3886_v36  ;;  %v7729_v40 = vpop.f32.mrf.mxu2  ;;  %v3879_v42 = vmax.f32 %v3508_v45, 0.0  ;;  %v3874_v1 = vmax.f32 %v3493_v56, 0.0  ;;  %v4017_v45 = vld.sshfl [vmem:[#allocation1] sm:$0xff pattern:$0x75316420] }
 0xe4b   : > { %v7743_v36 = vpop.permute.xlu0 %2696 }
 0xe4c   : > { %4417 = vmatmul.msk.f32.gmra.mxu0 %vm1075_vm3, %v8859_v4  ;;  %4036 = vmatpush.msrb.mxu1 %v3885_v30  ;;  %v7735_v8 = vpop.permute.xlu2 %2871  ;;  %8864 = vst [vmem:[#allocation78_spill] sm:$0xff] %v7743_v36  ;;  %v3496_v4 = vadd.f32 %v7507_v34, %v7034_v0 }
 0xe4d   : > { %8861 = vst [vmem:[#allocation77_spill] sm:$0xff] %v7735_v8  ;;  %v8880_v8 = vld [vmem:[#allocation131_spill] sm:$0xff] }
 0xe4e   : > { %4511 = vmatmul.msk.f32.gmra.mxu3 %vm1075_vm3, %v8860_v58  ;;  %4037 = vmatpush.msrb.mxu1 %v3884_v7  ;;  %v3877_v7 = vmax.f32 %v3502_v29, 0.0  ;;  %v3875_v0 = vmax.f32 %v3496_v4, 0.0 }
 0xe50   : > { %4038 = vmatpush.msrb.mxu1 %v3883_v20  ;;  %v3490_v20 = vadd.f32 %v7475_v63, %v7036_v9 }
 0xe51   : > { %v7725_v23 = vpop.f32.mrf.mxu0  ;;  %v7733_v18 = vpop.f32.mrf.mxu3 }
 0xe52   : > { %v7727_v21 = vpop.f32.mrf.mxu1  ;;  %4039 = vmatpush.msrb.mxu1 %v3882_v51  ;;  %v7759_v47 = vpop.f32.mrf.mxu2  ;;  %v3873_v51 = vmax.f32 %v3490_v20, 0.0  ;;  %v8875_v20 = vld [vmem:[#allocation129_spill] sm:$0xff] }
 0xe53   : > { %v7769_v34 = vpop.permute.xlu0 %2791 }
 0xe54   : > { %4418 = vmatmul.msk.f32.gmra.mxu0 %vm1075_vm3, %v8862_v55  ;;  %4040 = vmatpush.msrb.mxu1 %v3881_v13  ;;  %v7765_v62 = vpop.permute.xlu2 %2866  ;;  %v7773_v13 = vpop.permute.xlu1 %2796 }
 0xe55   : > { %8867 = vst [vmem:[#allocation80_spill] sm:$0xff] %v7765_v62 }
 0xe56   : > { %4512 = vmatmul.msk.f32.gmra.mxu3 %vm1075_vm3, %v8863_v38  ;;  %4041 = vmatpush.msrb.mxu1 %v3880_v5 }
 0xe58   : > { %4042 = vmatpush.msrb.mxu1 %v3879_v42  ;;  %v8871_v42 = vld [vmem:[#allocation128_spill] sm:$0xff] }
 0xe59   : > { %v7749_v22 = vpop.f32.mrf.mxu0  ;;  %v7761_v58 = vpop.f32.mrf.mxu3 }
 0xe5a   : > { %v7751_v30 = vpop.f32.mrf.mxu1  ;;  %4043 = vmatpush.msrb.mxu1 %v3878_v60  ;;  %v7777_v9 = vpop.f32.mrf.mxu2 }
 0xe5b   : > { %v7785_v29 = vpop.permute.xlu0 %2856 }
 0xe5c   : > { %4419 = vmatmul.msk.f32.gmra.mxu0 %vm1075_vm3, %v8866_v15  ;;  %4044 = vmatpush.msrb.mxu1 %v3877_v7  ;;  %v7781_v55 = vpop.permute.xlu2 %2786  ;;  %8870 = vst [vmem:[#allocation82_spill] sm:$0xff] %v7785_v29  ;;  %v7789_v59 = vpop.permute.xlu1 %2861 }
 0xe5d   : > { %8872 = vst [vmem:[#allocation83_spill] sm:$0xff] %v7789_v59 }
 0xe5e   : > { %4045 = vmatpush.msrb.mxu1 %v3876_v32 }
 0xe60   : > { %4046 = vmatpush.msrb.mxu1 %v3875_v0 }
 0xe61   : > { %v7771_v11 = vpop.f32.mrf.mxu0  ;;  %v7779_v63 = vpop.f32.mrf.mxu3 }
 0xe62   : > { %v3666_v54 = vpop.f32.mrf.mxu1  ;;  %4047 = vmatpush.msrb.mxu1 %v3874_v1  ;;  %8869 = vst [vmem:[#allocation81_spill] sm:$0xff] %v7779_v63  ;;  %v7791_v60 = vpop.f32.mrf.mxu2  ;;  %v8877_v63 = vld [vmem:[#allocation130_spill] sm:$0xff] }
 0xe63   : > { %v7799_v32 = vpop.permute.xlu0 %2776 }
 0xe64   : > { %4420 = vmatmul.msk.f32.gmra.mxu0 %vm1075_vm3, %v8868_v6  ;;  %4048 = vmatpush.msrb.mxu1 %v3873_v51  ;;  %v7797_v15 = vpop.permute.xlu2 %2851  ;;  %v7803_v0 = vpop.permute.xlu1 %2781 }
 0xe65   : > { %4049 = vmatmul.f32.vlgmr.msrb.gmra.mxu1 %v4017_v45  ;;  %8874 = vst [vmem:[#allocation85_spill] sm:$0xff] %v7797_v15 }
 0xe69   : > { %v7783_v5 = vpop.f32.mrf.mxu0  ;;  %v7793_v4 = vpop.f32.mrf.mxu3 }
 0xe6a   : > { %v3669_v38 = vpop.f32.mrf.mxu1  ;;  %8873 = vst [vmem:[#allocation84_spill] sm:$0xff] %v7793_v4  ;;  %v7807_v45 = vpop.f32.mrf.mxu2 }
 0xe6b   : > { %v7815_v4 = vpop.permute.xlu0 %2841 }
 0xe6c   : > { %4421 = vmatmul.msk.f32.gmra.mxu0 %vm1075_vm3, %v8871_v42  ;;  %v7811_v42 = vpop.permute.xlu2 %2771  ;;  %8878 = vst [vmem:[#allocation87_spill] sm:$0xff] %v7815_v4  ;;  %v3670_v4 = vadd.f32 %v3669_v38, %v7509_v27  ;;  %v3661_v27 = vadd.f32 %v7727_v21, %v7495_v53  ;;  %v3652_v21 = vadd.f32 %v7679_v24, %v7473_v35 }
 0xe71   : > { %v7795_v7 = vpop.f32.mrf.mxu0  ;;  %v7809_v6 = vpop.f32.mrf.mxu3 }
 0xe72   : > { %v3672_v56 = vpop.f32.mrf.mxu1  ;;  %8876 = vst [vmem:[#allocation86_spill] sm:$0xff] %v7809_v6  ;;  %v7823_v29 = vpop.f32.mrf.mxu2 }
 0xe73   : > { %v3673_v6 = vadd.f32 %v3672_v56, %v7327_v2  ;;  %v3664_v2 = vadd.f32 %v7751_v30, %v7312_v49  ;;  %v3933_v56 = vmax.f32 %v3670_v4, 0.0  ;;  %v3655_v49 = vadd.f32 %v7691_v57, %v7295_v41 }
 0xe74   : > { %4422 = vmatmul.msk.f32.gmra.mxu0 %vm1075_vm3, %v8875_v20  ;;  %v7819_v20 = vpop.permute.xlu1 %2846  ;;  %v3930_v30 = vmax.f32 %v3661_v27, 0.0  ;;  %v3646_v41 = vadd.f32 %v7653_v10, %v7279_v46  ;;  %v3927_v57 = vmax.f32 %v3652_v21, 0.0  ;;  %v3637_v10 = vadd.f32 %v7619_v33, %v7256_v44 }
 0xe75   : > { %8879 = vst [vmem:[#allocation88_spill] sm:$0xff] %v7819_v20  ;;  %v7833_v20 = vpop.permute.xlu0 %2761  ;;  %v3817_v21 = vadd.f32 %v7704_v19, %v7781_v55 }
 0xe79   : > { %v7805_v1 = vpop.f32.mrf.mxu0  ;;  %v7826_v59 = vpop.f32.mrf.mxu3 }
 0xe7a   : > { %v3675_v51 = vpop.f32.mrf.mxu1 }
 0xe7b   : > { %v3676_v3 = vadd.f32 %v3675_v51, %v7314_v48  ;;  %v3667_v48 = vadd.f32 %v3666_v54, %v7299_v39  ;;  %v3658_v39 = vadd.f32 %v7708_v16, %v7284_v26  ;;  %v3649_v26 = vadd.f32 %v7667_v37, %v7269_v50 }
 0xe7c   : > { %4423 = vmatmul.msk.f32.gmra.mxu0 %vm1075_vm3, %v8877_v63  ;;  %v7830_v63 = vpop.permute.xlu2 %2836  ;;  %v3928_v16 = vmax.f32 %v3655_v49, 0.0  ;;  %v3640_v37 = vadd.f32 %v7631_v61, %v7254_v12  ;;  %v3922_v49 = vmax.f32 %v3637_v10, 0.0  ;;  %v3820_v12 = vadd.f32 %v7733_v18, %v7769_v34  ;;  %v8884_v34 = vld [vmem:[#allocation71_spill] sm:$0xff] }
 0xe7d   : > { %v3935_v17 = vmax.f32 %v3676_v3, 0.0  ;;  %v3932_v3 = vmax.f32 %v3667_v48, 0.0  ;;  %v7856_v53 = vpop.permute.xlu0 %2826  ;;  %v3926_v35 = vmax.f32 %v3649_v26, 0.0 }
 0xe81   : > { %v7817_v36 = vpop.f32.mrf.mxu0  ;;  %v7848_v54 = vpop.f32.mrf.mxu3 }
 0xe82   : > { %v3678_v31 = vpop.f32.mrf.mxu1 }
 0xe83   : > { %v3679_v15 = vadd.f32 %v3678_v31, %v7531_v52  ;;  %v3934_v52 = vmax.f32 %v3673_v6, 0.0  ;;  %v3643_v6 = vadd.f32 %v7641_v14, %v7459_v25  ;;  %v8881_v14 = vld [vmem:[#allocation27_spill] sm:$0xff] }
 0xe84   : > { %4424 = vmatmul.msk.f32.gmra.mxu0 %vm1075_vm3, %v8880_v8  ;;  %v7840_v8 = vpop.permute.xlu1 %2766  ;;  %v7850_v38 = vpop.permute.xlu2 %2756  ;;  %vm4198_vm3 = vcmask 59392  }
 0xe85   : > { %v3936_v62 = vmax.f32 %v3679_v15, 0.0  ;;  %v3929_v15 = vmax.f32 %v3658_v39, 0.0  ;;  %v2747_v46 = vpop.permute.xlu0 %2746  ;;  %v3924_v25 = vmax.f32 %v3643_v6, 0.0  ;;  %v3823_v39 = vadd.f32 %v7761_v58, %v7773_v13  ;;  %v8883_v58 = vld [vmem:[#allocation74_spill] sm:$0xff]  ;;  %v8885_v6 = vld [vmem:[#allocation68_spill] sm:$0xff] }
 0xe86   : > { %v3814_v13 = vadd.f32 %v8883_v58, %v7803_v0  ;;  %v8890_v58 = vld [vmem:[#allocation56_spill] sm:$0xff] }
 0xe87   : > { %4093 = vmatpush.msra.mxu1 %v3936_v62  ;;  %v7844_v62 = vpop.f32.mrf.mxu2 }
 0xe89   : > { %4094 = vmatpush.msra.mxu1 %v3935_v17  ;;  %v7836_v31 = vpop.f32.mrf.mxu0  ;;  %v3931_v17 = vmax.f32 %v3664_v2, 0.0  ;;  %v7870_v24 = vpop.f32.mrf.mxu3  ;;  %v3925_v2 = vmax.f32 %v3646_v41, 0.0  ;;  %v3811_v41 = vadd.f32 %v8884_v34, %v7799_v32  ;;  %v8887_v32 = vld [vmem:[#allocation63_spill] sm:$0xff]  ;;  %v8891_v34 = vld [vmem:[#allocation54_spill] sm:$0xff] }
 0xe8b   : > { %4095 = vmatpush.msra.mxu1 %v3934_v52  ;;  %v3980_v10 = vmax.f32 %v3811_v41, 0.0 }
 0xe8c   : > { %v7862_v51 = vpop.permute.xlu1 %2831  ;;  %v7874_v50 = vpop.permute.xlu2 %2821 }
 0xe8d   : > { %4096 = vmatpush.msra.mxu1 %v3933_v56  ;;  %v8882_v56 = vld [vmem:[#allocation57_spill] sm:$0xff]  ;;  %v7896_v18 = vpop.permute.xlu0 %2811 }
 0xe8e   : > { %v3634_v27 = vadd.f32 %v8882_v56, %v8881_v14  ;;  %v3802_v56 = vadd.f32 %v8887_v32, %v7833_v20 }
 0xe8f   : > { %4097 = vmatpush.msra.mxu1 %v3932_v3  ;;  %v7868_v48 = vpop.f32.mrf.mxu2  ;;  %v3923_v3 = vmax.f32 %v3640_v37, 0.0  ;;  %v3981_v37 = vmax.f32 %v3814_v13, 0.0  ;;  %v3793_v13 = vadd.f32 %v8890_v58, %v2747_v46 }
 0xe91   : > { %4098 = vmatpush.msra.mxu1 %v3931_v17  ;;  %v7854_v4 = vpop.f32.mrf.mxu0  ;;  %v7890_v33 = vpop.f32.mrf.mxu3 }
 0xe93   : > { %4099 = vmatpush.msra.mxu1 %v3930_v30  ;;  %v3921_v30 = vmax.f32 %v3634_v27, 0.0 }
 0xe94   : > { %v2752_v17 = vpop.permute.xlu1 %2751  ;;  %v2742_v26 = vpop.permute.xlu2 %2741 }
 0xe95   : > { %4100 = vmatpush.msra.mxu1 %v3929_v15  ;;  %v3984_v15 = vmax.f32 %v3823_v39, 0.0  ;;  %v3790_v41 = vadd.f32 %v8891_v34, %v2742_v26  ;;  %v8897_v34 = vld [vmem:[#allocation20_spill] sm:$0xff] }
 0xe97   : > { %4101 = vmatpush.msra.mxu1 %v3928_v16  ;;  %v7888_v44 = vpop.f32.mrf.mxu2  ;;  %v3983_v16 = vmax.f32 %v3820_v12, 0.0  ;;  %v2732_v12 = vpop.permute.xlu0 %2731 }
 0xe99   : > { %4102 = vmatpush.msra.mxu1 %v3927_v57  ;;  %v7872_v52 = vpop.f32.mrf.mxu0  ;;  %v3982_v57 = vmax.f32 %v3817_v21, 0.0  ;;  %v7908_v14 = vpop.f32.mrf.mxu3  ;;  %v3977_v21 = vmax.f32 %v3802_v56, 0.0 }
 0xe9b   : > { %4103 = vmatpush.msra.mxu1 %v3926_v35  ;;  %v3808_v35 = vadd.f32 %v8885_v6, %v7811_v42 }
 0xe9c   : > { %v7902_v55 = vpop.permute.xlu1 %2816  ;;  %v7912_v42 = vpop.permute.xlu2 %2806 }
 0xe9d   : > { %4104 = vmatpush.msra.mxu1 %v3925_v2  ;;  %v8886_v2 = vld [vmem:[#allocation65_spill] sm:$0xff]  ;;  %v3979_v27 = vmax.f32 %v3808_v35, 0.0  ;;  %v3974_v35 = vmax.f32 %v3793_v13, 0.0 }
 0xe9e   : > { %v3805_v0 = vadd.f32 %v8886_v2, %v7840_v8  ;;  %v8889_v8 = vld [vmem:[#allocation60_spill] sm:$0xff] }
 0xe9f   : > { %4105 = vmatpush.msra.mxu1 %v3924_v25  ;;  %v7906_v25 = vpop.f32.mrf.mxu2  ;;  %v2722_v56 = vpop.permute.xlu0 %2721 }
 0xea1   : > { %4106 = vmatpush.msra.mxu1 %v3923_v3  ;;  %v7886_v61 = vpop.f32.mrf.mxu0  ;;  %v8888_v3 = vld [vmem:[#allocation62_spill] sm:$0xff] }
 0xea2   : > { %v3799_v39 = vadd.f32 %v8888_v3, %v7850_v38  ;;  %v7921_v38 = vpop.f32.mrf.mxu3 }
 0xea3   : > { %4107 = vmatpush.msra.mxu1 %v3922_v49  ;;  %v3978_v49 = vmax.f32 %v3805_v0, 0.0  ;;  %v3973_v0 = vmax.f32 %v3790_v41, 0.0 }
 0xea4   : > { %v2737_v20 = vpop.permute.xlu1 %2736 }
 0xea5   : > { %4108 = vmatpush.msra.mxu1 %v3921_v30  ;;  %v3796_v30 = vadd.f32 %v8889_v8, %v2752_v17  ;;  %v2727_v17 = vpop.permute.xlu2 %2726 }
 0xea7   : > { %4153 = vmatpush.msrb.mxu1 %v3984_v15  ;;  %v7919_v6 = vpop.f32.mrf.mxu2 }
 0xea9   : > { %4154 = vmatpush.msrb.mxu1 %v3983_v16  ;;  %v3573_v19 = vpop.f32.mrf.mxu0  ;;  %v3976_v16 = vmax.f32 %v3799_v39, 0.0 }
 0xeaa   : > { %v7929_v58 = vpop.f32.mrf.mxu3 }
 0xeab   : > { %4155 = vmatpush.msrb.mxu1 %v3982_v57  ;;  %v3975_v57 = vmax.f32 %v3796_v30, 0.0 }
 0xead   : > { %4156 = vmatpush.msrb.mxu1 %v3981_v37  ;;  %v8892_v37 = vld [vmem:[#allocation52_spill] sm:$0xff] }
 0xeae   : > { %v3787_v2 = vadd.f32 %v8892_v37, %v2737_v20 }
 0xeaf   : > { %4157 = vmatpush.msrb.mxu1 %v3980_v10  ;;  %v8893_v10 = vld [vmem:[#allocation51_spill] sm:$0xff] }
 0xeb0   : > { %v3784_v32 = vadd.f32 %v8893_v10, %v2732_v12  ;;  %v3972_v26 = vmax.f32 %v3787_v2, 0.0  ;;  %v8896_v12 = vld [vmem:[#allocation21_spill] sm:$0xff]  ;;  %v8899_v2 = vld [vmem:[#allocation18_spill] sm:$0xff]  ;;  %v8900_v10 = vld [vmem:[#allocation19_spill] sm:$0xff] }
 0xeb1   : > { %4158 = vmatpush.msrb.mxu1 %v3979_v27  ;;  %v3576_v15 = vpop.f32.mrf.mxu0  ;;  %v8894_v27 = vld [vmem:[#allocation49_spill] sm:$0xff] }
 0xeb2   : > { %v3781_v3 = vadd.f32 %v8894_v27, %v2727_v17  ;;  %v3971_v39 = vmax.f32 %v3784_v32, 0.0  ;;  %v3574_v17 = vadd.f32 %v3573_v19, %v8899_v2  ;;  %v3571_v32 = vadd.f32 %v7886_v61, %v8900_v10  ;;  %v8902_v19 = vld [vmem:[#allocation15_spill] sm:$0xff]  ;;  %v8903_v61 = vld [vmem:[#allocation16_spill] sm:$0xff] }
 0xeb3   : > { %4159 = vmatpush.msrb.mxu1 %v3978_v49  ;;  %v8895_v49 = vld [vmem:[#allocation48_spill] sm:$0xff] }
 0xeb4   : > { %v3778_v8 = vadd.f32 %v8895_v49, %v2722_v56  ;;  %v3970_v30 = vmax.f32 %v3781_v3, 0.0  ;;  %v7943_v49 = vpop.f32.mrf.mxu3 }
 0xeb5   : > { %4160 = vmatpush.msrb.mxu1 %v3977_v21  ;;  %v7927_v21 = vpop.f32.mrf.mxu2 }
 0xeb6   : > { %v3969_v13 = vmax.f32 %v3778_v8, 0.0  ;;  %v3565_v8 = vadd.f32 %v7854_v4, %v8902_v19 }
 0xeb7   : > { %4161 = vmatpush.msrb.mxu1 %v3976_v16 }
 0xeb9   : > { %4162 = vmatpush.msrb.mxu1 %v3975_v57  ;;  %v3579_v46 = vpop.f32.mrf.mxu0  ;;  %v8898_v57 = vld [vmem:[#allocation8_spill] sm:$0xff] }
 0xeba   : > { %v3580_v20 = vadd.f32 %v3579_v46, %v8896_v12  ;;  %v8901_v46 = vld [vmem:[#allocation6_spill] sm:$0xff]  ;;  %v8904_v12 = vld [vmem:[#allocation5_spill] sm:$0xff] }
 0xebb   : > { %4163 = vmatpush.msrb.mxu1 %v3974_v35  ;;  %v3577_v35 = vadd.f32 %v3576_v15, %v8898_v57  ;;  %v7945_v15 = vpop.f32.mrf.mxu1 }
 0xebd   : > { %4164 = vmatpush.msrb.mxu1 %v3973_v0  ;;  %v3903_v0 = vmax.f32 %v3580_v20, 0.0  ;;  %v3902_v56 = vmax.f32 %v3577_v35, 0.0  ;;  %v7939_v3 = vpop.f32.mrf.mxu2  ;;  %v3559_v20 = vadd.f32 %v7817_v36, %v8904_v12  ;;  %v8907_v36 = vld [vmem:[#allocation4_spill] sm:$0xff] }
 0xebe   : > { %v3550_v10 = vadd.f32 %v7783_v5, %v8907_v36  ;;  %v8911_v5 = vld [vmem:[#allocation7_spill] sm:$0xff] }
 0xebf   : > { %4165 = vmatpush.msrb.mxu1 %v3972_v26  ;;  %v3568_v26 = vadd.f32 %v7872_v52, %v8901_v46  ;;  %v3898_v52 = vmax.f32 %v3565_v8, 0.0  ;;  %v8910_v8 = vld [vmem:[#allocation3_spill] sm:$0xff] }
 0xec0   : > { %v3893_v19 = vmax.f32 %v3550_v10, 0.0  ;;  %v8915_v10 = vld [vmem:[#allocation37_spill] sm:$0xff] }
 0xec1   : > { %4166 = vmatpush.msrb.mxu1 %v3971_v39  ;;  %v3582_v16 = vpop.f32.mrf.mxu0  ;;  %v3901_v39 = vmax.f32 %v3574_v17, 0.0  ;;  %v7961_v17 = vpop.f32.mrf.mxu3 }
 0xec2   : > { %v3583_v41 = vadd.f32 %v3582_v16, %v8897_v34  ;;  %v3899_v16 = vmax.f32 %v3568_v26, 0.0 }
 0xec3   : > { %4167 = vmatpush.msrb.mxu1 %v3970_v30  ;;  %v3900_v30 = vmax.f32 %v3571_v32, 0.0 }
 0xec4   : > { %v3904_v37 = vmax.f32 %v3583_v41, 0.0  ;;  %v8905_v41 = vld [vmem:[#allocation12_spill] sm:$0xff] }
 0xec5   : > { %4168 = vmatpush.msrb.mxu1 %v3969_v13  ;;  %v3562_v13 = vadd.f32 %v7836_v31, %v8903_v61  ;;  %v3556_v57 = vadd.f32 %v7805_v1, %v8905_v41  ;;  %v7957_v4 = vpop.f32.mrf.mxu2  ;;  %v3896_v31 = vmax.f32 %v3559_v20, 0.0 }
 0xec6   : > { %4053 = vmatpush.msrb.mxu2 %v3904_v37  ;;  %v8906_v37 = vld [vmem:[#allocation13_spill] sm:$0xff] }
 0xec7   : > { %v3897_v35 = vmax.f32 %v3562_v13, 0.0  ;;  %v3553_v2 = vadd.f32 %v7795_v7, %v8906_v37  ;;  %v3895_v32 = vmax.f32 %v3556_v57, 0.0  ;;  %v3538_v13 = vadd.f32 %v7706_v28, %v8911_v5  ;;  %v4018_v28 = vld.sshfl [vmem:[#allocation1 + $0x8] sm:$0xff pattern:$0x75316420] }
 0xec8   : > { %4054 = vmatpush.msrb.mxu2 %v3903_v0  ;;  %v7963_v0 = vpop.f32.mrf.mxu1 }
 0xec9   : > { %v7937_v27 = vpop.f32.mrf.mxu0  ;;  %v3894_v46 = vmax.f32 %v3553_v2, 0.0  ;;  %v3889_v37 = vmax.f32 %v3538_v13, 0.0  ;;  %v8914_v2 = vld [vmem:[#allocation36_spill] sm:$0xff]  ;;  %v8919_v13 = vld [vmem:[#allocation55_spill] sm:$0xff] }
 0xeca   : > { %4055 = vmatpush.msrb.mxu2 %v3902_v56  ;;  %v8908_v56 = vld [vmem:[#allocation9_spill] sm:$0xff] }
 0xecb   : > { %v3547_v1 = vadd.f32 %v7771_v11, %v8908_v56  ;;  %v7979_v11 = vpop.f32.mrf.mxu3  ;;  %v8916_v56 = vld [vmem:[#allocation59_spill] sm:$0xff] }
 0xecc   : > { %4056 = vmatpush.msrb.mxu2 %v3901_v39  ;;  %v8909_v39 = vld [vmem:[#allocation10_spill] sm:$0xff] }
 0xecd   : > { %v3544_v7 = vadd.f32 %v7749_v22, %v8909_v39  ;;  %v3892_v61 = vmax.f32 %v3547_v1, 0.0  ;;  %v7977_v12 = vpop.f32.mrf.mxu2  ;;  %v3715_v1 = vadd.f32 %v7759_v47, %v8916_v56 }
 0xece   : > { %4057 = vmatpush.msrb.mxu2 %v3900_v30  ;;  %v3541_v30 = vadd.f32 %v7725_v23, %v8910_v8  ;;  %v8913_v23 = vld [vmem:[#allocation61_spill] sm:$0xff]  ;;  %v8917_v8 = vld [vmem:[#allocation34_spill] sm:$0xff] }
 0xecf   : > { %v3948_v5 = vmax.f32 %v3715_v1, 0.0 }
 0xed0   : > { %4058 = vmatpush.msrb.mxu2 %v3899_v16  ;;  %v3891_v16 = vmax.f32 %v3544_v7, 0.0  ;;  %v3687_v20 = vpop.f32.mrf.mxu1  ;;  %v3890_v41 = vmax.f32 %v3541_v30, 0.0 }
 0xed1   : > { %v7953_v34 = vpop.f32.mrf.mxu0 }
 0xed2   : > { %4059 = vmatpush.msrb.mxu2 %v3898_v52  ;;  %v8912_v52 = vld [vmem:[#allocation39_spill] sm:$0xff] }
 0xed3   : > { %v3727_v22 = vadd.f32 %v7823_v29, %v8912_v52 }
 0xed4   : > { %4060 = vmatpush.msrb.mxu2 %v3897_v35  ;;  %v3724_v35 = vadd.f32 %v7807_v45, %v8913_v23  ;;  %v3864_v45 = vpop.f32.mrf.mxu3 }
 0xed5   : > { %v3952_v36 = vmax.f32 %v3727_v22, 0.0  ;;  %v7993_v39 = vpop.f32.mrf.mxu2  ;;  %v8921_v22 = vld [vmem:[#allocation32_spill] sm:$0xff] }
 0xed6   : > { %4061 = vmatpush.msrb.mxu2 %v3896_v31  ;;  %v3721_v31 = vadd.f32 %v7791_v60, %v8914_v2  ;;  %v3951_v29 = vmax.f32 %v3724_v35, 0.0  ;;  %v3712_v60 = vadd.f32 %v7729_v40, %v8917_v8  ;;  %v8924_v40 = vld [vmem:[#allocation66_spill] sm:$0xff] }
 0xed7   : > { %v8927_v8 = vld [vmem:[#allocation30_spill] sm:$0xff] }
 0xed8   : > { %4062 = vmatpush.msrb.mxu2 %v3895_v32  ;;  %v3718_v32 = vadd.f32 %v7777_v9, %v8915_v10  ;;  %v3690_v7 = vpop.f32.mrf.mxu1  ;;  %v3947_v52 = vmax.f32 %v3712_v60, 0.0 }
 0xed9   : > { %v7969_v26 = vpop.f32.mrf.mxu0 }
 0xeda   : > { %4063 = vmatpush.msrb.mxu2 %v3894_v46  ;;  %v3950_v46 = vmax.f32 %v3721_v31, 0.0  ;;  %v3949_v30 = vmax.f32 %v3718_v32, 0.0  ;;  %v8925_v32 = vld [vmem:[#allocation53_spill] sm:$0xff] }
 0xedc   : > { %4064 = vmatpush.msrb.mxu2 %v3893_v19 }
 0xede   : > { %4065 = vmatpush.msrb.mxu2 %v3892_v61  ;;  %v8918_v61 = vld [vmem:[#allocation35_spill] sm:$0xff] }
 0xedf   : > { %v3709_v9 = vadd.f32 %v7701_v43, %v8918_v61  ;;  %v8005_v43 = vpop.f32.mrf.mxu2  ;;  %v8928_v61 = vld [vmem:[#allocation31_spill] sm:$0xff] }
 0xee0   : > { %4066 = vmatpush.msrb.mxu2 %v3891_v16  ;;  %v8920_v16 = vld [vmem:[#allocation72_spill] sm:$0xff]  ;;  %v3693_v10 = vpop.f32.mrf.mxu1 }
 0xee1   : > { %v7983_v57 = vpop.f32.mrf.mxu0  ;;  %v3706_v47 = vadd.f32 %v8920_v16, %v8919_v13  ;;  %v3946_v35 = vmax.f32 %v3709_v9, 0.0  ;;  %v3694_v60 = vadd.f32 %v3693_v10, %v8927_v8  ;;  %v3691_v9 = vadd.f32 %v3690_v7, %v8928_v61  ;;  %v8929_v13 = vld [vmem:[#allocation50_spill] sm:$0xff]  ;;  %v8932_v7 = vld [vmem:[#allocation76_spill] sm:$0xff] }
 0xee2   : > { %4067 = vmatpush.msrb.mxu2 %v3890_v41  ;;  %v8922_v41 = vld [vmem:[#allocation69_spill] sm:$0xff]  ;;  %v3688_v16 = vadd.f32 %v3687_v20, %v8929_v13  ;;  %v8935_v8 = vld [vmem:[#allocation26_spill] sm:$0xff]  ;;  %v8937_v13 = vld [vmem:[#allocation24_spill] sm:$0xff] }
 0xee3   : > { %v3703_v23 = vadd.f32 %v8922_v41, %v8921_v22  ;;  %v3945_v31 = vmax.f32 %v3706_v47, 0.0  ;;  %v3941_v47 = vmax.f32 %v3694_v60, 0.0  ;;  %v3940_v41 = vmax.f32 %v3691_v9, 0.0 }
 0xee4   : > { %4068 = vmatpush.msrb.mxu2 %v3889_v37 }
 0xee5   : > { %4069 = vmatmul.f32.vlgmr.msrb.gmra.mxu2 %v4018_v28  ;;  %v8923_v28 = vld [vmem:[#allocation33_spill] sm:$0xff]  ;;  %v3944_v1 = vmax.f32 %v3703_v23, 0.0 }
 0xee6   : > { %4113 = vmatpush.msra.mxu2 %v3952_v36  ;;  %v3700_v2 = vadd.f32 %v8924_v40, %v8923_v28  ;;  %v3867_v36 = vpop.f32.mrf.mxu3  ;;  %v4020_v28 = vld.sshfl [vmem:[#allocation1 + $0x18] sm:$0xff pattern:$0x75316420] }
 0xee7   : > { %v8014_v23 = vpop.f32.mrf.mxu2  ;;  %v8931_v40 = vld [vmem:[#allocation29_spill] sm:$0xff]  ;;  %4109 = vmatmul.f32.vlgmr.msra.gmra.mxu1 %v4020_v28 }
 0xee8   : > { %4114 = vmatpush.msra.mxu2 %v3951_v29  ;;  %v8926_v29 = vld [vmem:[#allocation58_spill] sm:$0xff] }
 0xee9   : > { %v3597_v19 = vpop.f32.mrf.mxu0  ;;  %v3697_v56 = vadd.f32 %v8926_v29, %v8925_v32  ;;  %v8933_v32 = vld [vmem:[#allocation77_spill] sm:$0xff] }
 0xeea   : > { %4115 = vmatpush.msra.mxu2 %v3950_v46  ;;  %v3943_v46 = vmax.f32 %v3700_v2, 0.0  ;;  %v3682_v2 = vadd.f32 %v7945_v15, %v8931_v40  ;;  %v3868_v29 = vadd.f32 %v3867_v36, %v8933_v32  ;;  %v4021_v15 = vld.sshfl [vmem:[#allocation1 + $0x20] sm:$0xff pattern:$0x75316420]  ;;  %v8939_v36 = vld [vmem:[#allocation25_spill] sm:$0xff] }
 0xeeb   : > { %v8940_v40 = vld [vmem:[#allocation82_spill] sm:$0xff] }
 0xeec   : > { %4116 = vmatpush.msra.mxu2 %v3949_v30  ;;  %v3942_v30 = vmax.f32 %v3697_v56, 0.0 }
 0xeee   : > { %4117 = vmatpush.msra.mxu2 %v3948_v5 }
 0xef0   : > { %4118 = vmatpush.msra.mxu2 %v3947_v52  ;;  %v8930_v52 = vld [vmem:[#allocation28_spill] sm:$0xff] }
 0xef1   : > { %v3600_v37 = vpop.f32.mrf.mxu0  ;;  %v3685_v22 = vadd.f32 %v7963_v0, %v8930_v52  ;;  %v3937_v0 = vmax.f32 %v3682_v2, 0.0  ;;  %v8938_v52 = vld [vmem:[#allocation83_spill] sm:$0xff] }
 0xef2   : > { %4119 = vmatpush.msra.mxu2 %v3946_v35  ;;  %v3870_v35 = vpop.f32.mrf.mxu3 }
 0xef3   : > { %v3871_v10 = vadd.f32 %v3870_v35, %v8932_v7  ;;  %v3938_v20 = vmax.f32 %v3685_v22, 0.0  ;;  %v3862_v22 = vadd.f32 %v7979_v11, %v8938_v52  ;;  %v3598_v35 = vadd.f32 %v3597_v19, %v8939_v36  ;;  %v8943_v19 = vld [vmem:[#allocation22_spill] sm:$0xff] }
 0xef4   : > { %4120 = vmatpush.msra.mxu2 %v3945_v31  ;;  %v3939_v31 = vmax.f32 %v3688_v16, 0.0  ;;  %v3601_v16 = vadd.f32 %v3600_v37, %v8937_v13  ;;  %v3592_v32 = vadd.f32 %v7969_v26, %v8943_v19  ;;  %v3844_v13 = vadd.f32 %v7890_v33, %v7862_v51  ;;  %v4023_v51 = vld.sshfl [vmem:[#allocation1 + $0x30] sm:$0xff pattern:$0x75316420]  ;;  %v8950_v33 = vld [vmem:[#allocation46_spill] sm:$0xff]  ;;  %v2802_v19 = vpop.permute.xlu1 %2801 }
 0xef5   : > { %v4000_v9 = vmax.f32 %v3871_v10, 0.0  ;;  %v8942_v10 = vld [vmem:[#allocation85_spill] sm:$0xff]  ;;  %v3838_v36 = vadd.f32 %v7848_v54, %v7874_v50  ;;  %4169 = vmatmul.f32.vlgmr.msrb.gmra.mxu1 %v4023_v51  ;;  %v8953_v54 = vld [vmem:[#allocation86_spill] sm:$0xff] }
 0xef6   : > { %4121 = vmatpush.msra.mxu2 %v3944_v1  ;;  %v8934_v1 = vld [vmem:[#allocation17_spill] sm:$0xff]  ;;  %v3910_v7 = vmax.f32 %v3601_v16, 0.0  ;;  %v3856_v11 = vadd.f32 %v7943_v49, %v8942_v10  ;;  %v3832_v50 = vadd.f32 %v8953_v54, %v7896_v18 }
 0xef7   : > { %v8954_v10 = vld [vmem:[#allocation73_spill] sm:$0xff] }
 0xef8   : > { %4122 = vmatpush.msra.mxu2 %v3943_v46 }
 0xef9   : > { %v3603_v5 = vpop.f32.mrf.mxu0 }
 0xefa   : > { %4123 = vmatpush.msra.mxu2 %v3942_v30  ;;  %v3604_v46 = vadd.f32 %v3603_v5, %v8934_v1  ;;  %v8936_v30 = vld [vmem:[#allocation80_spill] sm:$0xff]  ;;  %v3765_v5 = vpop.f32.mrf.mxu2  ;;  %v8945_v1 = vld [vmem:[#allocation23_spill] sm:$0xff] }
 0xefb   : > { %v3865_v61 = vadd.f32 %v3864_v45, %v8936_v30  ;;  %v3859_v45 = vadd.f32 %v7961_v17, %v8940_v40  ;;  %v8947_v30 = vld [vmem:[#allocation11_spill] sm:$0xff] }
 0xefc   : > { %4124 = vmatpush.msra.mxu2 %v3941_v47  ;;  %v3911_v28 = vmax.f32 %v3604_v46, 0.0  ;;  %v3586_v26 = vadd.f32 %v7937_v27, %v8947_v30  ;;  %v3841_v27 = vadd.f32 %v7870_v24, %v7856_v53  ;;  %v8951_v40 = vld [vmem:[#allocation79_spill] sm:$0xff]  ;;  %v3835_v53 = vadd.f32 %v7826_v59, %v7902_v55 }
 0xefd   : > { %v3998_v2 = vmax.f32 %v3865_v61, 0.0  ;;  %v3907_v61 = vmax.f32 %v3592_v32, 0.0  ;;  %v8956_v32 = vld [vmem:[#allocation44_spill] sm:$0xff] }
 0xefe   : > { %4125 = vmatpush.msra.mxu2 %v3940_v41  ;;  %v3999_v41 = vmax.f32 %v3868_v29, 0.0  ;;  %v3909_v29 = vmax.f32 %v3598_v35, 0.0  ;;  %v3991_v35 = vmax.f32 %v3844_v13, 0.0  ;;  %v3990_v24 = vmax.f32 %v3841_v27, 0.0  ;;  %v8965_v27 = vld [vmem:[#allocation64_spill] sm:$0xff] }
 0xeff   : > { %v3988_v55 = vmax.f32 %v3835_v53, 0.0  ;;  %v4669_v53 = vmov 3.0  }
 0xf00   : > { %4126 = vmatpush.msra.mxu2 %v3939_v31  ;;  %v8941_v31 = vld [vmem:[#allocation14_spill] sm:$0xff]  ;;  %4647 = vrcp.f32 %v4669_v53 }
 0xf01   : > { %v3606_v56 = vpop.f32.mrf.mxu0  ;;  %v3595_v37 = vadd.f32 %v7983_v57, %v8941_v31  ;;  %v3589_v57 = vadd.f32 %v7953_v34, %v8945_v1 }
 0xf02   : > { %v3607_v60 = vadd.f32 %v3606_v56, %v8935_v8  ;;  %4127 = vmatpush.msra.mxu2 %v3938_v20  ;;  %v3997_v20 = vmax.f32 %v3862_v22, 0.0  ;;  %v8944_v56 = vld [vmem:[#allocation88_spill] sm:$0xff]  ;;  %v8946_v8 = vld [vmem:[#allocation87_spill] sm:$0xff]  ;;  %v3768_v34 = vpop.f32.mrf.mxu2 }
 0xf03   : > { %v3853_v17 = vadd.f32 %v7929_v58, %v8944_v56  ;;  %v3908_v46 = vmax.f32 %v3595_v37, 0.0  ;;  %v3850_v49 = vadd.f32 %v7921_v38, %v8946_v8  ;;  %v3847_v58 = vadd.f32 %v7908_v14, %v7830_v63  ;;  %v8948_v22 = vld [vmem:[#allocation47_spill] sm:$0xff]  ;;  %v8957_v56 = vld [vmem:[#allocation81_spill] sm:$0xff] }
 0xf04   : > { %v3912_v47 = vmax.f32 %v3607_v60, 0.0  ;;  %4128 = vmatpush.msra.mxu2 %v3937_v0  ;;  %v3996_v0 = vmax.f32 %v3859_v45, 0.0  ;;  %v3995_v60 = vmax.f32 %v3856_v11, 0.0  ;;  %v3905_v38 = vmax.f32 %v3586_v26, 0.0  ;;  %v8949_v14 = vld [vmem:[#allocation75_spill] sm:$0xff] }
 0xf05   : > { %4129 = vmatmul.f32.vlgmr.msra.gmra.mxu2 %v4021_v15  ;;  %v3906_v15 = vmax.f32 %v3589_v57, 0.0  ;;  %v3993_v16 = vmax.f32 %v3850_v49, 0.0  ;;  %v3992_v52 = vmax.f32 %v3847_v58, 0.0  ;;  %v3968_v63 = vmax.f32 %v8948_v22, 0.0  ;;  %v8966_v22 = vld [vmem:[#allocation38_spill] sm:$0xff] }
 0xf06   : > { %4173 = vmatpush.msrb.mxu2 %v4000_v9  ;;  %4081 = vmatpush.msrb.mxu3 %v3912_v47  ;;  %v3994_v9 = vmax.f32 %v3853_v17, 0.0  ;;  %v4019_v47 = vld.sshfl [vmem:[#allocation1 + $0x10] sm:$0xff pattern:$0x75316420]  ;;  %v3766_v45 = vadd.f32 %v3765_v5, %v8951_v40  ;;  %v3760_v5 = vadd.f32 %v8005_v43, %v8954_v10  ;;  %v3826_v18 = vadd.f32 %v8957_v56, %v2802_v19 }
 0xf07   : > { %v3987_v17 = vmax.f32 %v3832_v50, 0.0 }
 0xf08   : > { %4174 = vmatpush.msrb.mxu2 %v3999_v41  ;;  %4082 = vmatpush.msrb.mxu3 %v3911_v28  ;;  %v3769_v41 = vadd.f32 %v3768_v34, %v8949_v14  ;;  %v3967_v28 = vmax.f32 %v8950_v33, 0.0  ;;  %v3965_v11 = vmax.f32 %v3766_v45, 0.0  ;;  %v3963_v1 = vmax.f32 %v3760_v5, 0.0  ;;  %v8963_v34 = vld [vmem:[#allocation40_spill] sm:$0xff] }
 0xf09   : > { %v3985_v49 = vmax.f32 %v3826_v18, 0.0  ;;  %v3739_v13 = vadd.f32 %v7906_v25, %v8963_v34 }
 0xf0a   : > { %4175 = vmatpush.msrb.mxu2 %v3998_v2  ;;  %4083 = vmatpush.msrb.mxu3 %v3910_v7  ;;  %v8952_v2 = vld [vmem:[#allocation78_spill] sm:$0xff]  ;;  %v3966_v37 = vmax.f32 %v3769_v41, 0.0  ;;  %v3989_v7 = vmax.f32 %v3838_v36, 0.0  ;;  %v4022_v41 = vld.sshfl [vmem:[#allocation1 + $0x28] sm:$0xff pattern:$0x75316420]  ;;  %v4004_v36 = vpop.permute.xlu1 %4003 }
 0xf0b   : > { %v3763_v31 = vadd.f32 %v8014_v23, %v8952_v2  ;;  %v3757_v23 = vadd.f32 %v7993_v39, %v8956_v32  ;;  %v4024_v39 = vld.sshfl [vmem:[#allocation1 + $0x38] sm:$0xff pattern:$0x75316420]  ;;  %v4648_v2 = vpop.eup %4647 }
 0xf0c   : > { %4176 = vmatpush.msrb.mxu2 %v3997_v20  ;;  %4084 = vmatpush.msrb.mxu3 %v3909_v29  ;;  %v8955_v20 = vld [vmem:[#allocation84_spill] sm:$0xff]  ;;  %v4207_v10 = vmul.f32 3.0, %v4648_v2  ;;  %vm4211_vm5 = vweird.f32 %v4648_v2 }
 0xf0d   : > { %v3829_v59 = vadd.f32 %v8955_v20, %v7912_v42  ;;  %v3964_v29 = vmax.f32 %v3763_v31, 0.0  ;;  %v8959_v42 = vld [vmem:[#allocation70_spill] sm:$0xff]  ;;  %v3962_v8 = vmax.f32 %v3757_v23, 0.0 }
 0xf0e   : > { %4177 = vmatpush.msrb.mxu2 %v3996_v0  ;;  %4085 = vmatpush.msrb.mxu3 %v3908_v46  ;;  %v8958_v0 = vld [vmem:[#allocation45_spill] sm:$0xff]  ;;  %v3751_v46 = vadd.f32 %v7957_v4, %v8959_v42  ;;  %v4208_v20 = vsub.f32 1.0, %v4207_v10 }
 0xf0f   : > { %v3754_v43 = vadd.f32 %v7977_v12, %v8958_v0  ;;  %v3986_v57 = vmax.f32 %v3829_v59, 0.0 }
 0xf10   : > { %4178 = vmatpush.msrb.mxu2 %v3995_v60  ;;  %4086 = vmatpush.msrb.mxu3 %v3907_v61  ;;  %v8960_v60 = vld [vmem:[#allocation42_spill] sm:$0xff]  ;;  %v8961_v61 = vld [vmem:[#allocation43_spill] sm:$0xff]  ;;  %v3960_v58 = vmax.f32 %v3751_v46, 0.0  ;;  %v4209_v19 = vmul.f32 %v4648_v2, %v4208_v20 }
 0xf11   : > { %v3748_v30 = vadd.f32 %v7939_v3, %v8960_v60  ;;  %v3961_v26 = vmax.f32 %v3754_v43, 0.0  ;;  %v3745_v12 = vadd.f32 %v7927_v21, %v8961_v61  ;;  %v8964_v3 = vld [vmem:[#allocation41_spill] sm:$0xff]  ;;  %v3733_v21 = vadd.f32 %v7868_v48, %v8965_v27 }
 0xf12   : > { %4179 = vmatpush.msrb.mxu2 %v3994_v9  ;;  %4087 = vmatpush.msrb.mxu3 %v3906_v15  ;;  %v8962_v9 = vld [vmem:[#allocation67_spill] sm:$0xff] }
 0xf13   : > { %v3742_v4 = vadd.f32 %v7919_v6, %v8962_v9  ;;  %v3959_v15 = vmax.f32 %v3748_v30, 0.0  ;;  %v3730_v6 = vadd.f32 %v7844_v62, %v8966_v22  ;;  %v3954_v14 = vmax.f32 %v3733_v21, 0.0 }
 0xf14   : > { %4180 = vmatpush.msrb.mxu2 %v3993_v16  ;;  %4088 = vmatpush.msrb.mxu3 %v3905_v38  ;;  %v3958_v16 = vmax.f32 %v3745_v12, 0.0  ;;  %v3736_v38 = vadd.f32 %v7888_v44, %v8964_v3  ;;  %v4050_v44 = vpop.f32.mrf.mxu1 }
 0xf15   : > { %4089 = vmatmul.f32.vlgmr.msrb.gmra.mxu3 %v4019_v47  ;;  %v3957_v47 = vmax.f32 %v3742_v4, 0.0  ;;  %v3953_v25 = vmax.f32 %v3730_v6, 0.0  ;;  %v4051_v51 = vadd.f32 %v4050_v44, %v4004_v36 }
 0xf16   : > { %4181 = vmatpush.msrb.mxu2 %v3992_v52  ;;  %4133 = vmatpush.msra.mxu3 %v3968_v63  ;;  %v3956_v52 = vmax.f32 %v3739_v13, 0.0  ;;  %v3955_v63 = vmax.f32 %v3736_v38, 0.0 }
 0xf18   : > { %4182 = vmatpush.msrb.mxu2 %v3991_v35  ;;  %4134 = vmatpush.msra.mxu3 %v3967_v28 }
 0xf1a   : > { %4183 = vmatpush.msrb.mxu2 %v3990_v24  ;;  %4135 = vmatpush.msra.mxu3 %v3966_v37 }
 0xf1c   : > { %4184 = vmatpush.msrb.mxu2 %v3989_v7  ;;  %4136 = vmatpush.msra.mxu3 %v3965_v11 }
 0xf1e   : > { %4185 = vmatpush.msrb.mxu2 %v3988_v55  ;;  %4137 = vmatpush.msra.mxu3 %v3964_v29  ;;  %v4210_v29 = vadd.f32 %v4648_v2, %v4209_v19 }
 0xf20   : > { %4186 = vmatpush.msrb.mxu2 %v3987_v17  ;;  %4138 = vmatpush.msra.mxu3 %v3963_v1  ;;  %v4212_v0 = vsel %vm4211_vm5, %v4648_v2, %v4210_v29 }
 0xf22   : > { %4187 = vmatpush.msrb.mxu2 %v3986_v57  ;;  %4139 = vmatpush.msra.mxu3 %v3962_v8 }
 0xf24   : > { %4188 = vmatpush.msrb.mxu2 %v3985_v49  ;;  %4140 = vmatpush.msra.mxu3 %v3961_v26 }
 0xf25   : > { %4189 = vmatmul.f32.vlgmr.msrb.gmra.mxu2 %v4024_v39 }
 0xf26   : > { %4141 = vmatpush.msra.mxu3 %v3960_v58 }
 0xf28   : > { %4142 = vmatpush.msra.mxu3 %v3959_v15 }
 0xf2a   : > { %4143 = vmatpush.msra.mxu3 %v3958_v16 }
 0xf2c   : > { %4144 = vmatpush.msra.mxu3 %v3957_v47 }
 0xf2e   : > { %4145 = vmatpush.msra.mxu3 %v3956_v52 }
 0xf30   : > { %4146 = vmatpush.msra.mxu3 %v3955_v63 }
 0xf32   : > { %4147 = vmatpush.msra.mxu3 %v3954_v14 }
 0xf34   : > { %4148 = vmatpush.msra.mxu3 %v3953_v25 }
 0xf35   : > { %4149 = vmatmul.f32.vlgmr.msra.gmra.mxu3 %v4022_v41 }
 0xf64   : > { %v4110_v40 = vpop.f32.mrf.mxu1 }
 0xf68   : > { %v4070_v35 = vpop.f32.mrf.mxu2 }
 0xf69   : > { %v4071_v48 = vadd.f32 %v4070_v35, %v4051_v51 }
 0xf72   : > { %v4170_v37 = vpop.f32.mrf.mxu1 }
 0xf88   : > { %v4130_v45 = vpop.f32.mrf.mxu2 }
 0xf98   : > { %v4090_v33 = vpop.f32.mrf.mxu3 }
 0xf99   : > { %v4091_v28 = vadd.f32 %v4090_v33, %v4071_v48 }
 0xf9b   : > { %v4111_v62 = vadd.f32 %v4110_v40, %v4091_v28 }
 0xf9d   : > { %v4131_v24 = vadd.f32 %v4130_v45, %v4111_v62 }
 0xfa8   : > { %v4190_v50 = vpop.f32.mrf.mxu2 }
 0xfb8   : > { %v4150_v31 = vpop.f32.mrf.mxu3 }
 0xfb9   : > { %v4151_v54 = vadd.f32 %v4150_v31, %v4131_v24 }
 0xfbb   : > { %v4171_v7 = vadd.f32 %v4170_v37, %v4151_v54 }
 0xfbd   : > { %v4191_v5 = vadd.f32 %v4190_v50, %v4171_v7 }
 0xfbf   : > { %v4196_v11 = vrot.slane %v4191_v5, 1  ;;  %v4193_v18 = vperm.slane %v4191_v5, 0 }
 0xfc1   : > { %v4199_v59 = vsel %vm4198_vm3, %v4196_v11, 0.0  ;;  %v4194_v1 = vadd.f32 %v4193_v18, %v4191_v5 }
 0xfc2   : > { %v4200_v55 = vrot.slane %v4199_v59, 4 }
 0xfc4   : > { %v4201_v32 = vadd.f32 %v4200_v55, %v4199_v59 }
 0xfc6   : > { %v4202_v23 = vrot.slane %v4201_v32, 2 }
 0xfc8   : > { %v4203_v56 = vadd.f32 %v4202_v23, %v4201_v32 }
 0xfca   : > { %v4204_v17 = vrot.slane %v4203_v56, 1 }
 0xfcc   : > { %v4205_v43 = vadd.f32 %v4204_v17, %v4203_v56 }
 0xfce   : > { %v4213_v57 = vmul.f32 %v4212_v0, %v4205_v43 }
 0xfd0   : > { %v4214_v42 = vsub.f32 %v4194_v1, %v4213_v57 }
 0xfd2   : > { %4216 = vst.msk [vmem:[%s4821_s22 - $0x1] sm:$0xe] %vm4215_vm6, %v4214_v42 }
 0xfd3 PF: > { %s22_s21 = sadd.s32 1, %s4659_s21  }
 0xfd4   : > { %p19_p6 = scmp.ge.s32.totalorder %s22_s21, 4  }
 0xfd6   :  { %21 = sbr.rel (!%p19_p6) target bundleno = 1 (0x1), region = 121 }

</bundles_post_ra>
